<compile_context>
chip_gen: v7x
topology: tpu7x:2x2x1
jax: 0.10.0
libtpu: 0.0.40
codegen_flags: <defaults>
</compile_context>

<pallas_src>
import numpy as np
import jax
import jax.numpy as jnp
from jax.experimental import pallas as pl
from jax.experimental.pallas import tpu as pltpu

LATENT_DIM = 32
IMG_SHAPE = (1, 16, 16)          # (C, H, W)
IMG_PROD = int(np.prod(IMG_SHAPE))   # 256
BN_EPS = 0.8
LRELU_SLOPE = 0.2

H0, H1, H2, H3 = 128, 256, 512, 1024
TN = 256                          # feature tile of the 512->1024 / 1024->256 layers
NT = H3 // TN                     # grid steps (4)


def _generator_kernel(z_ref,
                      w0_ref, b0_ref,
                      w1_ref, g1_ref, be1_ref,
                      w2_ref, g2_ref, be2_ref,
                      w3_ref, g3_ref, be3_ref,
                      w4_ref, b4_ref,
                      o_ref,
                      h2_scr, acc_scr):
    """Fused 5-layer generator forward; grid streams layer-3/4 weight blocks."""
    t = pl.program_id(0)

    def mm(x, w_ref):
        # bf16 operands on the MXU, f32 accumulation.
        return jnp.dot(x.astype(jnp.bfloat16), w_ref[...],
                       preferred_element_type=jnp.float32)

    def lrelu(y):
        return jnp.where(y > 0, y, LRELU_SLOPE * y)

    def bn_lrelu(y, gamma, beta):
        # Training-mode BatchNorm1d, single-pass batch stats (sum / sum-sq),
        # folded into one per-feature scale & shift (one mul-add / element).
        inv_n = 1.0 / y.shape[0]
        mean = jnp.sum(y, axis=0, keepdims=True) * inv_n
        m2 = jnp.sum(y * y, axis=0, keepdims=True) * inv_n
        var = m2 - mean * mean
        scale = gamma * jax.lax.rsqrt(var + BN_EPS)
        shift = beta - mean * scale
        return lrelu(y * scale + shift)

    # ---- Step 0: layers 0-2 (resident small weights), init accumulator ----
    @pl.when(t == 0)
    def _():
        h0 = lrelu(mm(z_ref[...], w0_ref) + b0_ref[...])
        h1 = bn_lrelu(mm(h0, w1_ref), g1_ref[...], be1_ref[...])
        h2 = bn_lrelu(mm(h1, w2_ref), g2_ref[...], be2_ref[...])
        h2_scr[...] = h2.astype(h2_scr.dtype)
        acc_scr[...] = jnp.zeros_like(acc_scr)

    # ---- Every step: one 256-wide feature block of layer 3, accumulated ----
    # through the matching K-block of layer 4.  BN is per-feature, so each
    # block's statistics are self-contained and exact.
    h3_blk = bn_lrelu(mm(h2_scr[...], w3_ref), g3_ref[...], be3_ref[...])
    acc_scr[...] += jnp.dot(h3_blk.astype(jnp.bfloat16), w4_ref[...],
                            preferred_element_type=jnp.float32)

    # ---- Last step: head bias + tanh, single writeback ----
    @pl.when(t == pl.num_programs(0) - 1)
    def _():
        o_ref[...] = jnp.tanh(acc_scr[...] + b4_ref[...]).astype(o_ref.dtype)


def _const_spec(arr):
    """Full-array block, constant block index -> DMA once, VMEM-resident."""
    nd = arr.ndim
    return pl.BlockSpec(arr.shape, lambda t, _nd=nd: (0,) * _nd)


def generator_forward(z, params):
    """Run the whole generator as one fused Pallas kernel and reshape."""
    B = z.shape[0]
    p0, p1, p2, p3, p4 = params

    operands = (
        z,
        p0["w"], p0["b"],
        p1["w"], p1["gamma"], p1["beta"],
        p2["w"], p2["gamma"], p2["beta"],
        p3["w"], p3["gamma"], p3["beta"],
        p4["w"], p4["b"],
    )

    in_specs = [
        _const_spec(z),
        _const_spec(p0["w"]), _const_spec(p0["b"]),
        _const_spec(p1["w"]), _const_spec(p1["gamma"]), _const_spec(p1["beta"]),
        _const_spec(p2["w"]), _const_spec(p2["gamma"]), _const_spec(p2["beta"]),
        # Big weights: streamed in TN-wide blocks, pipelined by BlockSpec.
        pl.BlockSpec((H2, TN), lambda t: (0, t)),          # w3 (512, 1024) N-blocks
        pl.BlockSpec((1, TN), lambda t: (0, t)),           # gamma3
        pl.BlockSpec((1, TN), lambda t: (0, t)),           # beta3
        pl.BlockSpec((TN, IMG_PROD), lambda t: (t, 0)),    # w4 (1024, 256) K-blocks
        _const_spec(p4["b"]),
    ]

    flops = 2 * B * (LATENT_DIM * H0 + H0 * H1 + H1 * H2 + H2 * H3 + H3 * IMG_PROD)
    bytes_accessed = int(sum(int(np.prod(a.shape)) * a.dtype.itemsize for a in operands)
                         + B * IMG_PROD * 4)
    transcendentals = B * IMG_PROD + (H1 + H2 + H3)

    flat = pl.pallas_call(
        _generator_kernel,
        out_shape=jax.ShapeDtypeStruct((B, IMG_PROD), jnp.float32),
        grid_spec=pltpu.PrefetchScalarGridSpec(
            num_scalar_prefetch=0,
            grid=(NT,),
            in_specs=in_specs,
            out_specs=pl.BlockSpec((B, IMG_PROD), lambda t: (0, 0)),
            scratch_shapes=[
                pltpu.VMEM((B, H2), jnp.bfloat16),       # layer-2 activation carry
                pltpu.VMEM((B, IMG_PROD), jnp.float32),  # layer-4 accumulator
            ]),
        compiler_params=pltpu.CompilerParams(
            dimension_semantics=("arbitrary",)),
        cost_estimate=pl.CostEstimate(flops=flops,
                                      transcendentals=transcendentals,
                                      bytes_accessed=bytes_accessed),
    )(*operands)
    # img.view(B, *img_shape)  (plain-JAX glue reshape)
    return flat.reshape(B, *IMG_SHAPE)


def generator_reference(z, params):
    """Pure-JAX reference (same bf16 weight casts, full PyTorch semantics
    including the Linear bias on BN layers, which batch-mean cancels)."""
    def lrelu(y):
        return jnp.where(y > 0, y, LRELU_SLOPE * y)

    def mm(x, w):
        return jnp.dot(x.astype(jnp.bfloat16), w, preferred_element_type=jnp.float32)

    def bn(y, gamma, beta):
        mean = jnp.mean(y, axis=0, keepdims=True)
        var = jnp.mean((y - mean) ** 2, axis=0, keepdims=True)
        return gamma * (y - mean) * jax.lax.rsqrt(var + BN_EPS) + beta

    p0, p1, p2, p3, p4 = params
    h = lrelu(mm(z, p0["w"]) + p0["b"])
    h = lrelu(bn(mm(h, p1["w"]) + p1["b"], p1["gamma"], p1["beta"]))
    h = lrelu(bn(mm(h, p2["w"]) + p2["b"], p2["gamma"], p2["beta"]))
    h = lrelu(bn(mm(h, p3["w"]) + p3["b"], p3["gamma"], p3["beta"]))
    out = jnp.tanh(mm(h, p4["w"]) + p4["b"])
    return out.reshape(z.shape[0], *IMG_SHAPE)


def _init_linear(key, in_f, out_f):
    """PyTorch-style default init: U(-1/sqrt(in), 1/sqrt(in))."""
    k_w, k_b = jax.random.split(key)
    bound = 1.0 / np.sqrt(in_f)
    w = jax.random.uniform(k_w, (in_f, out_f), jnp.float32, -bound, bound)
    b = jax.random.uniform(k_b, (1, out_f), jnp.float32, -bound, bound)
    return w, b


def init_generator_params(key):
    dims = [(LATENT_DIM, H0, False),   # (in, out, use_bn)
            (H0, H1, True),
            (H1, H2, True),
            (H2, H3, True),
            (H3, IMG_PROD, False)]
    params = []
    for (in_f, out_f, use_bn) in dims:
        key, sub = jax.random.split(key)
        w, b = _init_linear(sub, in_f, out_f)
        params.append(dict(
            w=w.astype(jnp.bfloat16),                 # bf16 weight streaming
            b=b,                                      # f32 bias
            gamma=jnp.ones((1, out_f), jnp.float32),  # BN weight init = 1
            beta=jnp.zeros((1, out_f), jnp.float32),  # BN bias  init = 0
            use_bn=use_bn,
        ))
    return params


if __name__ == "__main__":
    key = jax.random.PRNGKey(0)
    k_param, k_z = jax.random.split(key)

    params = init_generator_params(k_param)
    # Batch kept as one block (BN batch stats must see the whole batch);
    # B=128 amortizes the weight stream and fills MXU rows.
    B = 128
    z = jax.random.normal(k_z, (B, LATENT_DIM), jnp.float32)

    img = generator_forward(z, params)
    img = jax.block_until_ready(img)

    assert img.shape == (B,) + IMG_SHAPE, img.shape
    assert img.dtype == jnp.float32
    assert bool(jnp.all(jnp.isfinite(img)))
    assert bool(jnp.all(jnp.abs(img) <= 1.0))  # tanh output range

    # Correctness vs. pure-JAX reference (bf16 weights -> loose absolute tol).
    ref = jax.block_until_ready(generator_reference(z, params))
    np.testing.assert_allclose(np.asarray(img), np.asarray(ref),
                               rtol=0.0, atol=2e-2)

    print("KERNEL_OK")
</pallas_src>

<mosaic_0001>
module attributes {stable_mosaic.version = 11 : i64} {
  func.func @_generator_kernel(%arg0: i32, %arg1: memref<128x32xf32, #tpu.memory_space<vmem>>, %arg2: memref<32x128xbf16, #tpu.memory_space<vmem>>, %arg3: memref<1x128xf32, #tpu.memory_space<vmem>>, %arg4: memref<128x256xbf16, #tpu.memory_space<vmem>>, %arg5: memref<1x256xf32, #tpu.memory_space<vmem>>, %arg6: memref<1x256xf32, #tpu.memory_space<vmem>>, %arg7: memref<256x512xbf16, #tpu.memory_space<vmem>>, %arg8: memref<1x512xf32, #tpu.memory_space<vmem>>, %arg9: memref<1x512xf32, #tpu.memory_space<vmem>>, %arg10: memref<512x256xbf16, #tpu.memory_space<vmem>>, %arg11: memref<1x256xf32, #tpu.memory_space<vmem>>, %arg12: memref<1x256xf32, #tpu.memory_space<vmem>>, %arg13: memref<256x256xbf16, #tpu.memory_space<vmem>>, %arg14: memref<1x256xf32, #tpu.memory_space<vmem>>, %arg15: memref<128x256xf32, #tpu.memory_space<vmem>>, %arg16: memref<128x512xbf16, #tpu.memory_space<vmem>>, %arg17: memref<128x256xf32, #tpu.memory_space<vmem>>) attributes {dimension_semantics = [#tpu.dimension_semantics<arbitrary>], iteration_bounds = array<i64: 4>, scalar_prefetch = 0 : i64, scratch_operands = 2 : i64, tpu.core_type = #tpu.core_type<tc>, window_params = [{pipeline_mode = #tpu.pipeline_mode<synchronous>, transform_indices = @transform_0, window_bounds = array<i64: 128, 32>}, {pipeline_mode = #tpu.pipeline_mode<synchronous>, transform_indices = @transform_1, window_bounds = array<i64: 32, 128>}, {pipeline_mode = #tpu.pipeline_mode<synchronous>, transform_indices = @transform_2, window_bounds = array<i64: 1, 128>}, {pipeline_mode = #tpu.pipeline_mode<synchronous>, transform_indices = @transform_3, window_bounds = array<i64: 128, 256>}, {pipeline_mode = #tpu.pipeline_mode<synchronous>, transform_indices = @transform_4, window_bounds = array<i64: 1, 256>}, {pipeline_mode = #tpu.pipeline_mode<synchronous>, transform_indices = @transform_5, window_bounds = array<i64: 1, 256>}, {pipeline_mode = #tpu.pipeline_mode<synchronous>, transform_indices = @transform_6, window_bounds = array<i64: 256, 512>}, {pipeline_mode = #tpu.pipeline_mode<synchronous>, transform_indices = @transform_7, window_bounds = array<i64: 1, 512>}, {pipeline_mode = #tpu.pipeline_mode<synchronous>, transform_indices = @transform_8, window_bounds = array<i64: 1, 512>}, {transform_indices = @transform_9, window_bounds = array<i64: 512, 256>}, {transform_indices = @transform_10, window_bounds = array<i64: 1, 256>}, {transform_indices = @transform_11, window_bounds = array<i64: 1, 256>}, {transform_indices = @transform_12, window_bounds = array<i64: 256, 256>}, {pipeline_mode = #tpu.pipeline_mode<synchronous>, transform_indices = @transform_13, window_bounds = array<i64: 1, 256>}, {pipeline_mode = #tpu.pipeline_mode<synchronous>, transform_indices = @transform_14, window_bounds = array<i64: 128, 256>}]} {
    %c0_i32 = arith.constant 0 : i32
    %0 = arith.cmpi eq, %arg0, %c0_i32 : i32
    %1 = arith.extui %0 : i1 to i32
    %c0_i32_0 = arith.constant 0 : i32
    %2 = arith.cmpi ne, %1, %c0_i32_0 : i32
    scf.if %2 {
      %c0_23 = arith.constant 0 : index
      %c0_24 = arith.constant 0 : index
      %43 = vector.load %arg1[%c0_23, %c0_24] : memref<128x32xf32, #tpu.memory_space<vmem>>, vector<128x32xf32>
      %44 = arith.truncf %43 : vector<128x32xf32> to vector<128x32xbf16>
      %c0_25 = arith.constant 0 : index
      %c0_26 = arith.constant 0 : index
      %45 = vector.load %arg2[%c0_25, %c0_26] : memref<32x128xbf16, #tpu.memory_space<vmem>>, vector<32x128xbf16>
      %cst_27 = arith.constant dense<0.000000e+00> : vector<128x128xf32>
      %46 = tpu.matmul %44, %45, %cst_27 {dimension_numbers = #tpu.dot_dimension_numbers<[1], [0], [0], [1], [0, 0, 1, 1], [], []>} : vector<128x32xbf16>, vector<32x128xbf16>, vector<128x128xf32> -> vector<128x128xf32>
      %c0_28 = arith.constant 0 : index
      %c0_29 = arith.constant 0 : index
      %47 = vector.load %arg3[%c0_28, %c0_29] : memref<1x128xf32, #tpu.memory_space<vmem>>, vector<1x128xf32>
      %48 = vector.broadcast %47 : vector<1x128xf32> to vector<128x128xf32>
      %49 = arith.addf %46, %48 : vector<128x128xf32>
      %cst_30 = arith.constant 0.000000e+00 : f32
      %50 = vector.broadcast %cst_30 : f32 to vector<128x128xf32>
      %51 = arith.cmpf ogt, %49, %50 : vector<128x128xf32>
      %cst_31 = arith.constant 2.000000e-01 : f32
      %52 = vector.broadcast %cst_31 : f32 to vector<128x128xf32>
      %53 = arith.mulf %52, %49 : vector<128x128xf32>
      %54 = arith.select %51, %49, %53 : vector<128x128xi1>, vector<128x128xf32>
      %55 = arith.truncf %54 : vector<128x128xf32> to vector<128x128xbf16>
      %c0_32 = arith.constant 0 : index
      %c0_33 = arith.constant 0 : index
      %56 = vector.load %arg4[%c0_32, %c0_33] : memref<128x256xbf16, #tpu.memory_space<vmem>>, vector<128x256xbf16>
      %cst_34 = arith.constant dense<0.000000e+00> : vector<128x256xf32>
      %57 = tpu.matmul %55, %56, %cst_34 {dimension_numbers = #tpu.dot_dimension_numbers<[1], [0], [0], [1], [0, 0, 1, 1], [], []>} : vector<128x128xbf16>, vector<128x256xbf16>, vector<128x256xf32> -> vector<128x256xf32>
      %c0_35 = arith.constant 0 : index
      %c0_36 = arith.constant 0 : index
      %58 = vector.load %arg5[%c0_35, %c0_36] : memref<1x256xf32, #tpu.memory_space<vmem>>, vector<1x256xf32>
      %c0_37 = arith.constant 0 : index
      %c0_38 = arith.constant 0 : index
      %59 = vector.load %arg6[%c0_37, %c0_38] : memref<1x256xf32, #tpu.memory_space<vmem>>, vector<1x256xf32>
      %cst_39 = arith.constant dense<0.000000e+00> : vector<256xf32>
      %60 = vector.multi_reduction <add>, %57, %cst_39 [0] : vector<128x256xf32> to vector<256xf32>
      %61 = vector.shape_cast %60 : vector<256xf32> to vector<1x256xf32>
      %cst_40 = arith.constant 7.812500e-03 : f32
      %62 = vector.broadcast %cst_40 : f32 to vector<1x256xf32>
      %63 = arith.mulf %61, %62 : vector<1x256xf32>
      %64 = arith.mulf %57, %57 : vector<128x256xf32>
      %cst_41 = arith.constant dense<0.000000e+00> : vector<256xf32>
      %65 = vector.multi_reduction <add>, %64, %cst_41 [0] : vector<128x256xf32> to vector<256xf32>
      %66 = vector.shape_cast %65 : vector<256xf32> to vector<1x256xf32>
      %cst_42 = arith.constant 7.812500e-03 : f32
      %67 = vector.broadcast %cst_42 : f32 to vector<1x256xf32>
      %68 = arith.mulf %66, %67 : vector<1x256xf32>
      %69 = arith.mulf %63, %63 : vector<1x256xf32>
      %70 = arith.subf %68, %69 : vector<1x256xf32>
      %cst_43 = arith.constant 8.000000e-01 : f32
      %71 = vector.broadcast %cst_43 : f32 to vector<1x256xf32>
      %72 = arith.addf %70, %71 : vector<1x256xf32>
      %73 = math.rsqrt %72 : vector<1x256xf32>
      %74 = arith.mulf %58, %73 : vector<1x256xf32>
      %75 = arith.mulf %63, %74 : vector<1x256xf32>
      %76 = arith.subf %59, %75 : vector<1x256xf32>
      %77 = vector.broadcast %74 : vector<1x256xf32> to vector<128x256xf32>
      %78 = arith.mulf %57, %77 : vector<128x256xf32>
      %79 = vector.broadcast %76 : vector<1x256xf32> to vector<128x256xf32>
      %80 = arith.addf %78, %79 : vector<128x256xf32>
      %cst_44 = arith.constant 0.000000e+00 : f32
      %81 = vector.broadcast %cst_44 : f32 to vector<128x256xf32>
      %82 = arith.cmpf ogt, %80, %81 : vector<128x256xf32>
      %cst_45 = arith.constant 2.000000e-01 : f32
      %83 = vector.broadcast %cst_45 : f32 to vector<128x256xf32>
      %84 = arith.mulf %83, %80 : vector<128x256xf32>
      %85 = arith.select %82, %80, %84 : vector<128x256xi1>, vector<128x256xf32>
      %86 = arith.truncf %85 : vector<128x256xf32> to vector<128x256xbf16>
      %c0_46 = arith.constant 0 : index
      %c0_47 = arith.constant 0 : index
      %87 = vector.load %arg7[%c0_46, %c0_47] : memref<256x512xbf16, #tpu.memory_space<vmem>>, vector<256x512xbf16>
      %cst_48 = arith.constant dense<0.000000e+00> : vector<128x512xf32>
      %88 = tpu.matmul %86, %87, %cst_48 {dimension_numbers = #tpu.dot_dimension_numbers<[1], [0], [0], [1], [0, 0, 1, 1], [], []>} : vector<128x256xbf16>, vector<256x512xbf16>, vector<128x512xf32> -> vector<128x512xf32>
      %c0_49 = arith.constant 0 : index
      %c0_50 = arith.constant 0 : index
      %89 = vector.load %arg8[%c0_49, %c0_50] : memref<1x512xf32, #tpu.memory_space<vmem>>, vector<1x512xf32>
      %c0_51 = arith.constant 0 : index
      %c0_52 = arith.constant 0 : index
      %90 = vector.load %arg9[%c0_51, %c0_52] : memref<1x512xf32, #tpu.memory_space<vmem>>, vector<1x512xf32>
      %cst_53 = arith.constant dense<0.000000e+00> : vector<512xf32>
      %91 = vector.multi_reduction <add>, %88, %cst_53 [0] : vector<128x512xf32> to vector<512xf32>
      %92 = vector.shape_cast %91 : vector<512xf32> to vector<1x512xf32>
      %cst_54 = arith.constant 7.812500e-03 : f32
      %93 = vector.broadcast %cst_54 : f32 to vector<1x512xf32>
      %94 = arith.mulf %92, %93 : vector<1x512xf32>
      %95 = arith.mulf %88, %88 : vector<128x512xf32>
      %cst_55 = arith.constant dense<0.000000e+00> : vector<512xf32>
      %96 = vector.multi_reduction <add>, %95, %cst_55 [0] : vector<128x512xf32> to vector<512xf32>
      %97 = vector.shape_cast %96 : vector<512xf32> to vector<1x512xf32>
      %cst_56 = arith.constant 7.812500e-03 : f32
      %98 = vector.broadcast %cst_56 : f32 to vector<1x512xf32>
      %99 = arith.mulf %97, %98 : vector<1x512xf32>
      %100 = arith.mulf %94, %94 : vector<1x512xf32>
      %101 = arith.subf %99, %100 : vector<1x512xf32>
      %cst_57 = arith.constant 8.000000e-01 : f32
      %102 = vector.broadcast %cst_57 : f32 to vector<1x512xf32>
      %103 = arith.addf %101, %102 : vector<1x512xf32>
      %104 = math.rsqrt %103 : vector<1x512xf32>
      %105 = arith.mulf %89, %104 : vector<1x512xf32>
      %106 = arith.mulf %94, %105 : vector<1x512xf32>
      %107 = arith.subf %90, %106 : vector<1x512xf32>
      %108 = vector.broadcast %105 : vector<1x512xf32> to vector<128x512xf32>
      %109 = arith.mulf %88, %108 : vector<128x512xf32>
      %110 = vector.broadcast %107 : vector<1x512xf32> to vector<128x512xf32>
      %111 = arith.addf %109, %110 : vector<128x512xf32>
      %cst_58 = arith.constant 0.000000e+00 : f32
      %112 = vector.broadcast %cst_58 : f32 to vector<128x512xf32>
      %113 = arith.cmpf ogt, %111, %112 : vector<128x512xf32>
      %cst_59 = arith.constant 2.000000e-01 : f32
      %114 = vector.broadcast %cst_59 : f32 to vector<128x512xf32>
      %115 = arith.mulf %114, %111 : vector<128x512xf32>
      %116 = arith.select %113, %111, %115 : vector<128x512xi1>, vector<128x512xf32>
      %117 = arith.truncf %116 : vector<128x512xf32> to vector<128x512xbf16>
      %c0_60 = arith.constant 0 : index
      %c0_61 = arith.constant 0 : index
      %118 = vector.load %arg16[%c0_60, %c0_61] : memref<128x512xbf16, #tpu.memory_space<vmem>>, vector<128x512xbf16>
      tpu.vector_store %arg16[%c0_60, %c0_61], %117 {strides = array<i32>} : memref<128x512xbf16, #tpu.memory_space<vmem>>, vector<128x512xbf16>,
      %cst_62 = arith.constant 0.000000e+00 : f32
      %119 = vector.broadcast %cst_62 : f32 to vector<128x256xf32>
      %c0_63 = arith.constant 0 : index
      %c0_64 = arith.constant 0 : index
      %120 = vector.load %arg17[%c0_63, %c0_64] : memref<128x256xf32, #tpu.memory_space<vmem>>, vector<128x256xf32>
      tpu.vector_store %arg17[%c0_63, %c0_64], %119 {strides = array<i32>} : memref<128x256xf32, #tpu.memory_space<vmem>>, vector<128x256xf32>,
    } else {
    }
    %c0 = arith.constant 0 : index
    %c0_1 = arith.constant 0 : index
    %3 = vector.load %arg16[%c0, %c0_1] : memref<128x512xbf16, #tpu.memory_space<vmem>>, vector<128x512xbf16>
    %c0_2 = arith.constant 0 : index
    %c0_3 = arith.constant 0 : index
    %4 = vector.load %arg10[%c0_2, %c0_3] : memref<512x256xbf16, #tpu.memory_space<vmem>>, vector<512x256xbf16>
    %cst = arith.constant dense<0.000000e+00> : vector<128x256xf32>
    %5 = tpu.matmul %3, %4, %cst {dimension_numbers = #tpu.dot_dimension_numbers<[1], [0], [0], [1], [0, 0, 1, 1], [], []>} : vector<128x512xbf16>, vector<512x256xbf16>, vector<128x256xf32> -> vector<128x256xf32>
    %c0_4 = arith.constant 0 : index
    %c0_5 = arith.constant 0 : index
    %6 = vector.load %arg11[%c0_4, %c0_5] : memref<1x256xf32, #tpu.memory_space<vmem>>, vector<1x256xf32>
    %c0_6 = arith.constant 0 : index
    %c0_7 = arith.constant 0 : index
    %7 = vector.load %arg12[%c0_6, %c0_7] : memref<1x256xf32, #tpu.memory_space<vmem>>, vector<1x256xf32>
    %cst_8 = arith.constant dense<0.000000e+00> : vector<256xf32>
    %8 = vector.multi_reduction <add>, %5, %cst_8 [0] : vector<128x256xf32> to vector<256xf32>
    %9 = vector.shape_cast %8 : vector<256xf32> to vector<1x256xf32>
    %cst_9 = arith.constant 7.812500e-03 : f32
    %10 = vector.broadcast %cst_9 : f32 to vector<1x256xf32>
    %11 = arith.mulf %9, %10 : vector<1x256xf32>
    %12 = arith.mulf %5, %5 : vector<128x256xf32>
    %cst_10 = arith.constant dense<0.000000e+00> : vector<256xf32>
    %13 = vector.multi_reduction <add>, %12, %cst_10 [0] : vector<128x256xf32> to vector<256xf32>
    %14 = vector.shape_cast %13 : vector<256xf32> to vector<1x256xf32>
    %cst_11 = arith.constant 7.812500e-03 : f32
    %15 = vector.broadcast %cst_11 : f32 to vector<1x256xf32>
    %16 = arith.mulf %14, %15 : vector<1x256xf32>
    %17 = arith.mulf %11, %11 : vector<1x256xf32>
    %18 = arith.subf %16, %17 : vector<1x256xf32>
    %cst_12 = arith.constant 8.000000e-01 : f32
    %19 = vector.broadcast %cst_12 : f32 to vector<1x256xf32>
    %20 = arith.addf %18, %19 : vector<1x256xf32>
    %21 = math.rsqrt %20 : vector<1x256xf32>
    %22 = arith.mulf %6, %21 : vector<1x256xf32>
    %23 = arith.mulf %11, %22 : vector<1x256xf32>
    %24 = arith.subf %7, %23 : vector<1x256xf32>
    %25 = vector.broadcast %22 : vector<1x256xf32> to vector<128x256xf32>
    %26 = arith.mulf %5, %25 : vector<128x256xf32>
    %27 = vector.broadcast %24 : vector<1x256xf32> to vector<128x256xf32>
    %28 = arith.addf %26, %27 : vector<128x256xf32>
    %cst_13 = arith.constant 0.000000e+00 : f32
    %29 = vector.broadcast %cst_13 : f32 to vector<128x256xf32>
    %30 = arith.cmpf ogt, %28, %29 : vector<128x256xf32>
    %cst_14 = arith.constant 2.000000e-01 : f32
    %31 = vector.broadcast %cst_14 : f32 to vector<128x256xf32>
    %32 = arith.mulf %31, %28 : vector<128x256xf32>
    %33 = arith.select %30, %28, %32 : vector<128x256xi1>, vector<128x256xf32>
    %c0_15 = arith.constant 0 : index
    %c0_16 = arith.constant 0 : index
    %34 = vector.load %arg17[%c0_15, %c0_16] : memref<128x256xf32, #tpu.memory_space<vmem>>, vector<128x256xf32>
    %35 = arith.truncf %33 : vector<128x256xf32> to vector<128x256xbf16>
    %c0_17 = arith.constant 0 : index
    %c0_18 = arith.constant 0 : index
    %36 = vector.load %arg13[%c0_17, %c0_18] : memref<256x256xbf16, #tpu.memory_space<vmem>>, vector<256x256xbf16>
    %cst_19 = arith.constant dense<0.000000e+00> : vector<128x256xf32>
    %37 = tpu.matmul %35, %36, %cst_19 {dimension_numbers = #tpu.dot_dimension_numbers<[1], [0], [0], [1], [0, 0, 1, 1], [], []>} : vector<128x256xbf16>, vector<256x256xbf16>, vector<128x256xf32> -> vector<128x256xf32>
    %38 = arith.addf %34, %37 : vector<128x256xf32>
    %c0_20 = arith.constant 0 : index
    %c0_21 = arith.constant 0 : index
    %39 = vector.load %arg17[%c0_20, %c0_21] : memref<128x256xf32, #tpu.memory_space<vmem>>, vector<128x256xf32>
    tpu.vector_store %arg17[%c0_20, %c0_21], %38 {strides = array<i32>} : memref<128x256xf32, #tpu.memory_space<vmem>>, vector<128x256xf32>,
    %c3_i32 = arith.constant 3 : i32
    %40 = arith.cmpi eq, %arg0, %c3_i32 : i32
    %41 = arith.extui %40 : i1 to i32
    %c0_i32_22 = arith.constant 0 : i32
    %42 = arith.cmpi ne, %41, %c0_i32_22 : i32
    scf.if %42 {
      %c0_23 = arith.constant 0 : index
      %c0_24 = arith.constant 0 : index
      %43 = vector.load %arg17[%c0_23, %c0_24] : memref<128x256xf32, #tpu.memory_space<vmem>>, vector<128x256xf32>
      %c0_25 = arith.constant 0 : index
      %c0_26 = arith.constant 0 : index
      %44 = vector.load %arg14[%c0_25, %c0_26] : memref<1x256xf32, #tpu.memory_space<vmem>>, vector<1x256xf32>
      %45 = vector.broadcast %44 : vector<1x256xf32> to vector<128x256xf32>
      %46 = arith.addf %43, %45 : vector<128x256xf32>
      %47 = math.tanh %46 : vector<128x256xf32>
      %c0_27 = arith.constant 0 : index
      %c0_28 = arith.constant 0 : index
      %48 = vector.load %arg15[%c0_27, %c0_28] : memref<128x256xf32, #tpu.memory_space<vmem>>, vector<128x256xf32>
      tpu.vector_store %arg15[%c0_27, %c0_28], %47 {strides = array<i32>} : memref<128x256xf32, #tpu.memory_space<vmem>>, vector<128x256xf32>,
    } else {
    }
    return
  }
  func.func @transform_0(%arg0: i32) -> (i32, i32) {
    %c0_i32 = arith.constant 0 : i32
    %c0_i32_0 = arith.constant 0 : i32
    %c0_i32_1 = arith.constant 0 : i32
    return %c0_i32, %c0_i32_0 : i32, i32
  }
  func.func @transform_1(%arg0: i32) -> (i32, i32) {
    %c0_i32 = arith.constant 0 : i32
    %c0_i32_0 = arith.constant 0 : i32
    %c0_i32_1 = arith.constant 0 : i32
    return %c0_i32, %c0_i32_0 : i32, i32
  }
  func.func @transform_2(%arg0: i32) -> (i32, i32) {
    %c0_i32 = arith.constant 0 : i32
    %c0_i32_0 = arith.constant 0 : i32
    %c0_i32_1 = arith.constant 0 : i32
    return %c0_i32, %c0_i32_0 : i32, i32
  }
  func.func @transform_3(%arg0: i32) -> (i32, i32) {
    %c0_i32 = arith.constant 0 : i32
    %c0_i32_0 = arith.constant 0 : i32
    %c0_i32_1 = arith.constant 0 : i32
    return %c0_i32, %c0_i32_0 : i32, i32
  }
  func.func @transform_4(%arg0: i32) -> (i32, i32) {
    %c0_i32 = arith.constant 0 : i32
    %c0_i32_0 = arith.constant 0 : i32
    %c0_i32_1 = arith.constant 0 : i32
    return %c0_i32, %c0_i32_0 : i32, i32
  }
  func.func @transform_5(%arg0: i32) -> (i32, i32) {
    %c0_i32 = arith.constant 0 : i32
    %c0_i32_0 = arith.constant 0 : i32
    %c0_i32_1 = arith.constant 0 : i32
    return %c0_i32, %c0_i32_0 : i32, i32
  }
  func.func @transform_6(%arg0: i32) -> (i32, i32) {
    %c0_i32 = arith.constant 0 : i32
    %c0_i32_0 = arith.constant 0 : i32
    %c0_i32_1 = arith.constant 0 : i32
    return %c0_i32, %c0_i32_0 : i32, i32
  }
  func.func @transform_7(%arg0: i32) -> (i32, i32) {
    %c0_i32 = arith.constant 0 : i32
    %c0_i32_0 = arith.constant 0 : i32
    %c0_i32_1 = arith.constant 0 : i32
    return %c0_i32, %c0_i32_0 : i32, i32
  }
  func.func @transform_8(%arg0: i32) -> (i32, i32) {
    %c0_i32 = arith.constant 0 : i32
    %c0_i32_0 = arith.constant 0 : i32
    %c0_i32_1 = arith.constant 0 : i32
    return %c0_i32, %c0_i32_0 : i32, i32
  }
  func.func @transform_9(%arg0: i32) -> (i32, i32) {
    %c0_i32 = arith.constant 0 : i32
    %c0_i32_0 = arith.constant 0 : i32
    return %c0_i32, %arg0 : i32, i32
  }
  func.func @transform_10(%arg0: i32) -> (i32, i32) {
    %c0_i32 = arith.constant 0 : i32
    %c0_i32_0 = arith.constant 0 : i32
    return %c0_i32, %arg0 : i32, i32
  }
  func.func @transform_11(%arg0: i32) -> (i32, i32) {
    %c0_i32 = arith.constant 0 : i32
    %c0_i32_0 = arith.constant 0 : i32
    return %c0_i32, %arg0 : i32, i32
  }
  func.func @transform_12(%arg0: i32) -> (i32, i32) {
    %c0_i32 = arith.constant 0 : i32
    %c0_i32_0 = arith.constant 0 : i32
    return %arg0, %c0_i32 : i32, i32
  }
  func.func @transform_13(%arg0: i32) -> (i32, i32) {
    %c0_i32 = arith.constant 0 : i32
    %c0_i32_0 = arith.constant 0 : i32
    %c0_i32_1 = arith.constant 0 : i32
    return %c0_i32, %c0_i32_0 : i32, i32
  }
  func.func @transform_14(%arg0: i32) -> (i32, i32) {
    %c0_i32 = arith.constant 0 : i32
    %c0_i32_0 = arith.constant 0 : i32
    %c0_i32_1 = arith.constant 0 : i32
    return %c0_i32, %c0_i32_0 : i32, i32
  }
}

</mosaic_0001>

<bundles_post_ra>
// kernel: tpu_custom_call.1
= control target key start
LH: loop header
LB: loop body
LE: loop exit
PB: predicated region body
PF: predicated region fallthrough
CT: control target
= control target key end

     0   :  { %s8228_s0 = inlined_call_operand.vmem [shape: f32[128,32], index: 0, kind: input, shape index: {}]   ;;  %s8229_s1 = inlined_call_operand.vmem [shape: bf16[32,128], index: 1, kind: input, shape index: {}]   ;;  %s8230_s2 = inlined_call_operand.vmem [shape: f32[1,128], index: 2, kind: input, shape index: {}]   ;;  %s8231_s3 = inlined_call_operand.vmem [shape: bf16[128,256], index: 3, kind: input, shape index: {}]   ;;  %s8232_s4 = inlined_call_operand.vmem [shape: f32[1,256], index: 4, kind: input, shape index: {}]   ;;  %s8233_s5 = inlined_call_operand.vmem [shape: f32[1,256], index: 5, kind: input, shape index: {}]   ;;  %s8234_s6 = inlined_call_operand.hbm [shape: bf16[256,512], index: 6, kind: input, shape index: {}]   ;;  %s8235_s7 = inlined_call_operand.vmem [shape: f32[1,512], index: 7, kind: input, shape index: {}]   ;;  %s8236_s8 = inlined_call_operand.vmem [shape: f32[1,512], index: 8, kind: input, shape index: {}]   ;;  %s8237_s9 = inlined_call_operand.hbm [shape: bf16[512,1024], index: 9, kind: input, shape index: {}]   ;;  %s8238_s10 = inlined_call_operand.vmem [shape: f32[1,1024], index: 10, kind: input, shape index: {}]   ;;  %s8239_s11 = inlined_call_operand.vmem [shape: f32[1,1024], index: 11, kind: input, shape index: {}]   ;;  %s8240_s12 = inlined_call_operand.hbm [shape: bf16[1024,256], index: 12, kind: input, shape index: {}]   ;;  %s8241_s13 = inlined_call_operand.vmem [shape: f32[1,256], index: 13, kind: input, shape index: {}]   ;;  %s8242_s14 = inlined_call_operand.hbm [shape: f32[128,256], index: 14, kind: output, shape index: {}]  }
   0x1   :  { %8360 = sst [smem:[#allocation70_spill]] %s8235_s7 }
   0x2   :  { %8361 = sst [smem:[#allocation71_spill]] %s8236_s8 }
   0x3   :  { %8362 = sst [smem:[#allocation72_spill]] %s8237_s9 }
   0x4   :  { %8363 = sst [smem:[#allocation73_spill]] %s8241_s13 }
   0x5   :  { %8364 = sst [smem:[#allocation74_spill]] %s8242_s14 }
   0x6   :  { %19 = vsyncpa [#allocation5], 0 }
   0x7   :  { %20 = vsyncpa [#allocation8], 0 }
   0x8   :  { %22 = vsyncpa [#allocation8 + $0x1], 0 }
   0x9   :  { %23 = vsyncpa [#allocation6], 0  ;;  %s5402_s29 = smov 0   ;;  %s5404_s30 = smov 0  }
   0xa   :  { %s5406_s15 = smov 0   ;;  %s5408_s16 = smov 0  }
   0xb LB: > { %8365 = sst [smem:[#allocation14_spill]] %s5306_s15  ;;  %s5423_s17 = sadd.s32 1, %s5310_s16   ;;  %s5310_s16 = sphi %s5408_s16, %s8722_s16   ;;  %s5306_s15 = sphi %s5406_s15, %s8724_s15   ;;  %s5302_s30 = sphi %s5404_s30, %s8726_s30   ;;  %s5298_s29 = sphi %s5402_s29, %s8725_s29  }
   0xc   : > { %8366 = sst [smem:[#allocation15_spill]] %s5423_s17  ;;  %s225_s18 = sadd.s32 1, %s5306_s15 }
   0xd   : > { %s222_s19 = ssub.s32 %s5310_s16, %s5423_s17  ;;  %p232_p0 = scmp.ne.s32.totalorder %s5306_s15, %s5302_s30 }
   0xe   : > { %p223_p1 = scmp.eq.s32.totalorder %s222_s19, 0  ;;  %p233_p2 = scmp.eq.s32.totalorder %s5310_s16, 0 }
   0xf   : > { %p4759_p3 = scmp.lt.s32.totalorder %s5310_s16, 4  ;;  %s422_s21 = sand.u32 1, %s5310_s16  }
  0x10   : > { %s5433_s20 = scalar_select %p223_p1, %s5306_s15, %s225_s18  }
  0x11   : > { %p234_p4 = por %p233_p2, %p232_p0  ;;  %s8243_s22 = sand.u32 1, %s5306_s15  }
  0x12   : > { %8367 = sst [smem:[#allocation16_spill]] %s5433_s20  ;;  %s4432_s23 = sshll.u32 %s8243_s22, 9 }
  0x13   : > { %s4638_s24 = sshll.u32 %s5310_s16, 7  ;;  %s8368_s9 = sld [smem:[#allocation72_spill]] }
  0x14   : > { %s426_s28 = scalar_lea.vmem [#allocation7], %s4432_s23  ;;  %p5445_p5 = pnand %p4759_p3, %p234_p4 }
  0x15   : > { %s433_s19 = sshll.u32 %s426_s28, 4  ;;  %s5451_s22 = scalar_lea.sflag [#allocation8], %s422_s21  ;;  %s5449_s19 = int_to_ptr.vmem [resolvable:$true] %s433_s19 }
  0x16   : > { %s8369_s18 = scalar_select %p5445_p5, 1, 0 }
  0x17   : > { %p8251_p7 = pneg %p5445_p5 }
  0x19   : > { %s5443_s27 = scalar_lea.hbm %s8368_s9, %s4638_s24  ;;  %s5159_s25 = scalar_lea.hbm %s8368_s9, 32768 }
  0x1a   : > { %s5154_s20 = scalar_lea.hbm %s5443_s27, 8192  ;;  %p5160_p10 = scmp.lt.u32.totalorder %s5443_s27, %s8368_s9 }
  0x1b   : > { %p5155_p6 = scmp.ne.s32.totalorder %s5443_s27, %s5154_s20  ;;  %p5161_p11 = scmp.lt.u32.totalorder %s5159_s25, %s5154_s20 }
  0x1c   : > { %p5163_p13 = scmp.lt.u32.totalorder %s5154_s20, %s5443_s27 }
  0x1d   : > { %p5157_p8 = pnand %p8251_p7, %p5155_p6  ;;  %p5162_p12 = por %p5161_p11, %p5160_p10 }
  0x1f   : > { %p5158_p9 = pneg %p5157_p8  ;;  %p5164_p0 = por %p5163_p13, %p5162_p12 }
  0x21   : > { %p5165_p1 = pnand %p5164_p0, %p5158_p9 }
  0x23   : > { %5168 = shalt.err (!%p5165_p1)
}
  0x24   : > { %s5169_s21 = scalar_lea.vmem %s5449_s19, 8192  ;;  %s5312_s23 = smov [#allocation7]  }
  0x25   : > { %p5170_p2 = scmp.ne.s32.totalorder %s5449_s19, %s5169_s21  ;;  %s5174_s24 = sshll.u32 %s5312_s23, 4  ;;  %s5175_s24 = int_to_ptr.vmem [resolvable:$false] %s5174_s24 }
  0x26   : > { %s5176_s26 = scalar_lea.vmem %s5175_s24, 16384  ;;  %p5177_p6 = scmp.lt.s32.totalorder %s5449_s19, %s5175_s24 }
  0x27   : > { %p5172_p3 = pnand %p5170_p2, %p8251_p7  ;;  %p5178_p8 = scmp.lt.s32.totalorder %s5176_s26, %s5169_s21 }
  0x29   : > { %p5173_p4 = pneg %p5172_p3  ;;  %p5179_p10 = por %p5178_p8, %p5177_p6 }
  0x2b   : > { %p5180_p11 = pnand %p5179_p10, %p5173_p4 }
  0x2d   : > { %5183 = shalt.err (!%p5180_p11)
}
  0x2e   : > { %s5313_s20 = smov 512   ;;  %s8244_s25 = smov 128  }
  0x2f   : > { %s8245_s28 = smov 8   ;;  %s5482_s21 = sadd.s32 4294967295, %s5310_s16  }
  0x30   : > { %4754 = dma.hbm_to_vmem [thread:$0]  (!%p5445_p5), %s5443_s27, 8192, %s5449_s19, %s5451_s22, %s5313_s20, %s8244_s25, %s8245_s28  }
  0x31   : > { %p238_p9 = scmp.ne.s32.totalorder %s5302_s30, %s5298_s29  ;;  %p8250_p12 = scmp.eq.s32.totalorder %s5482_s21, 0 }
  0x32   : > { %p4429_p13 = scmp.ge.s32.totalorder %s5310_s16, 1  ;;  %p369_p0 = scmp.lt.s32.totalorder %s5310_s16, 5 }
  0x33   : > { %p5491_p1 = por %p8250_p12, %p238_p9  ;;  %s5316_s27 = smov [#allocation4]  }
  0x34   : > { %p5496_p3 = pnand %p4429_p13, %p369_p0  ;;  %s399_s19 = sshll.u32 %s5316_s27, 4  ;;  %s5502_s19 = int_to_ptr.vmem [resolvable:$true] %s399_s19 }
  0x35   : > { %s8370_s23 = scalar_select %p5491_p1, 1, 0 }
  0x36   : > { %s8371_s24 = scalar_select %p5496_p3, 1, 0 }
  0x37   : > { %p4747_p4 = pneg %p5496_p3  ;;  %s8372_s29 = sand.u32 1, %s5306_s15  }
  0x38   : > { %s4435_s26 = sshll.u32 %s8372_s29, 8  ;;  %s4640_s25 = sshll.u32 %s5310_s16, 12 }
  0x39   : > { %p5508_p6 = pnand %p4747_p4, %p8250_p12  ;;  %s463_s28 = scalar_lea.vmem [#allocation9], %s4435_s26 }
  0x3a   : > { %s471_s9 = sshll.u32 %s463_s28, 4  ;;  %s5516_s13 = scalar_lea.hbm %s8240_s12, %s4640_s25  ;;  %s5539_s9 = int_to_ptr.vmem [resolvable:$true] %s471_s9 }
  0x3b   : > { %s5184_s7 = scalar_lea.hbm %s8234_s6, 8192  ;;  %p5186_p10 = pneg %p5508_p6 }
  0x3c   : > { %p5185_p8 = scmp.ne.s32.totalorder %s8234_s6, %s5184_s7  ;;  %p5191_p13 = scmp.lt.u32.totalorder %s5184_s7, %s8234_s6 }
  0x3e   : > { %p5187_p11 = pnand %p5186_p10, %p5185_p8 }
  0x40   : > { %p5188_p9 = pneg %p5187_p11 }
  0x42   : > { %p5193_p0 = pnand %p5191_p13, %p5188_p9 }
  0x44   : > { %5196 = shalt.err (!%p5193_p0)
}
  0x45   : > { %s5197_s14 = scalar_lea.vmem %s5502_s19, 8192  ;;  %p5205_p7 = scmp.lt.s32.totalorder %s5502_s19, %s5502_s19 }
  0x46   : > { %p5198_p4 = scmp.ne.s32.totalorder %s5502_s19, %s5197_s14  ;;  %p5206_p1 = scmp.lt.s32.totalorder %s5197_s14, %s5197_s14 }
  0x48   : > { %p5200_p2 = pnand %p5198_p4, %p5186_p10  ;;  %p5207_p3 = por %p5206_p1, %p5205_p7 }
  0x4a   : > { %p5201_p12 = pneg %p5200_p2 }
  0x4c   : > { %p5208_p5 = pnand %p5207_p3, %p5201_p12 }
  0x4e   : > { %5211 = shalt.err (!%p5208_p5)
}
  0x4f   : > { %s5317_s8 = smov 256   ;;  %s5318_s7 = smov 16  }
  0x50   : > { %4750 = dma.hbm_to_vmem [thread:$0]  (!%p5508_p6), %s8234_s6, 8192, %s5502_s19, [#allocation5], %s5317_s8, %s5317_s8, %s5318_s7  }
  0x51   : > { %s5212_s25 = scalar_lea.hbm %s5516_s13, 4096  ;;  %p8374_p12 = scmp.ne.s32.totalorder %s8369_s18, 0 }
  0x52   : > { %p5213_p7 = scmp.ne.s32.totalorder %s5516_s13, %s5212_s25  ;;  %s5217_s29 = scalar_lea.hbm %s8240_s12, 16384 }
  0x53   : > { %p8375_p5 = pneg %p8374_p12  ;;  %p5218_p3 = scmp.lt.u32.totalorder %s5516_s13, %s8240_s12 }
  0x54   : > { %p5219_p8 = scmp.lt.u32.totalorder %s5217_s29, %s5212_s25  ;;  %p5221_p11 = scmp.lt.u32.totalorder %s5212_s25, %s5516_s13 }
  0x55   : > { %p5215_p1 = pnand %p5213_p7, %p8375_p5 }
  0x56   : > { %p5220_p10 = por %p5219_p8, %p5218_p3 }
  0x57   : > { %p5216_p2 = pneg %p5215_p1 }
  0x58   : > { %p5222_p6 = por %p5221_p11, %p5220_p10 }
  0x5a   : > { %p5223_p9 = pnand %p5222_p6, %p5216_p2 }
  0x5c   : > { %5226 = shalt.err (!%p5223_p9)
}
  0x5d   : > { %s5227_s19 = scalar_lea.vmem %s5539_s9, 4096  ;;  %p8376_p0 = pmov %p8375_p5 }
  0x5e   : > { %p5228_p13 = scmp.ne.s32.totalorder %s5539_s9, %s5227_s19  ;;  %s5319_s20 = smov [#allocation9]  }
  0x5f   : > { %s5232_s14 = sshll.u32 %s5319_s20, 4  ;;  %s5233_s14 = int_to_ptr.vmem [resolvable:$false] %s5232_s14 }
  0x60   : > { %p5230_p4 = pnand %p5228_p13, %p8376_p0  ;;  %s5234_s8 = scalar_lea.vmem %s5233_s14, 8192 }
  0x61   : > { %p5235_p5 = scmp.lt.s32.totalorder %s5539_s9, %s5233_s14  ;;  %p5236_p1 = scmp.lt.s32.totalorder %s5234_s8, %s5227_s19 }
  0x62   : > { %p5231_p7 = pneg %p5230_p4 }
  0x63   : > { %p5237_p3 = por %p5236_p1, %p5235_p5 }
  0x65   : > { %p5238_p8 = pnand %p5237_p3, %p5231_p7 }
  0x67   : > { %5241 = shalt.err (!%p5238_p8)
}
  0x68   : > { %s8377_s7 = smov 8   ;;  %s8378_s15 = smov 128  }
  0x69   : > { %4757 = dma.hbm_to_vmem [thread:$0]  (!%p8374_p12), %s5516_s13, 4096, %s5539_s9, %s5451_s22, %s8378_s15, %s8378_s15, %s8377_s7  }
  0x6a   : > { %p8379_p2 = scmp.ne.s32.totalorder %s8371_s24, 0 }
  0x6b   : > { %p8380_p10 = scmp.eq.s32.totalorder (!%p8379_p2), %s5482_s21, 0 }
  0x6c   : > { %483 = sbr.rel (%p8379_p2) target bundleno = 1958 (0x7a6), region = 76 }
  0x73   : > { %5285 = dma.done.wait (%p8380_p10), [#allocation5], 8192   ;;  %p8381_p11 = pmov %p8380_p10 }
  0x74   : > { %s489_s18 = sand.u32 1, %s5482_s21   ;;  %s491_s17 = sand.u32 1, %s5302_s30  }
  0x75   : > { %5287 = vsyncadd (%p8381_p11), [#allocation5], 4294959104  ;;  %s4441_s25 = sshll.u32 %s491_s17, 9  ;;  %s490_s28 = scalar_lea.sflag [#allocation8], %s489_s18 }
  0x76   : > { %s5576_s27 = scalar_lea.vmem [#allocation7], %s4441_s25  ;;  %p8382_p6 = scmp.ne.s32.totalorder %s8370_s23, 0 }
  0x78   : > { %5289 = dma.done.wait (%p8382_p6), %s490_s28, 12288  }
  0x79   : > { %5291 = vsyncadd (%p8382_p6), %s490_s28, 4294955008  ;;  %s4442_s9 = sshll.u32 %s491_s17, 8  ;;  %s4443_s13 = sshll.u32 %s5482_s21, 1 }
  0x7a   : > { %p557_p12 = scmp.lt.s32.totalorder %s4443_s13, 7  ;;  %s5593_s20 = scalar_lea.vmem [#allocation9], %s4442_s9 }
  0x7b   : > { %p8383_p9 = scmp.ne.s32.totalorder %s5482_s21, 0 }
  0x7c   : > { %s8728_s13 = smov (!%p557_p12, %s4443_s13), 7 }
  0x7d   : > { %s559_s29 = scalar_lea.vmem %s8238_s10, %s8728_s13  ;;  %s564_s19 = scalar_lea.vmem %s8239_s11, %s8728_s13 }
  0x7e   : > { %571 = sbr.rel (%p8383_p9) target bundleno = 1166 (0x48e), region = 92 }
  0x85   : > { %v4808_v0 = vld [vmem:[%s8229_s1] sm:$0xff]   ;;  %v4809_v1 = vld [vmem:[%s8229_s1 + $0x8] sm:$0xff]   ;;  %vm619_vm0 = vcmask 261120   ;;  %v574_v5 = vld [vmem:[%s8228_s0 + $0x10] sm:$0xff]  ;;  %v5320_v42 = vmov 0   ;;  %s8479_s17 = sld [smem:[#allocation70_spill]] }
  0x86   : > { %4651 = vmatprep.subr.bf16.mxu0 %v4808_v0  ;;  %v572_v2 = vld [vmem:[%s8228_s0] sm:$0xff]  ;;  %v573_v3 = vld [vmem:[%s8228_s0 + $0x8] sm:$0xff]  ;;  %v575_v6 = vld [vmem:[%s8228_s0 + $0x18] sm:$0xff]  ;;  %925 = vmatprep.mubr.bf16.mxu1 %v5320_v42  ;;  %s8497_s9 = sld [smem:[#allocation71_spill]] }
  0x87   : > { %4652 = vmatpush3.bf16.msra.mxu0 %v4808_v0  ;;  %v588_v4 = vpack.c.bf16 %v573_v3, %v572_v2  ;;  %v576_v7 = vld [vmem:[%s8228_s0 + $0x20] sm:$0xff]  ;;  %v577_v8 = vld [vmem:[%s8228_s0 + $0x28] sm:$0xff]  ;;  %v589_v9 = vpack.c.bf16 %v575_v6, %v574_v5  ;;  %v578_v13 = vld [vmem:[%s8228_s0 + $0x30] sm:$0xff] }
  0x88   : > { %4653 = vmatprep.subr.bf16.mxu0 %v4809_v1  ;;  %v590_v10 = vpack.c.bf16 %v577_v8, %v576_v7  ;;  %v4810_v11 = vld [vmem:[%s8231_s3 + $0x4] ss:$8 sps:$4 sm:$0xff]   ;;  %v4812_v12 = vld [vmem:[%s8231_s3] ss:$8 sps:$4 sm:$0xff]   ;;  %v579_v14 = vld [vmem:[%s8228_s0 + $0x38] sm:$0xff] }
  0x89   : > { %4655 = vmatprep.mubr.msk.bf16.mxu0 %vm619_vm0, %v588_v4  ;;  %v4813_v15 = vld [vmem:[%s8231_s3 + $0x14] ss:$8 sps:$4 sm:$0xff]   ;;  %v580_v16 = vld [vmem:[%s8228_s0 + $0x40] sm:$0xff]  ;;  %893 = vmatprep.subr.bf16.mxu1 %v4810_v11  ;;  %v4815_v17 = vld [vmem:[%s8231_s3 + $0x10] ss:$8 sps:$4 sm:$0xff]   ;;  %v591_v21 = vpack.c.bf16 %v579_v14, %v578_v13 }
  0x8a   : > { %894 = vmatpush1.bf16.msra.mxu1 %v4812_v12  ;;  %v581_v18 = vld [vmem:[%s8228_s0 + $0x48] sm:$0xff]  ;;  %v4819_v22 = vld [vmem:[%s8231_s3 + $0x34] ss:$8 sps:$4 sm:$0xff]   ;;  %v4821_v26 = vld [vmem:[%s8231_s3 + $0x30] ss:$8 sps:$4 sm:$0xff]  }
  0x8b   : > { %4654 = vmatpush3.bf16.msra.mxu0 %v4809_v1  ;;  %895 = vmatprep.subr.bf16.mxu1 %v4813_v15  ;;  %v4816_v19 = vld [vmem:[%s8231_s3 + $0x24] ss:$8 sps:$4 sm:$0xff]   ;;  %v4818_v20 = vld [vmem:[%s8231_s3 + $0x20] ss:$8 sps:$4 sm:$0xff]   ;;  %v592_v23 = vpack.c.bf16 %v581_v18, %v580_v16  ;;  %v582_v24 = vld [vmem:[%s8228_s0 + $0x50] sm:$0xff] }
  0x8c   : > { %v583_v25 = vld [vmem:[%s8228_s0 + $0x58] sm:$0xff]  ;;  %v584_v27 = vld [vmem:[%s8228_s0 + $0x60] sm:$0xff]  ;;  %v585_v28 = vld [vmem:[%s8228_s0 + $0x68] sm:$0xff] }
  0x8d   : > { %v4822_v29 = vld [vmem:[%s8231_s3 + $0x44] ss:$8 sps:$4 sm:$0xff]   ;;  %v4824_v30 = vld [vmem:[%s8231_s3 + $0x40] ss:$8 sps:$4 sm:$0xff]   ;;  %v593_v31 = vpack.c.bf16 %v583_v25, %v582_v24  ;;  %v4825_v32 = vld [vmem:[%s8231_s3 + $0x54] ss:$8 sps:$4 sm:$0xff]   ;;  %v594_v33 = vpack.c.bf16 %v585_v28, %v584_v27 }
  0x8e   : > { %4656 = vmatmul.mubr.msk.bf16.vlgmr.msra.gmra.mrb[0].mxu0 %vm619_vm0, %v589_v9  ;;  %896 = vmatpush1.bf16.msra.mxu1 %v4815_v17  ;;  %v586_v34 = vld [vmem:[%s8228_s0 + $0x70] sm:$0xff]  ;;  %v587_v35 = vld [vmem:[%s8228_s0 + $0x78] sm:$0xff]  ;;  %v4828_v38 = vld [vmem:[%s8231_s3 + $0x64] ss:$8 sps:$4 sm:$0xff]  }
  0x8f   : > { %4659 = vmatprep.mubr.msk.bf16.mxu0 %vm619_vm0, %v590_v10  ;;  %897 = vmatprep.subr.bf16.mxu1 %v4816_v19  ;;  %v595_v36 = vpack.c.bf16 %v587_v35, %v586_v34  ;;  %v4827_v37 = vld [vmem:[%s8231_s3 + $0x50] ss:$8 sps:$4 sm:$0xff]   ;;  %v4830_v39 = vld [vmem:[%s8231_s3 + $0x60] ss:$8 sps:$4 sm:$0xff]   ;;  %v4831_v40 = vld [vmem:[%s8231_s3 + $0x74] ss:$8 sps:$4 sm:$0xff]  }
  0x90   : > { %v4833_v41 = vld [vmem:[%s8231_s3 + $0x70] ss:$8 sps:$4 sm:$0xff]   ;;  %v5711_v43 = vld [vmem:[%s8230_s2] ss:$0 sm:$0xff] }
  0x92   : > { %898 = vmatpush1.bf16.msra.mxu1 %v4818_v20 }
  0x93   : > { %899 = vmatprep.subr.bf16.mxu1 %v4819_v22 }
  0x96   : > { %4660 = vmatmul.mubr.msk.bf16.gmra.mrb[4].mxu0 %vm619_vm0, %v591_v21  ;;  %900 = vmatpush1.bf16.msra.mxu1 %v4821_v26 }
  0x97   : > { %4663 = vmatprep.mubr.msk.bf16.mxu0 %vm619_vm0, %v592_v23  ;;  %901 = vmatprep.subr.bf16.mxu1 %v4822_v29 }
  0x9a   : > { %902 = vmatpush1.bf16.msra.mxu1 %v4824_v30 }
  0x9b   : > { %903 = vmatprep.subr.bf16.mxu1 %v4825_v32 }
  0x9e   : > { %4664 = vmatmul.mubr.msk.bf16.gmra.mrb[8].mxu0 %vm619_vm0, %v593_v31  ;;  %904 = vmatpush1.bf16.msra.mxu1 %v4827_v37 }
  0x9f   : > { %4667 = vmatprep.mubr.msk.bf16.mxu0 %vm619_vm0, %v594_v33  ;;  %905 = vmatprep.subr.bf16.mxu1 %v4828_v38 }
  0xa2   : > { %906 = vmatpush1.bf16.msra.mxu1 %v4830_v39 }
  0xa3   : > { %907 = vmatprep.subr.bf16.mxu1 %v4831_v40 }
  0xa6   : > { %4668 = vmatmul.mubr.msk.bf16.gmra.mrb[12].mxu0 %vm619_vm0, %v595_v36  ;;  %908 = vmatpush1.bf16.msra.mxu1 %v4833_v41 }
 0x161   : > { %v4657_v44 = vpop.f32.mrb[0].mxu0 }
 0x162   : > { %v687_v45 = vadd.f32 %v4657_v44, %v5711_v43  ;;  %v678_v46 = vpop.f32.mrb[1].mxu0 }
 0x163   : > { %v679_v47 = vadd.f32 %v5711_v43, %v678_v46  ;;  %v4658_v48 = vpop.f32.mrb[2].mxu0 }
 0x164   : > { %v759_v49 = vmul.f32 0.2, %v687_v45  ;;  %v690_v50 = vadd.f32 %v4658_v48, %v5711_v43  ;;  %v681_v51 = vpop.f32.mrb[3].mxu0  ;;  %vm743_vm1 = vcmp.gt.f32.partialorder %v687_v45, 0.0 }
 0x165   : > { %v757_v52 = vmul.f32 0.2, %v679_v47  ;;  %v682_v53 = vadd.f32 %v5711_v43, %v681_v51  ;;  %vm741_vm2 = vcmp.gt.f32.partialorder %v679_v47, 0.0 }
 0x166   : > { %vm744_vm3 = vcmp.gt.f32.partialorder %v690_v50, 0.0  ;;  %v760_v54 = vmul.f32 0.2, %v690_v50  ;;  %v775_v56 = vsel %vm743_vm1, %v687_v45, %v759_v49 }
 0x167   : > { %vm742_vm4 = vcmp.gt.f32.partialorder %v682_v53, 0.0  ;;  %v758_v55 = vmul.f32 0.2, %v682_v53  ;;  %v773_v59 = vsel %vm741_vm2, %v679_v47, %v757_v52 }
 0x168   : > { %v776_v57 = vsel %vm744_vm3, %v690_v50, %v760_v54  ;;  %v5736_v54 = vld [vmem:[#allocation4 + $0xc] ss:$16 sps:$4 sm:$0xff]  }
 0x169   : > { %v4661_v58 = vpop.f32.mrb[4].mxu0  ;;  %v774_v60 = vsel %vm742_vm4, %v682_v53, %v758_v55  ;;  %v790_v61 = vpack.c.bf16 %v776_v57, %v775_v56  ;;  %v4834_v55 = vld [vmem:[#allocation4] ss:$16 sps:$4 sm:$0xff]   ;;  %v5738_v56 = vld [vmem:[#allocation4 + $0x8] ss:$16 sps:$4 sm:$0xff]   ;;  %4671 = vmatprep.subr.bf16.mxu1 %v5736_v54 }
 0x16a   : > { %v703_v62 = vadd.f32 %v4661_v58, %v5711_v43  ;;  %v789_v63 = vpack.c.bf16 %v774_v60, %v773_v59  ;;  %v694_v0 = vpop.f32.mrb[5].mxu0  ;;  %v4842_v57 = vld [vmem:[#allocation4 + $0x24] ss:$16 sps:$4 sm:$0xff]   ;;  %v5742_v58 = vld [vmem:[#allocation4 + $0x2c] ss:$16 sps:$4 sm:$0xff]  }
 0x16b   : > { %v695_v1 = vadd.f32 %v5711_v43, %v694_v0  ;;  %v4662_v2 = vpop.f32.mrb[6].mxu0  ;;  %v4840_v59 = vld [vmem:[#allocation4 + $0x20] ss:$16 sps:$4 sm:$0xff]   ;;  %v5744_v60 = vld [vmem:[#allocation4 + $0x28] ss:$16 sps:$4 sm:$0xff]  }
 0x16c   : > { %vm747_vm5 = vcmp.gt.f32.partialorder %v703_v62, 0.0  ;;  %v763_v3 = vmul.f32 0.2, %v703_v62  ;;  %926 = vmatmul.mubr.bf16.vlgmr.msra.gmra.mrb[0].mxu1 %v789_v63  ;;  %v706_v4 = vadd.f32 %v4662_v2, %v5711_v43  ;;  %v697_v5 = vpop.f32.mrb[7].mxu0  ;;  %v5750_v63 = vld [vmem:[#allocation4 + $0x48] ss:$16 sps:$4 sm:$0xff]  }
 0x16d   : > { %vm745_vm6 = vcmp.gt.f32.partialorder %v695_v1, 0.0  ;;  %v761_v6 = vmul.f32 0.2, %v695_v1  ;;  %v698_v7 = vadd.f32 %v5711_v43, %v697_v5  ;;  %935 = vmatprep.mubr.bf16.mxu1 %v5320_v42  ;;  %4687 = vmatpush1.bf16.msra.mxu1 %v5738_v56  ;;  %v4854_v0 = vld [vmem:[#allocation4 + $0x64] ss:$16 sps:$4 sm:$0xff]  }
 0x16e   : > { %vm748_vm7 = vcmp.gt.f32.partialorder %v706_v4, 0.0  ;;  %v764_v8 = vmul.f32 0.2, %v706_v4  ;;  %v779_v9 = vsel %vm747_vm5, %v703_v62, %v763_v3  ;;  %4672 = vmatprep.subr.bf16.mxu1 %v5742_v58  ;;  %v4846_v62 = vld [vmem:[#allocation4 + $0x40] ss:$16 sps:$4 sm:$0xff]  }
 0x16f   : > { %vm746_vm8 = vcmp.gt.f32.partialorder %v698_v7, 0.0  ;;  %v762_v10 = vmul.f32 0.2, %v698_v7  ;;  %v777_v11 = vsel %vm745_vm6, %v695_v1, %v761_v6  ;;  %v5754_v1 = vld [vmem:[#allocation4 + $0x6c] ss:$16 sps:$4 sm:$0xff]  }
 0x170   : > { %v780_v12 = vsel %vm748_vm7, %v706_v4, %v764_v8  ;;  %8384 = vst [vmem:[#allocation17_spill] sm:$0xff] %v5754_v1  ;;  %v4852_v2 = vld [vmem:[#allocation4 + $0x60] ss:$16 sps:$4 sm:$0xff]   ;;  %v5756_v3 = vld [vmem:[#allocation4 + $0x68] ss:$16 sps:$4 sm:$0xff]  }
 0x171   : > { %v4665_v13 = vpop.f32.mrb[8].mxu0  ;;  %v778_v14 = vsel %vm746_vm8, %v698_v7, %v762_v10  ;;  %v792_v15 = vpack.c.bf16 %v780_v12, %v779_v9  ;;  %4688 = vmatpush1.bf16.msra.mxu1 %v5744_v60  ;;  %8385 = vst [vmem:[#allocation18_spill] sm:$0xff] %v5756_v3  ;;  %v4860_v4 = vld [vmem:[#allocation4 + $0x84] ss:$16 sps:$4 sm:$0xff]   ;;  %v5760_v5 = vld [vmem:[#allocation4 + $0x8c] ss:$16 sps:$4 sm:$0xff]  }
 0x172   : > { %v719_v16 = vadd.f32 %v4665_v13, %v5711_v43  ;;  %v791_v17 = vpack.c.bf16 %v778_v14, %v777_v11  ;;  %v710_v18 = vpop.f32.mrb[9].mxu0  ;;  %8386 = vst [vmem:[#allocation19_spill] sm:$0xff] %v5760_v5  ;;  %v4858_v6 = vld [vmem:[#allocation4 + $0x80] ss:$16 sps:$4 sm:$0xff]   ;;  %v5762_v7 = vld [vmem:[#allocation4 + $0x88] ss:$16 sps:$4 sm:$0xff]  }
 0x173   : > { %v711_v19 = vadd.f32 %v5711_v43, %v710_v18  ;;  %v4666_v20 = vpop.f32.mrb[10].mxu0  ;;  %8387 = vst [vmem:[#allocation20_spill] sm:$0xff] %v5762_v7  ;;  %v4866_v8 = vld [vmem:[#allocation4 + $0xa4] ss:$16 sps:$4 sm:$0xff]   ;;  %v5766_v9 = vld [vmem:[#allocation4 + $0xac] ss:$16 sps:$4 sm:$0xff]  }
 0x174   : > { %936 = vmatmul.mubr.bf16.gmra.mrb[4].mxu1 %v790_v61  ;;  %vm751_vm9 = vcmp.gt.f32.partialorder %v719_v16, 0.0  ;;  %v767_v21 = vmul.f32 0.2, %v719_v16  ;;  %v722_v22 = vadd.f32 %v4666_v20, %v5711_v43  ;;  %v713_v23 = vpop.f32.mrb[11].mxu0  ;;  %v5748_v61 = vld [vmem:[#allocation4 + $0x4c] ss:$16 sps:$4 sm:$0xff]  }
 0x175   : > { %945 = vmatprep.mubr.bf16.mxu1 %v5320_v42  ;;  %vm749_vm10 = vcmp.gt.f32.partialorder %v711_v19, 0.0  ;;  %v765_v24 = vmul.f32 0.2, %v711_v19  ;;  %v714_v25 = vadd.f32 %v5711_v43, %v713_v23  ;;  %4673 = vmatprep.subr.bf16.mxu1 %v5748_v61  ;;  %8388 = vst [vmem:[#allocation21_spill] sm:$0xff] %v5766_v9  ;;  %v4864_v10 = vld [vmem:[#allocation4 + $0xa0] ss:$16 sps:$4 sm:$0xff]  }
 0x176   : > { %vm752_vm11 = vcmp.gt.f32.partialorder %v722_v22, 0.0  ;;  %v768_v26 = vmul.f32 0.2, %v722_v22  ;;  %v783_v27 = vsel %vm751_vm9, %v719_v16, %v767_v21  ;;  %4689 = vmatpush1.bf16.msra.mxu1 %v5750_v63  ;;  %v5768_v11 = vld [vmem:[#allocation4 + $0xa8] ss:$16 sps:$4 sm:$0xff]  }
 0x177   : > { %vm750_vm12 = vcmp.gt.f32.partialorder %v714_v25, 0.0  ;;  %v766_v28 = vmul.f32 0.2, %v714_v25  ;;  %v781_v29 = vsel %vm749_vm10, %v711_v19, %v765_v24  ;;  %4674 = vmatprep.subr.bf16.mxu1 %v5754_v1  ;;  %8389 = vst [vmem:[#allocation22_spill] sm:$0xff] %v5768_v11  ;;  %v4872_v12 = vld [vmem:[#allocation4 + $0xc4] ss:$16 sps:$4 sm:$0xff]  }
 0x178   : > { %v784_v30 = vsel %vm752_vm11, %v722_v22, %v768_v26  ;;  %v4870_v13 = vld [vmem:[#allocation4 + $0xc0] ss:$16 sps:$4 sm:$0xff]   ;;  %v5772_v14 = vld [vmem:[#allocation4 + $0xc8] ss:$16 sps:$4 sm:$0xff]   ;;  %v4878_v16 = vld [vmem:[#allocation4 + $0xe4] ss:$16 sps:$4 sm:$0xff]  }
 0x179   : > { %v4669_v31 = vpop.f32.mrb[12].mxu0  ;;  %v782_v32 = vsel %vm750_vm12, %v714_v25, %v766_v28  ;;  %v794_v33 = vpack.c.bf16 %v784_v30, %v783_v27  ;;  %8390 = vst [vmem:[#allocation23_spill] sm:$0xff] %v5772_v14  ;;  %v4876_v18 = vld [vmem:[#allocation4 + $0xe0] ss:$16 sps:$4 sm:$0xff]   ;;  %v5780_v19 = vld [vmem:[#allocation4 + $0xe8] ss:$16 sps:$4 sm:$0xff]  }
 0x17a   : > { %v735_v34 = vadd.f32 %v4669_v31, %v5711_v43  ;;  %v793_v35 = vpack.c.bf16 %v782_v32, %v781_v29  ;;  %v726_v36 = vpop.f32.mrb[13].mxu0  ;;  %4690 = vmatpush1.bf16.msra.mxu1 %v5756_v3  ;;  %8393 = vst [vmem:[#allocation26_spill] sm:$0xff] %v5780_v19  ;;  %v4884_v20 = vld [vmem:[#allocation4 + $0x104] ss:$16 sps:$4 sm:$0xff]   ;;  %v5784_v21 = vld [vmem:[#allocation4 + $0x10c] ss:$16 sps:$4 sm:$0xff]  }
 0x17b   : > { %v727_v37 = vadd.f32 %v5711_v43, %v726_v36  ;;  %v4670_v38 = vpop.f32.mrb[14].mxu0  ;;  %4675 = vmatprep.subr.bf16.mxu1 %v5760_v5  ;;  %8394 = vst [vmem:[#allocation27_spill] sm:$0xff] %v5784_v21  ;;  %v4882_v22 = vld [vmem:[#allocation4 + $0x100] ss:$16 sps:$4 sm:$0xff]   ;;  %v5786_v23 = vld [vmem:[#allocation4 + $0x108] ss:$16 sps:$4 sm:$0xff]  }
 0x17c   : > { %946 = vmatmul.mubr.bf16.gmra.mrb[8].mxu1 %v791_v17  ;;  %vm755_vm13 = vcmp.gt.f32.partialorder %v735_v34, 0.0  ;;  %v771_v39 = vmul.f32 0.2, %v735_v34  ;;  %v738_v40 = vadd.f32 %v4670_v38, %v5711_v43  ;;  %v729_v41 = vpop.f32.mrb[15].mxu0  ;;  %v5778_v17 = vld [vmem:[#allocation4 + $0xec] ss:$16 sps:$4 sm:$0xff]  }
 0x17d   : > { %955 = vmatprep.mubr.bf16.mxu1 %v5320_v42  ;;  %vm753_vm14 = vcmp.gt.f32.partialorder %v727_v37, 0.0  ;;  %v769_v44 = vmul.f32 0.2, %v727_v37  ;;  %v730_v45 = vadd.f32 %v5711_v43, %v729_v41  ;;  %v4836_v43 = vld [vmem:[#allocation4 + $0x4] ss:$16 sps:$4 sm:$0xff]   ;;  %8392 = vst [vmem:[#allocation25_spill] sm:$0xff] %v5778_v17 }
 0x17e   : > { %vm756_vm15 = vcmp.gt.f32.partialorder %v738_v40, 0.0  ;;  %v772_v46 = vmul.f32 0.2, %v738_v40  ;;  %v787_v47 = vsel %vm755_vm13, %v735_v34, %v771_v39  ;;  %1758 = vmatprep.subr.bf16.mxu0 %v4836_v43  ;;  %4691 = vmatpush1.bf16.msra.mxu1 %v5762_v7  ;;  %8395 = vst [vmem:[#allocation28_spill] sm:$0xff] %v5786_v23  ;;  %v4890_v24 = vld [vmem:[#allocation4 + $0x124] ss:$16 sps:$4 sm:$0xff]  }
 0x17f   : > { %vm754_vm0 = vcmp.gt.f32.partialorder %v730_v45, 0.0  ;;  %v770_v48 = vmul.f32 0.2, %v730_v45  ;;  %v785_v49 = vsel %vm753_vm14, %v727_v37, %v769_v44  ;;  %1759 = vmatpush1.bf16.msra.mxu0 %v4834_v55  ;;  %4676 = vmatprep.subr.bf16.mxu1 %v5766_v9  ;;  %v5790_v25 = vld [vmem:[#allocation4 + $0x12c] ss:$16 sps:$4 sm:$0xff]  }
 0x180   : > { %v788_v50 = vsel %vm756_vm15, %v738_v40, %v772_v46  ;;  %1760 = vmatprep.subr.bf16.mxu0 %v4842_v57  ;;  %8396 = vst [vmem:[#allocation29_spill] sm:$0xff] %v5790_v25  ;;  %v4888_v26 = vld [vmem:[#allocation4 + $0x120] ss:$16 sps:$4 sm:$0xff]   ;;  %v5792_v27 = vld [vmem:[#allocation4 + $0x128] ss:$16 sps:$4 sm:$0xff]  }
 0x181   : > { %v786_v51 = vsel %vm754_vm0, %v730_v45, %v770_v48  ;;  %v796_v52 = vpack.c.bf16 %v788_v50, %v787_v47  ;;  %8397 = vst [vmem:[#allocation30_spill] sm:$0xff] %v5792_v27  ;;  %v4896_v28 = vld [vmem:[#allocation4 + $0x144] ss:$16 sps:$4 sm:$0xff]   ;;  %v5796_v29 = vld [vmem:[#allocation4 + $0x14c] ss:$16 sps:$4 sm:$0xff]  }
 0x182   : > { %v795_v53 = vpack.c.bf16 %v786_v51, %v785_v49  ;;  %4692 = vmatpush1.bf16.msra.mxu1 %v5768_v11  ;;  %8398 = vst [vmem:[#allocation31_spill] sm:$0xff] %v5796_v29  ;;  %v4894_v30 = vld [vmem:[#allocation4 + $0x140] ss:$16 sps:$4 sm:$0xff]   ;;  %v5798_v31 = vld [vmem:[#allocation4 + $0x148] ss:$16 sps:$4 sm:$0xff]  }
 0x183   : > { %1761 = vmatpush1.bf16.msra.mxu0 %v4840_v59  ;;  %8399 = vst [vmem:[#allocation32_spill] sm:$0xff] %v5798_v31  ;;  %v4902_v32 = vld [vmem:[#allocation4 + $0x164] ss:$16 sps:$4 sm:$0xff]   ;;  %v4900_v34 = vld [vmem:[#allocation4 + $0x160] ss:$16 sps:$4 sm:$0xff]  }
 0x184   : > { %956 = vmatmul.mubr.bf16.gmra.mrb[12].mxu1 %v792_v15  ;;  %v5774_v15 = vld [vmem:[#allocation4 + $0xcc] ss:$16 sps:$4 sm:$0xff]   ;;  %v4908_v36 = vld [vmem:[#allocation4 + $0x184] ss:$16 sps:$4 sm:$0xff]   ;;  %v4906_v38 = vld [vmem:[#allocation4 + $0x180] ss:$16 sps:$4 sm:$0xff]  }
 0x185   : > { %965 = vmatprep.mubr.bf16.mxu1 %v5320_v42  ;;  %8391 = vst [vmem:[#allocation24_spill] sm:$0xff] %v5774_v15  ;;  %4677 = vmatprep.subr.bf16.mxu1 %v5774_v15  ;;  %v5808_v37 = vld [vmem:[#allocation4 + $0x18c] ss:$16 sps:$4 sm:$0xff]   ;;  %v5810_v39 = vld [vmem:[#allocation4 + $0x188] ss:$16 sps:$4 sm:$0xff]  }
 0x186   : > { %4693 = vmatpush1.bf16.msra.mxu1 %v5772_v14  ;;  %8402 = vst [vmem:[#allocation35_spill] sm:$0xff] %v5808_v37  ;;  %8403 = vst [vmem:[#allocation36_spill] sm:$0xff] %v5810_v39  ;;  %v4914_v40 = vld [vmem:[#allocation4 + $0x1a4] ss:$16 sps:$4 sm:$0xff]   ;;  %v5814_v41 = vld [vmem:[#allocation4 + $0x1ac] ss:$16 sps:$4 sm:$0xff]  }
 0x187   : > { %4678 = vmatprep.subr.bf16.mxu1 %v5778_v17  ;;  %8404 = vst [vmem:[#allocation37_spill] sm:$0xff] %v5814_v41  ;;  %v4912_v44 = vld [vmem:[#allocation4 + $0x1a0] ss:$16 sps:$4 sm:$0xff]   ;;  %v5816_v45 = vld [vmem:[#allocation4 + $0x1a8] ss:$16 sps:$4 sm:$0xff]  }
 0x188   : > { %8405 = vst [vmem:[#allocation38_spill] sm:$0xff] %v5816_v45  ;;  %v4920_v46 = vld [vmem:[#allocation4 + $0x1c4] ss:$16 sps:$4 sm:$0xff]   ;;  %v5820_v47 = vld [vmem:[#allocation4 + $0x1cc] ss:$16 sps:$4 sm:$0xff]  }
 0x189   : > { %8406 = vst [vmem:[#allocation39_spill] sm:$0xff] %v5820_v47  ;;  %v4918_v48 = vld [vmem:[#allocation4 + $0x1c0] ss:$16 sps:$4 sm:$0xff]   ;;  %v5822_v49 = vld [vmem:[#allocation4 + $0x1c8] ss:$16 sps:$4 sm:$0xff]  }
 0x18a   : > { %4694 = vmatpush1.bf16.msra.mxu1 %v5780_v19  ;;  %8407 = vst [vmem:[#allocation40_spill] sm:$0xff] %v5822_v49  ;;  %v4926_v50 = vld [vmem:[#allocation4 + $0x1e4] ss:$16 sps:$4 sm:$0xff]   ;;  %v4924_v51 = vld [vmem:[#allocation4 + $0x1e0] ss:$16 sps:$4 sm:$0xff]  }
 0x18b   : > { %4679 = vmatprep.subr.bf16.mxu1 %v5784_v21 }
 0x18c   : > { %966 = vmatmul.mubr.bf16.gmra.mrb[16].mxu1 %v793_v35  ;;  %v5804_v35 = vld [vmem:[#allocation4 + $0x168] ss:$16 sps:$4 sm:$0xff]  }
 0x18d   : > { %975 = vmatprep.mubr.bf16.mxu1 %v5320_v42  ;;  %8401 = vst [vmem:[#allocation34_spill] sm:$0xff] %v5804_v35 }
 0x18e   : > { %4695 = vmatpush1.bf16.msra.mxu1 %v5786_v23 }
 0x18f   : > { %4680 = vmatprep.subr.bf16.mxu1 %v5790_v25 }
 0x192   : > { %4696 = vmatpush1.bf16.msra.mxu1 %v5792_v27 }
 0x193   : > { %4681 = vmatprep.subr.bf16.mxu1 %v5796_v29 }
 0x194   : > { %976 = vmatmul.mubr.bf16.gmra.mrb[20].mxu1 %v794_v33  ;;  %v5802_v33 = vld [vmem:[#allocation4 + $0x16c] ss:$16 sps:$4 sm:$0xff]  }
 0x195   : > { %985 = vmatprep.mubr.bf16.mxu1 %v5320_v42  ;;  %8400 = vst [vmem:[#allocation33_spill] sm:$0xff] %v5802_v33 }
 0x196   : > { %4697 = vmatpush1.bf16.msra.mxu1 %v5798_v31 }
 0x197   : > { %4682 = vmatprep.subr.bf16.mxu1 %v5802_v33 }
 0x19a   : > { %4698 = vmatpush1.bf16.msra.mxu1 %v5804_v35 }
 0x19b   : > { %4683 = vmatprep.subr.bf16.mxu1 %v5808_v37 }
 0x19c   : > { %986 = vmatmul.mubr.bf16.gmra.mrb[24].mxu1 %v795_v53  ;;  %v5828_v53 = vld [vmem:[#allocation4 + $0x1e8] ss:$16 sps:$4 sm:$0xff]  }
 0x19d   : > { %995 = vmatprep.mubr.bf16.mxu1 %v5320_v42  ;;  %v4848_v42 = vld [vmem:[#allocation4 + $0x44] ss:$16 sps:$4 sm:$0xff]   ;;  %8409 = vst [vmem:[#allocation42_spill] sm:$0xff] %v5828_v53 }
 0x19e   : > { %1762 = vmatprep.subr.bf16.mxu0 %v4848_v42  ;;  %4699 = vmatpush1.bf16.msra.mxu1 %v5810_v39 }
 0x19f   : > { %1763 = vmatpush1.bf16.msra.mxu0 %v4846_v62  ;;  %4684 = vmatprep.subr.bf16.mxu1 %v5814_v41 }
 0x1a0   : > { %1764 = vmatprep.subr.bf16.mxu0 %v4854_v0 }
 0x1a2   : > { %4700 = vmatpush1.bf16.msra.mxu1 %v5816_v45 }
 0x1a3   : > { %1765 = vmatpush1.bf16.msra.mxu0 %v4852_v2  ;;  %4685 = vmatprep.subr.bf16.mxu1 %v5820_v47 }
 0x1a4   : > { %996 = vmatmul.mubr.bf16.gmra.mrb[28].mxu1 %v796_v52  ;;  %1766 = vmatprep.subr.bf16.mxu0 %v4860_v4  ;;  %v5825_v52 = vld [vmem:[#allocation4 + $0x1ec] ss:$16 sps:$4 sm:$0xff]  }
 0x1a5   : > { %8408 = vst [vmem:[#allocation41_spill] sm:$0xff] %v5825_v52 }
 0x1a6   : > { %4701 = vmatpush1.bf16.msra.mxu1 %v5822_v49 }
 0x1a7   : > { %1767 = vmatpush1.bf16.msra.mxu0 %v4858_v6  ;;  %4686 = vmatprep.subr.bf16.mxu1 %v5825_v52 }
 0x1a8   : > { %1768 = vmatprep.subr.bf16.mxu0 %v4866_v8 }
 0x1aa   : > { %4702 = vmatpush1.bf16.msra.mxu1 %v5828_v53 }
 0x1ab   : > { %1769 = vmatpush1.bf16.msra.mxu0 %v4864_v10 }
 0x1ac   : > { %1770 = vmatprep.subr.bf16.mxu0 %v4872_v12 }
 0x1af   : > { %1771 = vmatpush1.bf16.msra.mxu0 %v4870_v13 }
 0x1b0   : > { %1772 = vmatprep.subr.bf16.mxu0 %v4878_v16 }
 0x1b3   : > { %1773 = vmatpush1.bf16.msra.mxu0 %v4876_v18 }
 0x1b4   : > { %1774 = vmatprep.subr.bf16.mxu0 %v4884_v20 }
 0x1b7   : > { %1775 = vmatpush1.bf16.msra.mxu0 %v4882_v22 }
 0x1b8   : > { %1776 = vmatprep.subr.bf16.mxu0 %v4890_v24 }
 0x1bb   : > { %1777 = vmatpush1.bf16.msra.mxu0 %v4888_v26 }
 0x1bc   : > { %1778 = vmatprep.subr.bf16.mxu0 %v4896_v28 }
 0x1bf   : > { %1779 = vmatpush1.bf16.msra.mxu0 %v4894_v30 }
 0x1c0   : > { %1780 = vmatprep.subr.bf16.mxu0 %v4902_v32 }
 0x1c3   : > { %1781 = vmatpush1.bf16.msra.mxu0 %v4900_v34 }
 0x1c4   : > { %1782 = vmatprep.subr.bf16.mxu0 %v4908_v36 }
 0x1c7   : > { %1783 = vmatpush1.bf16.msra.mxu0 %v4906_v38 }
 0x1c8   : > { %1784 = vmatprep.subr.bf16.mxu0 %v4914_v40 }
 0x1cb   : > { %1785 = vmatpush1.bf16.msra.mxu0 %v4912_v44 }
 0x1cc   : > { %1786 = vmatprep.subr.bf16.mxu0 %v4920_v46 }
 0x1cf   : > { %1787 = vmatpush1.bf16.msra.mxu0 %v4918_v48 }
 0x1d0   : > { %1788 = vmatprep.subr.bf16.mxu0 %v4926_v50 }
 0x1d3   : > { %1789 = vmatpush1.bf16.msra.mxu0 %v4924_v51 }
 0x1d4   : > { %1871 = vmatprep.subr.bf16.mxu0 %v5736_v54 }
 0x23f   : > { %v5833_v43 = vpop.f32.mrb[0].mxu1 }
 0x240   : > { %v5835_v55 = vpop.f32.mrb[1].mxu1  ;;  %v1052_v59 = vmul.f32 %v5833_v43, %v5833_v43 }
 0x241   : > { %v5837_v57 = vpop.f32.mrb[2].mxu1  ;;  %v1053_v54 = vmul.f32 %v5835_v55, %v5835_v55 }
 0x242   : > { %v1008_v42 = vadd.f32 %v5837_v57, %v5833_v43  ;;  %v1054_v62 = vmul.f32 %v5837_v57, %v5837_v57  ;;  %v5845_v0 = vpop.f32.mrb[3].mxu1 }
 0x243   : > { %v1029_v2 = vadd.f32 %v5845_v0, %v5835_v55  ;;  %v1055_v4 = vmul.f32 %v5845_v0, %v5845_v0 }
 0x244   : > { %v1084_v6 = vadd.f32 %v1054_v62, %v1052_v59 }
 0x245   : > { %v1105_v8 = vadd.f32 %v1055_v4, %v1053_v54 }
 0x247   : > { %v5853_v10 = vpop.f32.mrb[4].mxu1 }
 0x248   : > { %v1009_v12 = vadd.f32 %v1008_v42, %v5853_v10  ;;  %v1056_v13 = vmul.f32 %v5853_v10, %v5853_v10  ;;  %v5858_v16 = vpop.f32.mrb[5].mxu1 }
 0x249   : > { %v1030_v18 = vadd.f32 %v1029_v2, %v5858_v16  ;;  %v1057_v20 = vmul.f32 %v5858_v16, %v5858_v16  ;;  %v5863_v22 = vpop.f32.mrb[6].mxu1 }
 0x24a   : > { %v1085_v24 = vadd.f32 %v1084_v6, %v1056_v13  ;;  %v1010_v26 = vadd.f32 %v1009_v12, %v5863_v22  ;;  %v1058_v28 = vmul.f32 %v5863_v22, %v5863_v22  ;;  %v5868_v30 = vpop.f32.mrb[7].mxu1 }
 0x24b   : > { %v1106_v32 = vadd.f32 %v1105_v8, %v1057_v20  ;;  %v1031_v34 = vadd.f32 %v1030_v18, %v5868_v30  ;;  %v1059_v36 = vmul.f32 %v5868_v30, %v5868_v30 }
 0x24c   : > { %v1086_v38 = vadd.f32 %v1085_v24, %v1058_v28 }
 0x24d   : > { %v1107_v40 = vadd.f32 %v1106_v32, %v1059_v36 }
 0x24f   : > { %v5873_v44 = vpop.f32.mrb[8].mxu1 }
 0x250   : > { %v1011_v46 = vadd.f32 %v1010_v26, %v5873_v44  ;;  %v1060_v48 = vmul.f32 %v5873_v44, %v5873_v44  ;;  %v5878_v50 = vpop.f32.mrb[9].mxu1 }
 0x251   : > { %v1032_v51 = vadd.f32 %v1031_v34, %v5878_v50  ;;  %v1061_v59 = vmul.f32 %v5878_v50, %v5878_v50  ;;  %v5883_v42 = vpop.f32.mrb[10].mxu1 }
 0x252   : > { %v1087_v62 = vadd.f32 %v1086_v38, %v1060_v48  ;;  %v1012_v54 = vadd.f32 %v1011_v46, %v5883_v42  ;;  %v1062_v2 = vmul.f32 %v5883_v42, %v5883_v42  ;;  %v5888_v4 = vpop.f32.mrb[11].mxu1 }
 0x253   : > { %v1108_v6 = vadd.f32 %v1107_v40, %v1061_v59  ;;  %v1033_v8 = vadd.f32 %v1032_v51, %v5888_v4  ;;  %v1063_v12 = vmul.f32 %v5888_v4, %v5888_v4 }
 0x254   : > { %v1088_v13 = vadd.f32 %v1087_v62, %v1062_v2 }
 0x255   : > { %v1109_v18 = vadd.f32 %v1108_v6, %v1063_v12 }
 0x257   : > { %v5893_v20 = vpop.f32.mrb[12].mxu1 }
 0x258   : > { %v1013_v24 = vadd.f32 %v1012_v54, %v5893_v20  ;;  %v1064_v26 = vmul.f32 %v5893_v20, %v5893_v20  ;;  %v5898_v28 = vpop.f32.mrb[13].mxu1 }
 0x259   : > { %v1034_v32 = vadd.f32 %v1033_v8, %v5898_v28  ;;  %v1065_v34 = vmul.f32 %v5898_v28, %v5898_v28  ;;  %v5903_v36 = vpop.f32.mrb[14].mxu1 }
 0x25a   : > { %v1089_v38 = vadd.f32 %v1088_v13, %v1064_v26  ;;  %v1014_v40 = vadd.f32 %v1013_v24, %v5903_v36  ;;  %v1066_v46 = vmul.f32 %v5903_v36, %v5903_v36  ;;  %v5908_v48 = vpop.f32.mrb[15].mxu1 }
 0x25b   : > { %v1110_v51 = vadd.f32 %v1109_v18, %v1065_v34  ;;  %v1035_v59 = vadd.f32 %v1034_v32, %v5908_v48  ;;  %v1067_v62 = vmul.f32 %v5908_v48, %v5908_v48 }
 0x25c   : > { %v1090_v54 = vadd.f32 %v1089_v38, %v1066_v46 }
 0x25d   : > { %v1111_v2 = vadd.f32 %v1110_v51, %v1067_v62 }
 0x25f   : > { %v5913_v6 = vpop.f32.mrb[16].mxu1 }
 0x260   : > { %v1015_v8 = vadd.f32 %v1014_v40, %v5913_v6  ;;  %v1068_v12 = vmul.f32 %v5913_v6, %v5913_v6  ;;  %v5918_v13 = vpop.f32.mrb[17].mxu1 }
 0x261   : > { %v1036_v24 = vadd.f32 %v1035_v59, %v5918_v13  ;;  %v1069_v18 = vmul.f32 %v5918_v13, %v5918_v13  ;;  %v5923_v26 = vpop.f32.mrb[18].mxu1 }
 0x262   : > { %v1091_v32 = vadd.f32 %v1090_v54, %v1068_v12  ;;  %v1016_v34 = vadd.f32 %v1015_v8, %v5923_v26  ;;  %v1070_v38 = vmul.f32 %v5923_v26, %v5923_v26  ;;  %v5928_v46 = vpop.f32.mrb[19].mxu1 }
 0x263   : > { %v1112_v40 = vadd.f32 %v1111_v2, %v1069_v18  ;;  %v1037_v51 = vadd.f32 %v1036_v24, %v5928_v46  ;;  %v1071_v62 = vmul.f32 %v5928_v46, %v5928_v46 }
 0x264   : > { %v1092_v59 = vadd.f32 %v1091_v32, %v1070_v38 }
 0x265   : > { %v1113_v53 = vadd.f32 %v1112_v40, %v1071_v62 }
 0x267   : > { %v5933_v52 = vpop.f32.mrb[20].mxu1 }
 0x268   : > { %v1017_v49 = vadd.f32 %v1016_v34, %v5933_v52  ;;  %v1072_v54 = vmul.f32 %v5933_v52, %v5933_v52  ;;  %v5938_v8 = vpop.f32.mrb[21].mxu1 }
 0x269   : > { %v1038_v12 = vadd.f32 %v1037_v51, %v5938_v8  ;;  %v1073_v2 = vmul.f32 %v5938_v8, %v5938_v8  ;;  %v5943_v24 = vpop.f32.mrb[22].mxu1 }
 0x26a   : > { %v1093_v18 = vadd.f32 %v1092_v59, %v1072_v54  ;;  %v1018_v32 = vadd.f32 %v1017_v49, %v5943_v24  ;;  %v1074_v38 = vmul.f32 %v5943_v24, %v5943_v24  ;;  %v5948_v40 = vpop.f32.mrb[23].mxu1 }
 0x26b   : > { %v1114_v34 = vadd.f32 %v1113_v53, %v1073_v2  ;;  %v1039_v62 = vadd.f32 %v1038_v12, %v5948_v40  ;;  %v1075_v47 = vmul.f32 %v5948_v40, %v5948_v40 }
 0x26c   : > { %v1094_v51 = vadd.f32 %v1093_v18, %v1074_v38 }
 0x26d   : > { %v1115_v45 = vadd.f32 %v1114_v34, %v1075_v47 }
 0x26f   : > { %v5953_v41 = vpop.f32.mrb[24].mxu1 }
 0x270   : > { %v1019_v39 = vadd.f32 %v1018_v32, %v5953_v41  ;;  %v1076_v49 = vmul.f32 %v5953_v41, %v5953_v41  ;;  %v5958_v59 = vpop.f32.mrb[25].mxu1 }
 0x271   : > { %v1040_v54 = vadd.f32 %v1039_v62, %v5958_v59  ;;  %v1077_v53 = vmul.f32 %v5958_v59, %v5958_v59  ;;  %v5963_v12 = vpop.f32.mrb[26].mxu1 }
 0x272   : > { %v1095_v2 = vadd.f32 %v1094_v51, %v1076_v49  ;;  %v1020_v18 = vadd.f32 %v1019_v39, %v5963_v12  ;;  %v1078_v47 = vmul.f32 %v5963_v12, %v5963_v12  ;;  %v5968_v38 = vpop.f32.mrb[27].mxu1 }
 0x273   : > { %v1116_v32 = vadd.f32 %v1115_v45, %v1077_v53  ;;  %v1041_v34 = vadd.f32 %v1040_v54, %v5968_v38  ;;  %v1079_v37 = vmul.f32 %v5968_v38, %v5968_v38 }
 0x274   : > { %v1096_v62 = vadd.f32 %v1095_v2, %v1078_v47 }
 0x275   : > { %v1117_v35 = vadd.f32 %v1116_v32, %v1079_v37 }
 0x277   : > { %v5973_v33 = vpop.f32.mrb[28].mxu1 }
 0x278   : > { %v1021_v31 = vadd.f32 %v1020_v18, %v5973_v33  ;;  %v1080_v39 = vmul.f32 %v5973_v33, %v5973_v33  ;;  %v5978_v51 = vpop.f32.mrb[29].mxu1 }
 0x279   : > { %v1042_v49 = vadd.f32 %v1041_v34, %v5978_v51  ;;  %v1081_v45 = vmul.f32 %v5978_v51, %v5978_v51  ;;  %v5983_v54 = vpop.f32.mrb[30].mxu1 }
 0x27a   : > { %v1097_v53 = vadd.f32 %v1096_v62, %v1080_v39  ;;  %v1022_v2 = vadd.f32 %v1021_v31, %v5983_v54  ;;  %v1082_v37 = vmul.f32 %v5983_v54, %v5983_v54  ;;  %v1003_v47 = vpop.f32.mrb[31].mxu1 }
 0x27b   : > { %v1118_v18 = vadd.f32 %v1117_v35, %v1081_v45  ;;  %v1043_v32 = vadd.f32 %v1042_v49, %v1003_v47  ;;  %v1083_v29 = vmul.f32 %v1003_v47, %v1003_v47 }
 0x27c   : > { %v1023_v27 = vrot.slane %v1022_v2, 4  ;;  %v1098_v25 = vadd.f32 %v1097_v53, %v1082_v37 }
 0x27d   : > { %v1044_v23 = vrot.slane %v1043_v32, 4  ;;  %v1119_v21 = vadd.f32 %v1118_v18, %v1083_v29 }
 0x27e   : > { %v1024_v34 = vadd.f32 %v1023_v27, %v1022_v2  ;;  %v1099_v19 = vrot.slane %v1098_v25, 4 }
 0x27f   : > { %v1045_v17 = vadd.f32 %v1044_v23, %v1043_v32  ;;  %v1120_v14 = vrot.slane %v1119_v21, 4 }
 0x280   : > { %v1025_v15 = vrot.slane %v1024_v34, 2  ;;  %v1100_v11 = vadd.f32 %v1099_v19, %v1098_v25 }
 0x281   : > { %v1046_v62 = vrot.slane %v1045_v17, 2  ;;  %v1121_v39 = vadd.f32 %v1120_v14, %v1119_v21 }
 0x282   : > { %v1026_v31 = vadd.f32 %v1025_v15, %v1024_v34  ;;  %v1101_v9 = vrot.slane %v1100_v11, 2 }
 0x283   : > { %v1047_v7 = vadd.f32 %v1046_v62, %v1045_v17  ;;  %v1122_v5 = vrot.slane %v1121_v39, 2 }
 0x284   : > { %v1027_v3 = vrot.slane %v1026_v31, 1  ;;  %v1102_v35 = vadd.f32 %v1101_v9, %v1100_v11  ;;  %v5321_v9 = vmov 1966171168  }
 0x285   : > { %v1048_v49 = vrot.slane %v1047_v7, 1  ;;  %v1123_v45 = vadd.f32 %v1122_v5, %v1121_v39  ;;  %v1140_v5 = vunpack.c.l.s4 %v5321_v9 }
 0x286   : > { %v1028_v1 = vadd.f32 %v1027_v3, %v1026_v31  ;;  %v1103_v53 = vrot.slane %v1102_v35, 1  ;;  %v1142_v3 = vlaneseq }
 0x287   : > { %v1049_v37 = vadd.f32 %v1048_v49, %v1047_v7  ;;  %v1124_v29 = vrot.slane %v1123_v45, 1  ;;  %v1141_v11 = vunpack.c.0.s8 %v1140_v5  ;;  %v1006_v49 = vld [vmem:[%s8232_s4] sm:$0x3] }
 0x288   : > { %v1050_v27 = vmul.f32 0.0078125, %v1028_v1  ;;  %v1104_v2 = vadd.f32 %v1103_v53, %v1102_v35  ;;  %v5988_v7 = vshrl.u32 %v1142_v3, 7 }
 0x289   : > { %v1051_v23 = vmul.f32 0.0078125, %v1049_v37  ;;  %v1125_v18 = vadd.f32 %v1124_v29, %v1123_v45 }
 0x28a   : > { %v1126_v32 = vmul.f32 0.0078125, %v1104_v2  ;;  %v1128_v19 = vmul.f32 %v1050_v27, %v1050_v27  ;;  %8410 = vst [vmem:[#allocation43_spill] sm:$0xff] %v5988_v7  ;;  %v5991_v62 = vsub.s32 %v1141_v11, %v5988_v7  ;;  %v5999_v53 = vsub.s32 0, %v5988_v7 }
 0x28b   : > { %v1127_v25 = vmul.f32 0.0078125, %v1125_v18  ;;  %v1129_v14 = vmul.f32 %v1051_v23, %v1051_v23  ;;  %v6002_v37 = vsub.s32 1, %v5988_v7 }
 0x28c   : > { %v1130_v15 = vsub.f32 %v1126_v32, %v1128_v19  ;;  %8411 = vst [vmem:[#allocation44_spill] sm:$0xff] %v5991_v62  ;;  %8412 = vst [vmem:[#allocation45_spill] sm:$0xff] %v5999_v53 }
 0x28d   : > { %v1131_v21 = vsub.f32 %v1127_v25, %v1129_v14  ;;  %8413 = vst [vmem:[#allocation46_spill] sm:$0xff] %v6002_v37 }
 0x28e   : > { %v1132_v17 = vadd.f32 0.8, %v1130_v15 }
 0x28f   : > { %v1133_v34 = vadd.f32 0.8, %v1131_v21 }
 0x290   : > { %4930 = vrsqrt.f32 %v1132_v17 }
 0x291   : > { %4932 = vrsqrt.f32 %v1133_v34 }
 0x29a   : > { %v4931_v1 = vpop.eup %4930 }
 0x29b   : > { %v4933_v39 = vpop.eup %4932 }
 0x29c   : > { %v1138_v31 = vcombine.low %v4931_v1, %v4933_v39 }
 0x29e   : > { %v1145_v35 = vrot.slane %v1138_v31, %v5991_v62 }
 0x2a0   : > { %v1152_v45 = vrot.slane %v1145_v35, %v5991_v62 }
 0x2a2   : > { %v1154_v29 = vmul.f32 %v1152_v45, %v1006_v49 }
 0x2a4   : > { %v1159_v2 = vrot.slane %v1154_v29, %v5999_v53  ;;  %v1163_v18 = vrot.slane %v1154_v29, %v6002_v37 }
 0x2a6   : > { %v1166_v32 = vmul.f32 %v1159_v2, %v1050_v27  ;;  %v1167_v19 = vmul.f32 %v1163_v18, %v1051_v23  ;;  %v1218_v25 = vmul.f32 %v1163_v18, %v1003_v47  ;;  %v1188_v14 = vmul.f32 %v1163_v18, %v5835_v55 }
 0x2a7   : > { %v1190_v15 = vmul.f32 %v1163_v18, %v5845_v0  ;;  %v1192_v21 = vmul.f32 %v1163_v18, %v5858_v16  ;;  %v1194_v17 = vmul.f32 %v1163_v18, %v5868_v30  ;;  %v1187_v34 = vmul.f32 %v1159_v2, %v5833_v43 }
 0x2a8   : > { %v1170_v9 = vcombine.low %v1166_v32, %v1167_v19  ;;  %v1189_v5 = vmul.f32 %v1159_v2, %v5837_v57  ;;  %v1191_v3 = vmul.f32 %v1159_v2, %v5853_v10  ;;  %v1193_v11 = vmul.f32 %v1159_v2, %v5863_v22  ;;  %v1007_v22 = vld [vmem:[%s8233_s5] sm:$0x3] }
 0x2a9   : > { %v1196_v27 = vmul.f32 %v1163_v18, %v5878_v50  ;;  %v1198_v47 = vmul.f32 %v1163_v18, %v5888_v4  ;;  %v6017_v55 = vmul.f32 %v1159_v2, %v5873_v44  ;;  %v6020_v0 = vmul.f32 %v1159_v2, %v5883_v42 }
 0x2aa   : > { %v1177_v16 = vrot.slane %v1170_v9, %v5991_v62  ;;  %v6024_v43 = vmul.f32 %v1163_v18, %v5898_v28  ;;  %v6027_v57 = vmul.f32 %v1163_v18, %v5908_v48  ;;  %v6030_v10 = vmul.f32 %v1159_v2, %v5893_v20 }
 0x2ab   : > { %v6036_v30 = vmul.f32 %v1159_v2, %v5903_v36  ;;  %v6039_v44 = vmul.f32 %v1163_v18, %v5918_v13  ;;  %v6042_v50 = vmul.f32 %v1163_v18, %v5928_v46  ;;  %v6045_v42 = vmul.f32 %v1159_v2, %v5913_v6 }
 0x2ac   : > { %v1184_v4 = vrot.slane %v1177_v16, %v5991_v62  ;;  %v6049_v20 = vmul.f32 %v1159_v2, %v5923_v26  ;;  %v6052_v28 = vmul.f32 %v1163_v18, %v5938_v8  ;;  %v6055_v36 = vmul.f32 %v1163_v18, %v5948_v40 }
 0x2ad   : > { %v6058_v48 = vmul.f32 %v1159_v2, %v5933_v52  ;;  %v6061_v13 = vmul.f32 %v1159_v2, %v5943_v24  ;;  %v6064_v6 = vmul.f32 %v1163_v18, %v5958_v59  ;;  %v6067_v46 = vmul.f32 %v1163_v18, %v5968_v38 }
 0x2ae   : > { %v1186_v26 = vsub.f32 %v1007_v22, %v1184_v4  ;;  %v6070_v23 = vmul.f32 %v1159_v2, %v5953_v41  ;;  %v6073_v8 = vmul.f32 %v1159_v2, %v5963_v12  ;;  %v6076_v40 = vmul.f32 %v1163_v18, %v5978_v51 }
 0x2af   : > { %v6079_v52 = vmul.f32 %v1159_v2, %v5973_v33  ;;  %v6082_v24 = vmul.f32 %v1159_v2, %v5983_v54 }
 0x2b0   : > { %v6085_v59 = vrot.slane %v1186_v26, %v5999_v53  ;;  %v6088_v38 = vrot.slane %v1186_v26, %v6002_v37 }
 0x2b2   : > { %v6091_v41 = vadd.f32 %v6088_v38, %v1218_v25  ;;  %v1231_v12 = vadd.f32 %v6088_v38, %v1188_v14  ;;  %v1233_v51 = vadd.f32 %v6088_v38, %v1190_v15  ;;  %v1235_v1 = vadd.f32 %v6088_v38, %v1192_v21 }
 0x2b3   : > { %v1237_v33 = vadd.f32 %v6088_v38, %v1194_v17  ;;  %v1230_v54 = vadd.f32 %v6085_v59, %v1187_v34  ;;  %v1232_v39 = vadd.f32 %v6085_v59, %v1189_v5  ;;  %v1234_v31 = vadd.f32 %v6085_v59, %v1191_v3 }
 0x2b4   : > { %vm1263_vm1 = vcmp.gt.f32.partialorder %v1231_v12, 0.0  ;;  %vm1265_vm2 = vcmp.gt.f32.partialorder %v1233_v51, 0.0  ;;  %v1295_v35 = vmul.f32 0.2, %v1231_v12  ;;  %v1297_v49 = vmul.f32 0.2, %v1233_v51 }
 0x2b5   : > { %vm1267_vm3 = vcmp.gt.f32.partialorder %v1235_v1, 0.0  ;;  %vm1269_vm4 = vcmp.gt.f32.partialorder %v1237_v33, 0.0  ;;  %v1299_v45 = vmul.f32 0.2, %v1235_v1  ;;  %v1301_v29 = vmul.f32 0.2, %v1237_v33 }
 0x2b6   : > { %v1327_v2 = vsel %vm1263_vm1, %v1231_v12, %v1295_v35  ;;  %v1329_v18 = vsel %vm1265_vm2, %v1233_v51, %v1297_v49  ;;  %vm1262_vm5 = vcmp.gt.f32.partialorder %v1230_v54, 0.0  ;;  %vm1264_vm6 = vcmp.gt.f32.partialorder %v1232_v39, 0.0 }
 0x2b7   : > { %v6100_v32 = vpack.c.bf16 %v1329_v18, %v1327_v2  ;;  %v1331_v19 = vsel %vm1267_vm3, %v1235_v1, %v1299_v45  ;;  %v1333_v25 = vsel %vm1269_vm4, %v1237_v33, %v1301_v29  ;;  %v1294_v14 = vmul.f32 0.2, %v1230_v54 }
 0x2b8   : > { %v1361_v15 = vpack.c.bf16 %v1333_v25, %v1331_v19  ;;  %v1296_v21 = vmul.f32 0.2, %v1232_v39  ;;  %v1236_v17 = vadd.f32 %v6085_v59, %v1193_v11  ;;  %vm1266_vm7 = vcmp.gt.f32.partialorder %v1234_v31, 0.0 }
 0x2b9   : > { %1790 = vmatprep.mubr.bf16.mxu0 %v6100_v32  ;;  %v1326_v34 = vsel %vm1262_vm5, %v1230_v54, %v1294_v14  ;;  %v1298_v9 = vmul.f32 0.2, %v1234_v31  ;;  %v1239_v5 = vadd.f32 %v6088_v38, %v1196_v27  ;;  %v1241_v3 = vadd.f32 %v6088_v38, %v1198_v47 }
 0x2ba   : > { %1913 = vmatprep.mubr.bf16.mxu1 %v1361_v15  ;;  %v1328_v16 = vsel %vm1264_vm6, %v1232_v39, %v1296_v21  ;;  %vm1268_vm8 = vcmp.gt.f32.partialorder %v1236_v17, 0.0  ;;  %v1300_v22 = vmul.f32 0.2, %v1236_v17  ;;  %v1238_v4 = vadd.f32 %v6085_v59, %v6017_v55 }
 0x2bb   : > { %v6108_v26 = vpack.c.bf16 %v1328_v16, %v1326_v34  ;;  %v1330_v12 = vsel %vm1266_vm7, %v1234_v31, %v1298_v9  ;;  %vm1271_vm9 = vcmp.gt.f32.partialorder %v1239_v5, 0.0  ;;  %vm1273_vm10 = vcmp.gt.f32.partialorder %v1241_v3, 0.0 }
 0x2bc   : > { %v1332_v11 = vsel %vm1268_vm8, %v1236_v17, %v1300_v22  ;;  %v1303_v51 = vmul.f32 0.2, %v1239_v5  ;;  %v1305_v1 = vmul.f32 0.2, %v1241_v3  ;;  %v1240_v27 = vadd.f32 %v6085_v59, %v6020_v0 }
 0x2bd   : > { %1791 = vmatmul.mubr.bf16.vlgmr.msra.gmra.mrb[16].mxu0 %v6108_v26  ;;  %v1360_v47 = vpack.c.bf16 %v1332_v11, %v1330_v12  ;;  %vm1270_vm11 = vcmp.gt.f32.partialorder %v1238_v4, 0.0  ;;  %v1302_v33 = vmul.f32 0.2, %v1238_v4  ;;  %v1243_v54 = vadd.f32 %v6088_v38, %v6024_v43 }
 0x2be   : > { %1872 = vmatpush1.bf16.msra.mxu0 %v5738_v56  ;;  %1800 = vmatprep.mubr.bf16.mxu0 %v1361_v15  ;;  %v1335_v55 = vsel %vm1271_vm9, %v1239_v5, %v1303_v51  ;;  %v1337_v39 = vsel %vm1273_vm10, %v1241_v3, %v1305_v1  ;;  %vm1272_vm12 = vcmp.gt.f32.partialorder %v1240_v27, 0.0  ;;  %v1304_v31 = vmul.f32 0.2, %v1240_v27  ;;  %v8414_v5 = vld [vmem:[#allocation17_spill] sm:$0xff]  ;;  %v8415_v1 = vld [vmem:[#allocation18_spill] sm:$0xff] }
 0x2bf   : > { %1914 = vmatmul.mubr.bf16.vlgmr.msra.gmra.mrb[32].mxu1 %v1360_v47  ;;  %v1363_v35 = vpack.c.bf16 %v1337_v39, %v1335_v55  ;;  %1873 = vmatprep.subr.bf16.mxu0 %v5742_v58  ;;  %v1334_v0 = vsel %vm1270_vm11, %v1238_v4, %v1302_v33  ;;  %v1245_v49 = vadd.f32 %v6088_v38, %v6027_v57  ;;  %vm1275_vm13 = vcmp.gt.f32.partialorder %v1243_v54, 0.0 }
 0x2c0   : > { %v1336_v45 = vsel %vm1272_vm12, %v1240_v27, %v1304_v31  ;;  %v1307_v29 = vmul.f32 0.2, %v1243_v54  ;;  %v1242_v43 = vadd.f32 %v6085_v59, %v6030_v10  ;;  %v1244_v56 = vadd.f32 %v6085_v59, %v6036_v30 }
 0x2c1   : > { %1923 = vmatprep.mubr.bf16.mxu1 %v1363_v35  ;;  %v1362_v2 = vpack.c.bf16 %v1336_v45, %v1334_v0  ;;  %vm1277_vm14 = vcmp.gt.f32.partialorder %v1245_v49, 0.0  ;;  %v1309_v18 = vmul.f32 0.2, %v1245_v49  ;;  %v1247_v58 = vadd.f32 %v6088_v38, %v6039_v44  ;;  %v8417_v45 = vld [vmem:[#allocation20_spill] sm:$0xff] }
 0x2c2   : > { %1874 = vmatpush1.bf16.msra.mxu0 %v5744_v60  ;;  %v1339_v19 = vsel %vm1275_vm13, %v1243_v54, %v1307_v29  ;;  %vm1274_vm15 = vcmp.gt.f32.partialorder %v1242_v43, 0.0  ;;  %vm1276_vm0 = vcmp.gt.f32.partialorder %v1244_v56, 0.0  ;;  %v1306_v57 = vmul.f32 0.2, %v1242_v43 }
 0x2c3   : > { %1875 = vmatprep.subr.bf16.mxu0 %v5748_v61  ;;  %v1341_v25 = vsel %vm1277_vm14, %v1245_v49, %v1309_v18  ;;  %v1308_v10 = vmul.f32 0.2, %v1244_v56  ;;  %v1249_v30 = vadd.f32 %v6088_v38, %v6042_v50  ;;  %vm1279_vm1 = vcmp.gt.f32.partialorder %v1247_v58, 0.0 }
 0x2c4   : > { %v1365_v14 = vpack.c.bf16 %v1341_v25, %v1339_v19  ;;  %v1338_v15 = vsel %vm1274_vm15, %v1242_v43, %v1306_v57  ;;  %v1311_v21 = vmul.f32 0.2, %v1247_v58  ;;  %v1246_v44 = vadd.f32 %v6085_v59, %v6045_v42  ;;  %v8419_v25 = vld [vmem:[#allocation22_spill] sm:$0xff] }
 0x2c5   : > { %1801 = vmatmul.mubr.bf16.gmra.mrb[20].mxu0 %v1360_v47  ;;  %v1340_v60 = vsel %vm1276_vm0, %v1244_v56, %v1308_v10  ;;  %vm1281_vm2 = vcmp.gt.f32.partialorder %v1249_v30, 0.0  ;;  %v1313_v17 = vmul.f32 0.2, %v1249_v30  ;;  %v1248_v34 = vadd.f32 %v6085_v59, %v6049_v20  ;;  %v8416_v47 = vld [vmem:[#allocation19_spill] sm:$0xff] }
 0x2c6   : > { %1876 = vmatpush1.bf16.msra.mxu0 %v5750_v63  ;;  %1810 = vmatprep.mubr.bf16.mxu0 %v1363_v35  ;;  %v6134_v61 = vpack.c.bf16 %v1340_v60, %v1338_v15  ;;  %v1343_v50 = vsel %vm1279_vm1, %v1247_v58, %v1311_v21  ;;  %vm1278_vm3 = vcmp.gt.f32.partialorder %v1246_v44, 0.0  ;;  %v1310_v9 = vmul.f32 0.2, %v1246_v44  ;;  %v8420_v15 = vld [vmem:[#allocation24_spill] sm:$0xff] }
 0x2c7   : > { %1924 = vmatmul.mubr.bf16.gmra.mrb[36].mxu1 %v1362_v2  ;;  %1877 = vmatprep.subr.bf16.mxu0 %v8414_v5  ;;  %v1345_v3 = vsel %vm1281_vm2, %v1249_v30, %v1313_v17  ;;  %vm1280_vm4 = vcmp.gt.f32.partialorder %v1248_v34, 0.0  ;;  %v1312_v42 = vmul.f32 0.2, %v1248_v34  ;;  %v1251_v16 = vadd.f32 %v6088_v38, %v6052_v28  ;;  %v8424_v5 = vld [vmem:[#allocation27_spill] sm:$0xff] }
 0x2c8   : > { %1933 = vmatprep.mubr.bf16.mxu1 %v1365_v14  ;;  %v6139_v22 = vpack.c.bf16 %v1345_v3, %v1343_v50  ;;  %v1342_v20 = vsel %vm1278_vm3, %v1246_v44, %v1310_v9  ;;  %v1253_v63 = vadd.f32 %v6088_v38, %v6055_v36  ;;  %v1250_v4 = vadd.f32 %v6085_v59, %v6058_v48  ;;  %v8422_v9 = vld [vmem:[#allocation25_spill] sm:$0xff] }
 0x2c9   : > { %v1344_v12 = vsel %vm1280_vm4, %v1248_v34, %v1312_v42  ;;  %vm1283_vm5 = vcmp.gt.f32.partialorder %v1251_v16, 0.0  ;;  %v1315_v11 = vmul.f32 0.2, %v1251_v16  ;;  %v1252_v51 = vadd.f32 %v6085_v59, %v6061_v13  ;;  %v8421_v34 = vld [vmem:[#allocation23_spill] sm:$0xff]  ;;  %v8426_v3 = vld [vmem:[#allocation29_spill] sm:$0xff]  ;;  %v8427_v42 = vld [vmem:[#allocation30_spill] sm:$0xff] }
 0x2ca   : > { %1878 = vmatpush1.bf16.msra.mxu0 %v8415_v1  ;;  %v6148_v27 = vpack.c.bf16 %v1344_v12, %v1342_v20  ;;  %vm1285_vm6 = vcmp.gt.f32.partialorder %v1253_v63, 0.0  ;;  %v1317_v28 = vmul.f32 0.2, %v1253_v63  ;;  %vm1282_vm7 = vcmp.gt.f32.partialorder %v1250_v4, 0.0  ;;  %v8430_v20 = vld [vmem:[#allocation33_spill] sm:$0xff]  ;;  %v8433_v12 = vld [vmem:[#allocation36_spill] sm:$0xff] }
 0x2cb   : > { %1879 = vmatprep.subr.bf16.mxu0 %v8416_v47  ;;  %v1347_v33 = vsel %vm1283_vm5, %v1251_v16, %v1315_v11  ;;  %vm1284_vm8 = vcmp.gt.f32.partialorder %v1252_v51, 0.0  ;;  %v1314_v36 = vmul.f32 0.2, %v1250_v4  ;;  %v1316_v54 = vmul.f32 0.2, %v1252_v51  ;;  %v8428_v16 = vld [vmem:[#allocation31_spill] sm:$0xff] }
 0x2cc   : > { %v1349_v48 = vsel %vm1285_vm6, %v1253_v63, %v1317_v28  ;;  %v1255_v55 = vadd.f32 %v6088_v38, %v6064_v6  ;;  %v1257_v13 = vadd.f32 %v6088_v38, %v6067_v46  ;;  %v1254_v39 = vadd.f32 %v6085_v59, %v6070_v23  ;;  %v8418_v46 = vld [vmem:[#allocation21_spill] sm:$0xff]  ;;  %v8431_v63 = vld [vmem:[#allocation34_spill] sm:$0xff]  ;;  %v8436_v1 = vld [vmem:[#allocation39_spill] sm:$0xff] }
 0x2cd   : > { %1811 = vmatmul.mubr.bf16.gmra.mrb[24].mxu0 %v1362_v2  ;;  %v1369_v31 = vpack.c.bf16 %v1349_v48, %v1347_v33  ;;  %v1346_v35 = vsel %vm1282_vm7, %v1250_v4, %v1314_v36  ;;  %v1348_v0 = vsel %vm1284_vm8, %v1252_v51, %v1316_v54  ;;  %v1256_v49 = vadd.f32 %v6085_v59, %v6073_v8  ;;  %v8432_v4 = vld [vmem:[#allocation35_spill] sm:$0xff]  ;;  %v8434_v11 = vld [vmem:[#allocation37_spill] sm:$0xff]  ;;  %v8435_v51 = vld [vmem:[#allocation38_spill] sm:$0xff] }
 0x2ce   : > { %1880 = vmatpush1.bf16.msra.mxu0 %v8417_v45  ;;  %1820 = vmatprep.mubr.bf16.mxu0 %v1365_v14  ;;  %v1368_v29 = vpack.c.bf16 %v1348_v0, %v1346_v35  ;;  %vm1287_vm9 = vcmp.gt.f32.partialorder %v1255_v55, 0.0  ;;  %vm1289_vm10 = vcmp.gt.f32.partialorder %v1257_v13, 0.0  ;;  %v1319_v6 = vmul.f32 0.2, %v1255_v55  ;;  %v8438_v28 = vld [vmem:[#allocation41_spill] sm:$0xff]  ;;  %v8439_v47 = vld [vmem:[#allocation42_spill] sm:$0xff] }
 0x2cf   : > { %1934 = vmatmul.mubr.bf16.gmra.mrb[40].mxu1 %v6134_v61  ;;  %1881 = vmatprep.subr.bf16.mxu0 %v8418_v46  ;;  %v1321_v43 = vmul.f32 0.2, %v1257_v13  ;;  %vm1286_vm11 = vcmp.gt.f32.partialorder %v1254_v39, 0.0  ;;  %vm1288_vm12 = vcmp.gt.f32.partialorder %v1256_v49, 0.0  ;;  %v1318_v23 = vmul.f32 0.2, %v1254_v39 }
 0x2d0   : > { %1943 = vmatprep.mubr.bf16.mxu1 %v6139_v22  ;;  %v1351_v56 = vsel %vm1287_vm9, %v1255_v55, %v1319_v6  ;;  %v1320_v2 = vmul.f32 0.2, %v1256_v49  ;;  %v1259_v8 = vadd.f32 %v6088_v38, %v6076_v40  ;;  %vm1293_vm13 = vcmp.gt.f32.partialorder %v6091_v41, 0.0 }
 0x2d1   : > { %v1353_v18 = vsel %vm1289_vm10, %v1257_v13, %v1321_v43  ;;  %v1350_v58 = vsel %vm1286_vm11, %v1254_v39, %v1318_v23  ;;  %v1325_v19 = vmul.f32 0.2, %v6091_v41  ;;  %v1258_v57 = vadd.f32 %v6085_v59, %v6079_v52 }
 0x2d2   : > { %1882 = vmatpush1.bf16.msra.mxu0 %v8419_v25  ;;  %v1371_v10 = vpack.c.bf16 %v1353_v18, %v1351_v56  ;;  %v1352_v30 = vsel %vm1288_vm12, %v1256_v49, %v1320_v2  ;;  %vm1291_vm14 = vcmp.gt.f32.partialorder %v1259_v8, 0.0  ;;  %v1323_v14 = vmul.f32 0.2, %v1259_v8 }
 0x2d3   : > { %1883 = vmatprep.subr.bf16.mxu0 %v8420_v15  ;;  %v1370_v21 = vpack.c.bf16 %v1352_v30, %v1350_v58  ;;  %v1357_v40 = vsel %vm1293_vm13, %v6091_v41, %v1325_v19  ;;  %v1260_v38 = vadd.f32 %v6085_v59, %v6082_v24  ;;  %vm1290_vm15 = vcmp.gt.f32.partialorder %v1258_v57, 0.0  ;;  %v8423_v59 = vld [vmem:[#allocation26_spill] sm:$0xff] }
 0x2d4   : > { %v1355_v44 = vsel %vm1291_vm14, %v1259_v8, %v1323_v14  ;;  %v1322_v60 = vmul.f32 0.2, %v1258_v57 }
 0x2d5   : > { %1821 = vmatmul.mubr.bf16.gmra.mrb[28].mxu0 %v6134_v61  ;;  %v1373_v52 = vpack.c.bf16 %v1357_v40, %v1355_v44  ;;  %vm1292_vm0 = vcmp.gt.f32.partialorder %v1260_v38, 0.0  ;;  %v1324_v17 = vmul.f32 0.2, %v1260_v38  ;;  %v8425_v61 = vld [vmem:[#allocation28_spill] sm:$0xff] }
 0x2d6   : > { %1884 = vmatpush1.bf16.msra.mxu0 %v8421_v34  ;;  %1830 = vmatprep.mubr.bf16.mxu0 %v6139_v22  ;;  %v1354_v50 = vsel %vm1290_vm15, %v1258_v57, %v1322_v60  ;;  %v8429_v22 = vld [vmem:[#allocation32_spill] sm:$0xff] }
 0x2d7   : > { %1944 = vmatmul.mubr.bf16.gmra.mrb[44].mxu1 %v6148_v27  ;;  %1885 = vmatprep.subr.bf16.mxu0 %v8422_v9  ;;  %v1356_v41 = vsel %vm1292_vm0, %v1260_v38, %v1324_v17 }
 0x2d8   : > { %1953 = vmatprep.mubr.bf16.mxu1 %v1369_v31  ;;  %v1372_v24 = vpack.c.bf16 %v1356_v41, %v1354_v50 }
 0x2da   : > { %1886 = vmatpush1.bf16.msra.mxu0 %v8423_v59 }
 0x2db   : > { %1887 = vmatprep.subr.bf16.mxu0 %v8424_v5 }
 0x2dd   : > { %1831 = vmatmul.mubr.bf16.gmra.mrb[32].mxu0 %v6148_v27  ;;  %v8437_v27 = vld [vmem:[#allocation40_spill] sm:$0xff] }
 0x2de   : > { %1888 = vmatpush1.bf16.msra.mxu0 %v8425_v61  ;;  %1840 = vmatprep.mubr.bf16.mxu0 %v1369_v31 }
 0x2df   : > { %1954 = vmatmul.mubr.bf16.gmra.mrb[48].mxu1 %v1368_v29  ;;  %1889 = vmatprep.subr.bf16.mxu0 %v8426_v3 }
 0x2e0   : > { %1963 = vmatprep.mubr.bf16.mxu1 %v1371_v10 }
 0x2e2   : > { %1890 = vmatpush1.bf16.msra.mxu0 %v8427_v42 }
 0x2e3   : > { %1891 = vmatprep.subr.bf16.mxu0 %v8428_v16 }
 0x2e5   : > { %1841 = vmatmul.mubr.bf16.gmra.mrb[36].mxu0 %v1368_v29 }
 0x2e6   : > { %1892 = vmatpush1.bf16.msra.mxu0 %v8429_v22  ;;  %1850 = vmatprep.mubr.bf16.mxu0 %v1371_v10 }
 0x2e7   : > { %1964 = vmatmul.mubr.bf16.gmra.mrb[52].mxu1 %v1370_v21  ;;  %1893 = vmatprep.subr.bf16.mxu0 %v8430_v20 }
 0x2e8   : > { %1973 = vmatprep.mubr.bf16.mxu1 %v1373_v52 }
 0x2ea   : > { %1894 = vmatpush1.bf16.msra.mxu0 %v8431_v63 }
 0x2eb   : > { %1895 = vmatprep.subr.bf16.mxu0 %v8432_v4 }
 0x2ed   : > { %1851 = vmatmul.mubr.bf16.gmra.mrb[40].mxu0 %v1370_v21 }
 0x2ee   : > { %1896 = vmatpush1.bf16.msra.mxu0 %v8433_v12  ;;  %1860 = vmatprep.mubr.bf16.mxu0 %v1373_v52 }
 0x2ef   : > { %1974 = vmatmul.mubr.bf16.gmra.mrb[56].mxu1 %v1372_v24  ;;  %1897 = vmatprep.subr.bf16.mxu0 %v8434_v11 }
 0x2f2   : > { %1898 = vmatpush1.bf16.msra.mxu0 %v8435_v51 }
 0x2f3   : > { %1899 = vmatprep.subr.bf16.mxu0 %v8436_v1 }
 0x2f5   : > { %1861 = vmatmul.mubr.bf16.gmra.mrb[44].mxu0 %v1372_v24 }
 0x2f6   : > { %1900 = vmatpush1.bf16.msra.mxu0 %v8437_v27  ;;  %1903 = vmatprep.mubr.bf16.mxu0 %v6100_v32 }
 0x2f7   : > { %1901 = vmatprep.subr.bf16.mxu0 %v8438_v28 }
 0x2fa   : > { %1902 = vmatpush1.bf16.msra.mxu0 %v8439_v47 }
 0x2fd   : > { %1904 = vmatmul.mubr.bf16.vlgmr.msra.gmra.mrb[48].mxu0 %v6108_v26 }
 0x390   : > { %v6199_v33 = vpop.f32.mrb[16].mxu0 }
 0x391   : > { %8440 = vst [vmem:[#allocation17_spill] sm:$0xff] %v6199_v33  ;;  %v6201_v36 = vpop.f32.mrb[17].mxu0  ;;  %v2074_v55 = vmul.f32 %v6199_v33, %v6199_v33 }
 0x392   : > { %8441 = vst [vmem:[#allocation18_spill] sm:$0xff] %v6201_v36  ;;  %v6203_v54 = vpop.f32.mrb[32].mxu1  ;;  %v6205_v48 = vpop.f32.mrb[18].mxu0  ;;  %v2075_v31 = vmul.f32 %v6201_v36, %v6201_v36 }
 0x393   : > { %8442 = vst [vmem:[#allocation19_spill] sm:$0xff] %v6205_v48  ;;  %v6209_v13 = vpop.f32.mrb[33].mxu1  ;;  %v1986_v32 = vadd.f32 %v6205_v48, %v6199_v33  ;;  %v2078_v39 = vmul.f32 %v6205_v48, %v6205_v48  ;;  %v6215_v26 = vpop.f32.mrb[19].mxu0 }
 0x394   : > { %8443 = vst [vmem:[#allocation20_spill] sm:$0xff] %v6215_v26  ;;  %v6219_v35 = vpop.f32.mrb[34].mxu1  ;;  %v2007_v0 = vadd.f32 %v6215_v26, %v6201_v36  ;;  %v2079_v49 = vmul.f32 %v6215_v26, %v6215_v26 }
 0x395   : > { %v2138_v45 = vadd.f32 %v2078_v39, %v2074_v55  ;;  %v6225_v29 = vpop.f32.mrb[35].mxu1 }
 0x396   : > { %v2159_v6 = vadd.f32 %v2079_v49, %v2075_v31 }
 0x398   : > { %v6227_v46 = vpop.f32.mrb[20].mxu0 }
 0x399   : > { %8444 = vst [vmem:[#allocation21_spill] sm:$0xff] %v6227_v46  ;;  %v1987_v43 = vadd.f32 %v1986_v32, %v6227_v46  ;;  %v2082_v23 = vmul.f32 %v6227_v46, %v6227_v46  ;;  %v6232_v56 = vpop.f32.mrb[21].mxu0 }
 0x39a   : > { %8445 = vst [vmem:[#allocation22_spill] sm:$0xff] %v6232_v56  ;;  %v6234_v2 = vpop.f32.mrb[36].mxu1  ;;  %v2008_v8 = vadd.f32 %v2007_v0, %v6232_v56  ;;  %v2083_v18 = vmul.f32 %v6232_v56, %v6232_v56  ;;  %v6239_v58 = vpop.f32.mrb[22].mxu0 }
 0x39b   : > { %8446 = vst [vmem:[#allocation24_spill] sm:$0xff] %v6239_v58  ;;  %v2139_v19 = vadd.f32 %v2138_v45, %v2082_v23  ;;  %v6241_v57 = vpop.f32.mrb[37].mxu1  ;;  %v1988_v25 = vadd.f32 %v1987_v43, %v6239_v58  ;;  %v2086_v10 = vmul.f32 %v6239_v58, %v6239_v58  ;;  %v6246_v30 = vpop.f32.mrb[23].mxu0 }
 0x39c   : > { %8447 = vst [vmem:[#allocation23_spill] sm:$0xff] %v6246_v30  ;;  %v2160_v14 = vadd.f32 %v2159_v6, %v2083_v18  ;;  %v6248_v15 = vpop.f32.mrb[38].mxu1  ;;  %v2009_v21 = vadd.f32 %v2008_v8, %v6246_v30  ;;  %v2087_v40 = vmul.f32 %v6246_v30, %v6246_v30 }
 0x39d   : > { %v2140_v38 = vadd.f32 %v2139_v19, %v2086_v10  ;;  %v6253_v44 = vpop.f32.mrb[39].mxu1 }
 0x39e   : > { %v2161_v60 = vadd.f32 %v2160_v14, %v2087_v40 }
 0x3a0   : > { %v6255_v52 = vpop.f32.mrb[24].mxu0 }
 0x3a1   : > { %8448 = vst [vmem:[#allocation25_spill] sm:$0xff] %v6255_v52  ;;  %v1989_v17 = vadd.f32 %v1988_v25, %v6255_v52  ;;  %v2090_v34 = vmul.f32 %v6255_v52, %v6255_v52  ;;  %v6260_v50 = vpop.f32.mrb[25].mxu0 }
 0x3a2   : > { %8449 = vst [vmem:[#allocation26_spill] sm:$0xff] %v6260_v50  ;;  %v6262_v9 = vpop.f32.mrb[40].mxu1  ;;  %v2010_v41 = vadd.f32 %v2009_v21, %v6260_v50  ;;  %v2091_v24 = vmul.f32 %v6260_v50, %v6260_v50  ;;  %v6267_v59 = vpop.f32.mrb[26].mxu0 }
 0x3a3   : > { %8450 = vst [vmem:[#allocation27_spill] sm:$0xff] %v6267_v59  ;;  %v2141_v5 = vadd.f32 %v2140_v38, %v2090_v34  ;;  %v6269_v61 = vpop.f32.mrb[41].mxu1  ;;  %v1990_v3 = vadd.f32 %v1989_v17, %v6267_v59  ;;  %v2094_v42 = vmul.f32 %v6267_v59, %v6267_v59  ;;  %v6274_v16 = vpop.f32.mrb[27].mxu0 }
 0x3a4   : > { %8451 = vst [vmem:[#allocation28_spill] sm:$0xff] %v6274_v16  ;;  %v2162_v22 = vadd.f32 %v2161_v60, %v2091_v24  ;;  %v6276_v20 = vpop.f32.mrb[42].mxu1  ;;  %v2011_v63 = vadd.f32 %v2010_v41, %v6274_v16  ;;  %v2095_v4 = vmul.f32 %v6274_v16, %v6274_v16 }
 0x3a5   : > { %v2142_v12 = vadd.f32 %v2141_v5, %v2094_v42  ;;  %v6281_v11 = vpop.f32.mrb[43].mxu1 }
 0x3a6   : > { %v2163_v51 = vadd.f32 %v2162_v22, %v2095_v4 }
 0x3a8   : > { %v6283_v1 = vpop.f32.mrb[28].mxu0 }
 0x3a9   : > { %8452 = vst [vmem:[#allocation29_spill] sm:$0xff] %v6283_v1  ;;  %v1991_v27 = vadd.f32 %v1990_v3, %v6283_v1  ;;  %v2098_v28 = vmul.f32 %v6283_v1, %v6283_v1  ;;  %v6288_v47 = vpop.f32.mrb[29].mxu0 }
 0x3aa   : > { %8453 = vst [vmem:[#allocation30_spill] sm:$0xff] %v6288_v47  ;;  %v6290_v55 = vpop.f32.mrb[44].mxu1  ;;  %v2012_v32 = vadd.f32 %v2011_v63, %v6288_v47  ;;  %v2099_v39 = vmul.f32 %v6288_v47, %v6288_v47  ;;  %v6295_v31 = vpop.f32.mrb[30].mxu0 }
 0x3ab   : > { %8454 = vst [vmem:[#allocation31_spill] sm:$0xff] %v6295_v31  ;;  %v2143_v0 = vadd.f32 %v2142_v12, %v2098_v28  ;;  %v6297_v49 = vpop.f32.mrb[45].mxu1  ;;  %v1992_v45 = vadd.f32 %v1991_v27, %v6295_v31  ;;  %v2102_v6 = vmul.f32 %v6295_v31, %v6295_v31  ;;  %v6302_v43 = vpop.f32.mrb[31].mxu0 }
 0x3ac   : > { %8455 = vst [vmem:[#allocation32_spill] sm:$0xff] %v6302_v43  ;;  %v2164_v23 = vadd.f32 %v2163_v51, %v2099_v39  ;;  %v6304_v8 = vpop.f32.mrb[46].mxu1  ;;  %v2013_v18 = vadd.f32 %v2012_v32, %v6302_v43  ;;  %v2103_v19 = vmul.f32 %v6302_v43, %v6302_v43 }
 0x3ad   : > { %v2144_v25 = vadd.f32 %v2143_v0, %v2102_v6  ;;  %v6309_v10 = vpop.f32.mrb[47].mxu1 }
 0x3ae   : > { %v2165_v14 = vadd.f32 %v2164_v23, %v2103_v19 }
 0x3b0   : > { %v6311_v21 = vpop.f32.mrb[32].mxu0 }
 0x3b1   : > { %8456 = vst [vmem:[#allocation33_spill] sm:$0xff] %v6311_v21  ;;  %v1993_v40 = vadd.f32 %v1992_v45, %v6311_v21  ;;  %v2106_v38 = vmul.f32 %v6311_v21, %v6311_v21  ;;  %v6316_v60 = vpop.f32.mrb[33].mxu0 }
 0x3b2   : > { %8457 = vst [vmem:[#allocation34_spill] sm:$0xff] %v6316_v60  ;;  %v6318_v17 = vpop.f32.mrb[48].mxu1  ;;  %v2014_v34 = vadd.f32 %v2013_v18, %v6316_v60  ;;  %v2107_v41 = vmul.f32 %v6316_v60, %v6316_v60  ;;  %v6323_v24 = vpop.f32.mrb[34].mxu0 }
 0x3b3   : > { %8458 = vst [vmem:[#allocation35_spill] sm:$0xff] %v6323_v24  ;;  %v2145_v5 = vadd.f32 %v2144_v25, %v2106_v38  ;;  %v6325_v3 = vpop.f32.mrb[49].mxu1  ;;  %v1994_v42 = vadd.f32 %v1993_v40, %v6323_v24  ;;  %v2110_v22 = vmul.f32 %v6323_v24, %v6323_v24  ;;  %v6330_v63 = vpop.f32.mrb[35].mxu0 }
 0x3b4   : > { %8459 = vst [vmem:[#allocation36_spill] sm:$0xff] %v6330_v63  ;;  %v2166_v4 = vadd.f32 %v2165_v14, %v2107_v41  ;;  %v6332_v12 = vpop.f32.mrb[50].mxu1  ;;  %v2015_v51 = vadd.f32 %v2014_v34, %v6330_v63  ;;  %v2111_v27 = vmul.f32 %v6330_v63, %v6330_v63 }
 0x3b5   : > { %v2146_v28 = vadd.f32 %v2145_v5, %v2110_v22  ;;  %v6337_v32 = vpop.f32.mrb[51].mxu1 }
 0x3b6   : > { %v2167_v39 = vadd.f32 %v2166_v4, %v2111_v27 }
 0x3b8   : > { %v6339_v0 = vpop.f32.mrb[36].mxu0 }
 0x3b9   : > { %8460 = vst [vmem:[#allocation37_spill] sm:$0xff] %v6339_v0  ;;  %v1995_v45 = vadd.f32 %v1994_v42, %v6339_v0  ;;  %v2114_v6 = vmul.f32 %v6339_v0, %v6339_v0  ;;  %v6344_v23 = vpop.f32.mrb[37].mxu0 }
 0x3ba   : > { %8461 = vst [vmem:[#allocation38_spill] sm:$0xff] %v6344_v23  ;;  %v6346_v18 = vpop.f32.mrb[52].mxu1  ;;  %v2016_v19 = vadd.f32 %v2015_v51, %v6344_v23  ;;  %v2115_v25 = vmul.f32 %v6344_v23, %v6344_v23  ;;  %v6351_v14 = vpop.f32.mrb[38].mxu0 }
 0x3bb   : > { %8462 = vst [vmem:[#allocation39_spill] sm:$0xff] %v6351_v14  ;;  %v2147_v40 = vadd.f32 %v2146_v28, %v2114_v6  ;;  %v6353_v38 = vpop.f32.mrb[53].mxu1  ;;  %v1996_v34 = vadd.f32 %v1995_v45, %v6351_v14  ;;  %v2118_v41 = vmul.f32 %v6351_v14, %v6351_v14  ;;  %v6358_v5 = vpop.f32.mrb[39].mxu0 }
 0x3bc   : > { %8463 = vst [vmem:[#allocation40_spill] sm:$0xff] %v6358_v5  ;;  %v2168_v42 = vadd.f32 %v2167_v39, %v2115_v25  ;;  %v6360_v22 = vpop.f32.mrb[54].mxu1  ;;  %v2017_v4 = vadd.f32 %v2016_v19, %v6358_v5  ;;  %v2119_v51 = vmul.f32 %v6358_v5, %v6358_v5 }
 0x3bd   : > { %v2148_v27 = vadd.f32 %v2147_v40, %v2118_v41  ;;  %v6365_v23 = vpop.f32.mrb[55].mxu1 }
 0x3be   : > { %v2169_v28 = vadd.f32 %v2168_v42, %v2119_v51 }
 0x3c0   : > { %v6367_v6 = vpop.f32.mrb[40].mxu0 }
 0x3c1   : > { %8464 = vst [vmem:[#allocation41_spill] sm:$0xff] %v6367_v6  ;;  %v1997_v45 = vadd.f32 %v1996_v34, %v6367_v6  ;;  %v2122_v14 = vmul.f32 %v6367_v6, %v6367_v6  ;;  %v6372_v0 = vpop.f32.mrb[41].mxu0 }
 0x3c2   : > { %8465 = vst [vmem:[#allocation42_spill] sm:$0xff] %v6372_v0  ;;  %v6374_v39 = vpop.f32.mrb[56].mxu1  ;;  %v2018_v19 = vadd.f32 %v2017_v4, %v6372_v0  ;;  %v2123_v25 = vmul.f32 %v6372_v0, %v6372_v0  ;;  %v6379_v40 = vpop.f32.mrb[42].mxu0 }
 0x3c3   : > { %8466 = vst [vmem:[#allocation47_spill] sm:$0xff] %v6379_v40  ;;  %v2149_v41 = vadd.f32 %v2148_v27, %v2122_v14  ;;  %v6381_v42 = vpop.f32.mrb[57].mxu1  ;;  %v1998_v51 = vadd.f32 %v1997_v45, %v6379_v40  ;;  %v2126_v34 = vmul.f32 %v6379_v40, %v6379_v40  ;;  %v6386_v6 = vpop.f32.mrb[43].mxu0 }
 0x3c4   : > { %8467 = vst [vmem:[#allocation48_spill] sm:$0xff] %v6386_v6  ;;  %v2170_v5 = vadd.f32 %v2169_v28, %v2123_v25  ;;  %v6388_v63 = vpop.f32.mrb[58].mxu1  ;;  %v2019_v4 = vadd.f32 %v2018_v19, %v6386_v6  ;;  %v2127_v0 = vmul.f32 %v6386_v6, %v6386_v6 }
 0x3c5   : > { %v2150_v24 = vadd.f32 %v2149_v41, %v2126_v34  ;;  %v6393_v60 = vpop.f32.mrb[59].mxu1 }
 0x3c6   : > { %8468 = vst [vmem:[#allocation49_spill] sm:$0xff] %v6393_v60  ;;  %v2171_v14 = vadd.f32 %v2170_v5, %v2127_v0 }
 0x3c8   : > { %v6395_v27 = vpop.f32.mrb[44].mxu0 }
 0x3c9   : > { %8469 = vst [vmem:[#allocation50_spill] sm:$0xff] %v6395_v27  ;;  %v1999_v45 = vadd.f32 %v1998_v51, %v6395_v27  ;;  %v2130_v40 = vmul.f32 %v6395_v27, %v6395_v27  ;;  %v6400_v21 = vpop.f32.mrb[45].mxu0 }
 0x3ca   : > { %8470 = vst [vmem:[#allocation51_spill] sm:$0xff] %v6400_v21  ;;  %v2020_v28 = vadd.f32 %v2019_v4, %v6400_v21  ;;  %v2131_v19 = vmul.f32 %v6400_v21, %v6400_v21  ;;  %v6405_v25 = vpop.f32.mrb[46].mxu0  ;;  %v2084_v21 = vmul.f32 %v6203_v54, %v6203_v54 }
 0x3cb   : > { %8471 = vst [vmem:[#allocation52_spill] sm:$0xff] %v6405_v25  ;;  %v2151_v41 = vadd.f32 %v2150_v24, %v2130_v40  ;;  %v2000_v34 = vadd.f32 %v1999_v45, %v6405_v25  ;;  %v2134_v0 = vmul.f32 %v6405_v25, %v6405_v25  ;;  %v6410_v5 = vpop.f32.mrb[47].mxu0  ;;  %v2085_v24 = vmul.f32 %v6209_v13, %v6209_v13 }
 0x3cc   : > { %8472 = vst [vmem:[#allocation53_spill] sm:$0xff] %v6410_v5  ;;  %v2172_v51 = vadd.f32 %v2171_v14, %v2131_v19  ;;  %v2021_v27 = vadd.f32 %v2020_v28, %v6410_v5  ;;  %v2135_v6 = vmul.f32 %v6410_v5, %v6410_v5  ;;  %v2088_v25 = vmul.f32 %v6219_v35, %v6219_v35 }
 0x3cd   : > { %v2001_v4 = vrot.slane %v2000_v34, 4  ;;  %v2152_v43 = vadd.f32 %v2151_v41, %v2134_v0  ;;  %v2089_v14 = vmul.f32 %v6225_v29, %v6225_v29  ;;  %v2092_v5 = vmul.f32 %v6234_v2, %v6234_v2 }
 0x3ce   : > { %v2022_v40 = vrot.slane %v2021_v27, 4  ;;  %v2173_v45 = vadd.f32 %v2172_v51, %v2135_v6  ;;  %v2093_v41 = vmul.f32 %v6241_v57, %v6241_v57  ;;  %v2096_v6 = vmul.f32 %v6248_v15, %v6248_v15 }
 0x3cf   : > { %v2002_v28 = vadd.f32 %v2001_v4, %v2000_v34  ;;  %v2153_v19 = vrot.slane %v2152_v43, 4  ;;  %v2097_v51 = vmul.f32 %v6253_v44, %v6253_v44 }
 0x3d0   : > { %v2023_v0 = vadd.f32 %v2022_v40, %v2021_v27  ;;  %v2174_v31 = vrot.slane %v2173_v45, 4  ;;  %v6427_v47 = vpop.f32.mrb[48].mxu0 }
 0x3d1   : > { %8473 = vst [vmem:[#allocation54_spill] sm:$0xff] %v6427_v47  ;;  %v2003_v1 = vrot.slane %v2002_v28, 2  ;;  %v2154_v16 = vadd.f32 %v2153_v19, %v2152_v43  ;;  %v6433_v34 = vpop.f32.mrb[49].mxu0  ;;  %v2076_v50 = vmul.f32 %v6427_v47, %v6427_v47 }
 0x3d2   : > { %8474 = vst [vmem:[#allocation55_spill] sm:$0xff] %v6433_v34  ;;  %v2024_v4 = vrot.slane %v2023_v0, 2  ;;  %v2175_v59 = vadd.f32 %v2174_v31, %v2173_v45  ;;  %v2077_v27 = vmul.f32 %v6433_v34, %v6433_v34  ;;  %v6439_v40 = vpop.f32.mrb[50].mxu0 }
 0x3d3   : > { %8475 = vst [vmem:[#allocation56_spill] sm:$0xff] %v6439_v40  ;;  %v2004_v52 = vadd.f32 %v2003_v1, %v2002_v28  ;;  %v2155_v30 = vrot.slane %v2154_v16, 2  ;;  %v2028_v58 = vadd.f32 %v6439_v40, %v6427_v47  ;;  %v2080_v43 = vmul.f32 %v6439_v40, %v6439_v40  ;;  %v6445_v19 = vpop.f32.mrb[51].mxu0 }
 0x3d4   : > { %8476 = vst [vmem:[#allocation57_spill] sm:$0xff] %v6445_v19  ;;  %v2025_v56 = vadd.f32 %v2024_v4, %v2023_v0  ;;  %v2176_v31 = vrot.slane %v2175_v59, 2  ;;  %v2049_v45 = vadd.f32 %v6445_v19, %v6433_v34  ;;  %v2081_v46 = vmul.f32 %v6445_v19, %v6445_v19 }
 0x3d5   : > { %v2005_v26 = vrot.slane %v2004_v52, 1  ;;  %v2156_v48 = vadd.f32 %v2155_v30, %v2154_v16  ;;  %v2029_v1 = vadd.f32 %v2028_v58, %v6203_v54  ;;  %v2180_v28 = vadd.f32 %v2080_v43, %v2076_v50 }
 0x3d6   : > { %v2026_v36 = vrot.slane %v2025_v56, 1  ;;  %v2177_v47 = vadd.f32 %v2176_v31, %v2175_v59  ;;  %v2050_v33 = vadd.f32 %v2049_v45, %v6209_v13  ;;  %v2201_v40 = vadd.f32 %v2081_v46, %v2077_v27 }
 0x3d7   : > { %v2006_v37 = vadd.f32 %v2005_v26, %v2004_v52  ;;  %v2157_v53 = vrot.slane %v2156_v48, 1  ;;  %v2030_v0 = vadd.f32 %v2029_v1, %v6219_v35  ;;  %v2181_v4 = vadd.f32 %v2180_v28, %v2084_v21 }
 0x3d8   : > { %v2027_v7 = vadd.f32 %v2026_v36, %v2025_v56  ;;  %v2178_v34 = vrot.slane %v2177_v47, 1  ;;  %v2051_v62 = vadd.f32 %v2050_v33, %v6225_v29  ;;  %v2202_v19 = vadd.f32 %v2201_v40, %v2085_v24 }
 0x3d9   : > { %v6455_v60 = vmul.f32 0.0078125, %v2006_v37  ;;  %v2158_v30 = vadd.f32 %v2157_v53, %v2156_v48  ;;  %v2031_v58 = vadd.f32 %v2030_v0, %v6234_v2  ;;  %v2182_v50 = vadd.f32 %v2181_v4, %v2088_v25 }
 0x3da   : > { %v6458_v59 = vmul.f32 0.0078125, %v2027_v7  ;;  %v2179_v16 = vadd.f32 %v2178_v34, %v2177_v47  ;;  %v2052_v26 = vadd.f32 %v2051_v62, %v6241_v57  ;;  %v2203_v46 = vadd.f32 %v2202_v19, %v2089_v14 }
 0x3db   : > { %v2222_v52 = vmul.f32 0.0078125, %v2158_v30  ;;  %v2226_v36 = vmul.f32 %v6455_v60, %v6455_v60  ;;  %v2032_v56 = vadd.f32 %v2031_v58, %v6248_v15  ;;  %v2183_v33 = vadd.f32 %v2182_v50, %v2092_v5 }
 0x3dc   : > { %v2223_v21 = vmul.f32 0.0078125, %v2179_v16  ;;  %v2227_v53 = vmul.f32 %v6458_v59, %v6458_v59  ;;  %v2053_v37 = vadd.f32 %v2052_v26, %v6253_v44  ;;  %v2204_v48 = vadd.f32 %v2203_v46, %v2093_v41 }
 0x3dd   : > { %v2100_v7 = vmul.f32 %v6262_v9, %v6262_v9  ;;  %v2230_v47 = vsub.f32 %v2222_v52, %v2226_v36  ;;  %v2033_v62 = vadd.f32 %v2032_v56, %v6262_v9  ;;  %v2184_v25 = vadd.f32 %v2183_v33, %v2096_v6 }
 0x3de   : > { %v2101_v24 = vmul.f32 %v6269_v61, %v6269_v61  ;;  %v2231_v14 = vsub.f32 %v2223_v21, %v2227_v53  ;;  %v2054_v5 = vadd.f32 %v2053_v37, %v6269_v61  ;;  %v2205_v34 = vadd.f32 %v2204_v48, %v2097_v51 }
 0x3df   : > { %v2104_v27 = vmul.f32 %v6276_v20, %v6276_v20  ;;  %v2234_v40 = vadd.f32 0.8, %v2230_v47  ;;  %v2034_v41 = vadd.f32 %v2033_v62, %v6276_v20  ;;  %v2185_v43 = vadd.f32 %v2184_v25, %v2100_v7 }
 0x3e0   : > { %v2105_v19 = vmul.f32 %v6281_v11, %v6281_v11  ;;  %v2235_v31 = vadd.f32 0.8, %v2231_v14  ;;  %v2055_v6 = vadd.f32 %v2054_v5, %v6281_v11  ;;  %v2206_v45 = vadd.f32 %v2205_v34, %v2101_v24 }
 0x3e1   : > { %v2108_v1 = vmul.f32 %v6290_v55, %v6290_v55  ;;  %4934 = vrsqrt.f32 %v2234_v40  ;;  %v2035_v51 = vadd.f32 %v2034_v41, %v6290_v55  ;;  %v2186_v28 = vadd.f32 %v2185_v43, %v2104_v27 }
 0x3e2   : > { %v2109_v0 = vmul.f32 %v6297_v49, %v6297_v49  ;;  %4936 = vrsqrt.f32 %v2235_v31  ;;  %v2056_v4 = vadd.f32 %v2055_v6, %v6297_v49  ;;  %v2207_v30 = vadd.f32 %v2206_v45, %v2105_v19 }
 0x3e3   : > { %v2112_v58 = vmul.f32 %v6304_v8, %v6304_v8  ;;  %v2036_v50 = vadd.f32 %v2035_v51, %v6304_v8  ;;  %v2187_v16 = vadd.f32 %v2186_v28, %v2108_v1  ;;  %v2113_v26 = vmul.f32 %v6309_v10, %v6309_v10 }
 0x3e4   : > { %v2057_v46 = vadd.f32 %v2056_v4, %v6309_v10  ;;  %v2208_v52 = vadd.f32 %v2207_v30, %v2109_v0  ;;  %v2116_v36 = vmul.f32 %v6318_v17, %v6318_v17  ;;  %v2117_v21 = vmul.f32 %v6325_v3, %v6325_v3 }
 0x3e5   : > { %v2037_v56 = vadd.f32 %v2036_v50, %v6318_v17  ;;  %v2188_v33 = vadd.f32 %v2187_v16, %v2112_v58  ;;  %v2120_v48 = vmul.f32 %v6332_v12, %v6332_v12  ;;  %v2121_v62 = vmul.f32 %v6337_v32, %v6337_v32 }
 0x3e6   : > { %v2058_v53 = vadd.f32 %v2057_v46, %v6325_v3  ;;  %v2209_v37 = vadd.f32 %v2208_v52, %v2113_v26  ;;  %v2124_v14 = vmul.f32 %v6346_v18, %v6346_v18  ;;  %v2125_v27 = vmul.f32 %v6353_v38, %v6353_v38 }
 0x3e7   : > { %v2038_v7 = vadd.f32 %v2037_v56, %v6332_v12  ;;  %v2189_v47 = vadd.f32 %v2188_v33, %v2116_v36  ;;  %v2128_v19 = vmul.f32 %v6360_v22, %v6360_v22  ;;  %v2129_v1 = vmul.f32 %v6365_v23, %v6365_v23  ;;  %v8477_v56 = vld [vmem:[#allocation49_spill] sm:$0xff] }
 0x3e8   : > { %v2059_v25 = vadd.f32 %v2058_v53, %v6337_v32  ;;  %v2210_v24 = vadd.f32 %v2209_v37, %v2117_v21  ;;  %v2132_v0 = vmul.f32 %v6374_v39, %v6374_v39  ;;  %v2133_v50 = vmul.f32 %v6381_v42, %v6381_v42 }
 0x3e9   : > { %v2039_v5 = vadd.f32 %v2038_v7, %v6346_v18  ;;  %v2190_v34 = vadd.f32 %v2189_v47, %v2120_v48  ;;  %v2136_v46 = vmul.f32 %v6388_v63, %v6388_v63  ;;  %v2137_v33 = vmul.f32 %v8477_v56, %v8477_v56 }
 0x3ea   : > { %v2060_v40 = vadd.f32 %v2059_v25, %v6353_v38  ;;  %v2211_v41 = vadd.f32 %v2210_v24, %v2121_v62 }
 0x3eb   : > { %v6509_v43 = vpop.eup %4934  ;;  %v2040_v31 = vadd.f32 %v2039_v5, %v6360_v22  ;;  %v2191_v6 = vadd.f32 %v2190_v34, %v2124_v14 }
 0x3ec   : > { %v6514_v45 = vpop.eup %4936  ;;  %v2061_v51 = vadd.f32 %v2060_v40, %v6365_v23  ;;  %v2212_v28 = vadd.f32 %v2211_v41, %v2125_v27 }
 0x3ed   : > { %v2246_v4 = vcombine.low %v6509_v43, %v6514_v45  ;;  %v2041_v30 = vadd.f32 %v2040_v31, %v6374_v39  ;;  %v2192_v58 = vadd.f32 %v2191_v6, %v2128_v19 }
 0x3ee   : > { %v2062_v16 = vadd.f32 %v2061_v51, %v6381_v42  ;;  %v2213_v26 = vadd.f32 %v2212_v28, %v2129_v1 }
 0x3ef   : > { %v2042_v52 = vadd.f32 %v2041_v30, %v6388_v63  ;;  %v2193_v36 = vadd.f32 %v2192_v58, %v2132_v0 }
 0x3f0   : > { %v2063_v21 = vadd.f32 %v2062_v16, %v8477_v56  ;;  %v2214_v53 = vadd.f32 %v2213_v26, %v2133_v50  ;;  %v5322_v50 = vmov 0.0  }
 0x3f1   : > { %v2043_v37 = vrot.slane %v2042_v52, 4  ;;  %v2194_v48 = vadd.f32 %v2193_v36, %v2136_v46  ;;  %2732 = vst [vmem:[#allocation3] sm:$0xff] %v5322_v50  ;;  %2733 = vst [vmem:[#allocation3 + $0x8] sm:$0xff] %v5322_v50 }
 0x3f2   : > { %v2064_v7 = vrot.slane %v2063_v21, 4  ;;  %v2215_v47 = vadd.f32 %v2214_v53, %v2137_v33  ;;  %2734 = vst [vmem:[#allocation3 + $0x10] sm:$0xff] %v5322_v50  ;;  %2735 = vst [vmem:[#allocation3 + $0x18] sm:$0xff] %v5322_v50 }
 0x3f3   : > { %v2044_v62 = vadd.f32 %v2043_v37, %v2042_v52  ;;  %v2195_v25 = vrot.slane %v2194_v48, 4  ;;  %2736 = vst [vmem:[#allocation3 + $0x20] sm:$0xff] %v5322_v50  ;;  %2737 = vst [vmem:[#allocation3 + $0x28] sm:$0xff] %v5322_v50 }
 0x3f4   : > { %v2065_v24 = vadd.f32 %v2064_v7, %v2063_v21  ;;  %v2216_v14 = vrot.slane %v2215_v47, 4  ;;  %2738 = vst [vmem:[#allocation3 + $0x30] sm:$0xff] %v5322_v50  ;;  %2739 = vst [vmem:[#allocation3 + $0x38] sm:$0xff] %v5322_v50 }
 0x3f5   : > { %v2045_v5 = vrot.slane %v2044_v62, 2  ;;  %v2196_v34 = vadd.f32 %v2195_v25, %v2194_v48  ;;  %2740 = vst [vmem:[#allocation3 + $0x40] sm:$0xff] %v5322_v50  ;;  %2741 = vst [vmem:[#allocation3 + $0x48] sm:$0xff] %v5322_v50 }
 0x3f6   : > { %v2066_v27 = vrot.slane %v2065_v24, 2  ;;  %v2217_v40 = vadd.f32 %v2216_v14, %v2215_v47  ;;  %2742 = vst [vmem:[#allocation3 + $0x50] sm:$0xff] %v5322_v50  ;;  %2743 = vst [vmem:[#allocation3 + $0x58] sm:$0xff] %v5322_v50 }
 0x3f7   : > { %v2046_v41 = vadd.f32 %v2045_v5, %v2044_v62  ;;  %v2197_v19 = vrot.slane %v2196_v34, 2  ;;  %2744 = vst [vmem:[#allocation3 + $0x60] sm:$0xff] %v5322_v50  ;;  %2745 = vst [vmem:[#allocation3 + $0x68] sm:$0xff] %v5322_v50 }
 0x3f8   : > { %v2067_v31 = vadd.f32 %v2066_v27, %v2065_v24  ;;  %v2218_v6 = vrot.slane %v2217_v40, 2  ;;  %2746 = vst [vmem:[#allocation3 + $0x70] sm:$0xff] %v5322_v50  ;;  %2747 = vst [vmem:[#allocation3 + $0x78] sm:$0xff] %v5322_v50 }
 0x3f9   : > { %v2047_v1 = vrot.slane %v2046_v41, 1  ;;  %v2198_v51 = vadd.f32 %v2197_v19, %v2196_v34  ;;  %2748 = vst [vmem:[#allocation3 + $0x80] sm:$0xff] %v5322_v50  ;;  %2749 = vst [vmem:[#allocation3 + $0x88] sm:$0xff] %v5322_v50  ;;  %v8478_v34 = vld [vmem:[#allocation44_spill] sm:$0xff]  ;;  %v1984_v19 = vld [vmem:[%s8479_s17] sm:$0xf] }
 0x3fa   : > { %v2068_v28 = vrot.slane %v2067_v31, 1  ;;  %v2219_v0 = vadd.f32 %v2218_v6, %v2217_v40  ;;  %2750 = vst [vmem:[#allocation3 + $0x90] sm:$0xff] %v5322_v50  ;;  %2751 = vst [vmem:[#allocation3 + $0x98] sm:$0xff] %v5322_v50  ;;  %v2254_v27 = vrot.slane %v2246_v4, %v8478_v34 }
 0x3fb   : > { %v2048_v30 = vadd.f32 %v2047_v1, %v2046_v41  ;;  %v2199_v58 = vrot.slane %v2198_v51, 1  ;;  %2752 = vst [vmem:[#allocation3 + $0xa0] sm:$0xff] %v5322_v50  ;;  %2753 = vst [vmem:[#allocation3 + $0xa8] sm:$0xff] %v5322_v50 }
 0x3fc   : > { %2754 = vst [vmem:[#allocation3 + $0xb0] sm:$0xff] %v5322_v50  ;;  %2755 = vst [vmem:[#allocation3 + $0xb8] sm:$0xff] %v5322_v50  ;;  %v2069_v16 = vadd.f32 %v2068_v28, %v2067_v31  ;;  %v2220_v26 = vrot.slane %v2219_v0, 1  ;;  %v8480_v31 = vld [vmem:[#allocation43_spill] sm:$0xff] }
 0x3fd   : > { %2756 = vst [vmem:[#allocation3 + $0xc0] sm:$0xff] %v5322_v50  ;;  %2757 = vst [vmem:[#allocation3 + $0xc8] sm:$0xff] %v5322_v50  ;;  %v2072_v46 = vmul.f32 0.0078125, %v2048_v30  ;;  %v2200_v52 = vadd.f32 %v2199_v58, %v2198_v51  ;;  %v8328_v6 = vsub.s32 2, %v8480_v31  ;;  %v8327_v1 = vsub.s32 3, %v8480_v31  ;;  %v8482_v58 = vld [vmem:[#allocation46_spill] sm:$0xff] }
 0x3fe   : > { %2758 = vst [vmem:[#allocation3 + $0xd0] sm:$0xff] %v5322_v50  ;;  %2759 = vst [vmem:[#allocation3 + $0xd8] sm:$0xff] %v5322_v50  ;;  %v2073_v36 = vmul.f32 0.0078125, %v2069_v16  ;;  %v2221_v33 = vadd.f32 %v2220_v26, %v2219_v0  ;;  %v8481_v0 = vld [vmem:[#allocation45_spill] sm:$0xff] }
 0x3ff   : > { %2760 = vst [vmem:[#allocation3 + $0xe0] sm:$0xff] %v5322_v50  ;;  %2761 = vst [vmem:[#allocation3 + $0xe8] sm:$0xff] %v5322_v50  ;;  %v2224_v21 = vmul.f32 0.0078125, %v2200_v52  ;;  %v2228_v53 = vmul.f32 %v2072_v46, %v2072_v46 }
 0x400   : > { %2762 = vst [vmem:[#allocation3 + $0xf0] sm:$0xff] %v5322_v50  ;;  %2763 = vst [vmem:[#allocation3 + $0xf8] sm:$0xff] %v5322_v50  ;;  %v2225_v37 = vmul.f32 0.0078125, %v2221_v33  ;;  %v2229_v48 = vmul.f32 %v2073_v36, %v2073_v36  ;;  %v8483_v33 = vld [vmem:[#allocation17_spill] sm:$0xff] }
 0x401   : > { %v2232_v7 = vsub.f32 %v2224_v21, %v2228_v53  ;;  %v8484_v53 = vld [vmem:[#allocation18_spill] sm:$0xff] }
 0x402   : > { %v2233_v47 = vsub.f32 %v2225_v37, %v2229_v48  ;;  %v8485_v48 = vld [vmem:[#allocation54_spill] sm:$0xff] }
 0x403   : > { %v2236_v62 = vadd.f32 0.8, %v2232_v7 }
 0x404   : > { %v2237_v25 = vadd.f32 0.8, %v2233_v47 }
 0x405   : > { %4938 = vrsqrt.f32 %v2236_v62  ;;  %v8487_v62 = vld [vmem:[#allocation19_spill] sm:$0xff] }
 0x406   : > { %4940 = vrsqrt.f32 %v2237_v25  ;;  %v8488_v25 = vld [vmem:[#allocation20_spill] sm:$0xff] }
 0x40f   : > { %v4939_v24 = vpop.eup %4938 }
 0x410   : > { %v4941_v14 = vpop.eup %4940 }
 0x411   : > { %v2247_v5 = vcombine.low %v4939_v24, %v4941_v14  ;;  %v8489_v14 = vld [vmem:[#allocation56_spill] sm:$0xff] }
 0x413   : > { %v2261_v40 = vrot.slane %v2247_v5, %v8478_v34 }
 0x415   : > { %v2262_v41 = vcombine.low %v2254_v27, %v2261_v40  ;;  %v8490_v27 = vld [vmem:[#allocation57_spill] sm:$0xff] }
 0x417   : > { %v2269_v51 = vrot.slane %v2262_v41, %v8478_v34  ;;  %v8491_v41 = vld [vmem:[#allocation21_spill] sm:$0xff] }
 0x419   : > { %v2271_v28 = vmul.f32 %v2269_v51, %v1984_v19  ;;  %v8492_v51 = vld [vmem:[#allocation22_spill] sm:$0xff] }
 0x41b   : > { %v6545_v30 = vrot.slane %v2271_v28, %v8481_v0  ;;  %v6548_v43 = vrot.slane %v2271_v28, %v8482_v58  ;;  %v6552_v45 = vrot.slane %v2271_v28, %v8328_v6  ;;  %v6556_v4 = vrot.slane %v2271_v28, %v8327_v1  ;;  %v8505_v6 = vld [vmem:[#allocation33_spill] sm:$0xff] }
 0x41d   : > { %v2293_v50 = vmul.f32 %v6545_v30, %v6455_v60  ;;  %v2294_v16 = vmul.f32 %v6548_v43, %v6458_v59  ;;  %v2295_v26 = vmul.f32 %v6552_v45, %v2072_v46  ;;  %v2296_v52 = vmul.f32 %v6556_v4, %v2073_v36  ;;  %v8486_v60 = vld [vmem:[#allocation55_spill] sm:$0xff] }
 0x41e   : > { %v6566_v21 = vmul.f32 %v6545_v30, %v8483_v33  ;;  %v6570_v37 = vmul.f32 %v6548_v43, %v8484_v53  ;;  %v6574_v7 = vmul.f32 %v6552_v45, %v8485_v48  ;;  %v6578_v47 = vmul.f32 %v6556_v4, %v8486_v60  ;;  %v8493_v33 = vld [vmem:[#allocation24_spill] sm:$0xff]  ;;  %v8494_v48 = vld [vmem:[#allocation23_spill] sm:$0xff] }
 0x41f   : > { %v2301_v59 = vcombine.low %v2293_v50, %v2294_v16  ;;  %v2302_v46 = vcombine.low %v2295_v26, %v2296_v52  ;;  %v6582_v36 = vmul.f32 %v6545_v30, %v8487_v62  ;;  %v6586_v24 = vmul.f32 %v6548_v43, %v8488_v25  ;;  %v8495_v62 = vld [vmem:[#allocation25_spill] sm:$0xff]  ;;  %v8496_v25 = vld [vmem:[#allocation26_spill] sm:$0xff] }
 0x420   : > { %v6590_v5 = vmul.f32 %v6552_v45, %v8489_v14  ;;  %v6594_v40 = vmul.f32 %v6556_v4, %v8490_v27  ;;  %v6598_v19 = vmul.f32 %v6545_v30, %v8491_v41  ;;  %v6602_v28 = vmul.f32 %v6548_v43, %v8492_v51  ;;  %v8498_v41 = vld [vmem:[#allocation27_spill] sm:$0xff] }
 0x421   : > { %v2309_v50 = vrot.slane %v2301_v59, %v8478_v34  ;;  %v2316_v16 = vrot.slane %v2302_v46, %v8478_v34  ;;  %v6608_v26 = vmul.f32 %v6552_v45, %v6203_v54  ;;  %v6612_v52 = vmul.f32 %v6556_v4, %v6209_v13 }
 0x422   : > { %v6616_v53 = vmul.f32 %v6545_v30, %v8493_v33  ;;  %v6620_v60 = vmul.f32 %v6548_v43, %v8494_v48  ;;  %v6624_v59 = vmul.f32 %v6552_v45, %v6219_v35  ;;  %v6628_v54 = vmul.f32 %v6556_v4, %v6225_v29  ;;  %v1985_v35 = vld [vmem:[%s8497_s9] sm:$0xf] }
 0x423   : > { %v2317_v46 = vcombine.low %v2309_v50, %v2316_v16  ;;  %v6632_v13 = vmul.f32 %v6545_v30, %v8495_v62  ;;  %v6636_v14 = vmul.f32 %v6548_v43, %v8496_v25  ;;  %v6640_v27 = vmul.f32 %v6552_v45, %v6234_v2  ;;  %v8499_v50 = vld [vmem:[#allocation28_spill] sm:$0xff]  ;;  %v8501_v25 = vld [vmem:[#allocation30_spill] sm:$0xff] }
 0x424   : > { %v6647_v29 = vmul.f32 %v6556_v4, %v6241_v57  ;;  %v6651_v51 = vmul.f32 %v6545_v30, %v8498_v41  ;;  %v6655_v16 = vmul.f32 %v6548_v43, %v8499_v50  ;;  %v6659_v2 = vmul.f32 %v6552_v45, %v6248_v15  ;;  %v8500_v57 = vld [vmem:[#allocation29_spill] sm:$0xff] }
 0x425   : > { %v2324_v33 = vrot.slane %v2317_v46, %v8478_v34  ;;  %v6664_v48 = vmul.f32 %v6556_v4, %v6253_v44  ;;  %v6668_v62 = vmul.f32 %v6545_v30, %v8500_v57  ;;  %v6672_v41 = vmul.f32 %v6548_v43, %v8501_v25  ;;  %v8503_v34 = vld [vmem:[#allocation31_spill] sm:$0xff]  ;;  %v8504_v46 = vld [vmem:[#allocation32_spill] sm:$0xff] }
 0x426   : > { %v6676_v50 = vmul.f32 %v6552_v45, %v6262_v9  ;;  %v6680_v15 = vmul.f32 %v6556_v4, %v6269_v61  ;;  %v6684_v44 = vmul.f32 %v6545_v30, %v8503_v34  ;;  %v6688_v57 = vmul.f32 %v6548_v43, %v8504_v46 }
 0x427   : > { %v2326_v1 = vsub.f32 %v1985_v35, %v2324_v33  ;;  %v6692_v25 = vmul.f32 %v6552_v45, %v6276_v20  ;;  %v6696_v9 = vmul.f32 %v6556_v4, %v6281_v11  ;;  %v6700_v61 = vmul.f32 %v6545_v30, %v8505_v6  ;;  %v8509_v35 = vld [vmem:[#allocation35_spill] sm:$0xff]  ;;  %v8510_v33 = vld [vmem:[#allocation36_spill] sm:$0xff] }
 0x428   : > { %8502 = vst [vmem:[#allocation49_spill] sm:$0xff] %v6680_v15  ;;  %v8506_v15 = vld [vmem:[#allocation34_spill] sm:$0xff]  ;;  %v6708_v46 = vmul.f32 %v6552_v45, %v6290_v55  ;;  %v6712_v20 = vmul.f32 %v6556_v4, %v6297_v49  ;;  %v6716_v11 = vmul.f32 %v6545_v30, %v8509_v35  ;;  %v6720_v6 = vmul.f32 %v6548_v43, %v8510_v33 }
 0x429   : > { %v6704_v34 = vmul.f32 %v6548_v43, %v8506_v15  ;;  %v6724_v15 = vmul.f32 %v6552_v45, %v6304_v8  ;;  %v6728_v55 = vmul.f32 %v6556_v4, %v6309_v10  ;;  %v6740_v33 = vmul.f32 %v6552_v45, %v6318_v17 }
 0x42a   : > { %8507 = vst [vmem:[#allocation44_spill] sm:$0xff] %v6708_v46  ;;  %8508 = vst [vmem:[#allocation43_spill] sm:$0xff] %v6712_v20  ;;  %v8513_v46 = vld [vmem:[#allocation37_spill] sm:$0xff]  ;;  %v8514_v20 = vld [vmem:[#allocation38_spill] sm:$0xff]  ;;  %v6744_v8 = vmul.f32 %v6556_v4, %v6325_v3  ;;  %v6760_v17 = vmul.f32 %v6556_v4, %v6337_v32 }
 0x42b   : > { %8511 = vst [vmem:[#allocation45_spill] sm:$0xff] %v6724_v15  ;;  %8512 = vst [vmem:[#allocation46_spill] sm:$0xff] %v6728_v55  ;;  %v6732_v49 = vmul.f32 %v6545_v30, %v8513_v46  ;;  %v6736_v35 = vmul.f32 %v6548_v43, %v8514_v20  ;;  %v8517_v15 = vld [vmem:[#allocation39_spill] sm:$0xff]  ;;  %v8518_v55 = vld [vmem:[#allocation40_spill] sm:$0xff]  ;;  %v6756_v20 = vmul.f32 %v6552_v45, %v6332_v12 }
 0x42c   : > { %8515 = vst [vmem:[#allocation17_spill] sm:$0xff] %v6740_v33  ;;  %8516 = vst [vmem:[#allocation18_spill] sm:$0xff] %v6744_v8  ;;  %v6748_v10 = vmul.f32 %v6545_v30, %v8517_v15  ;;  %v6752_v46 = vmul.f32 %v6548_v43, %v8518_v55  ;;  %v8521_v33 = vld [vmem:[#allocation41_spill] sm:$0xff]  ;;  %v8522_v8 = vld [vmem:[#allocation42_spill] sm:$0xff]  ;;  %v6772_v55 = vmul.f32 %v6552_v45, %v6346_v18 }
 0x42d   : > { %8519 = vst [vmem:[#allocation54_spill] sm:$0xff] %v6756_v20  ;;  %8520 = vst [vmem:[#allocation55_spill] sm:$0xff] %v6760_v17  ;;  %v6764_v3 = vmul.f32 %v6545_v30, %v8521_v33  ;;  %v6768_v15 = vmul.f32 %v6548_v43, %v8522_v8  ;;  %v6776_v12 = vmul.f32 %v6556_v4, %v6353_v38  ;;  %v8525_v20 = vld [vmem:[#allocation47_spill] sm:$0xff]  ;;  %v8526_v17 = vld [vmem:[#allocation48_spill] sm:$0xff] }
 0x42e   : > { %8523 = vst [vmem:[#allocation19_spill] sm:$0xff] %v6772_v55  ;;  %v6780_v32 = vmul.f32 %v6545_v30, %v8525_v20  ;;  %v6784_v33 = vmul.f32 %v6548_v43, %v8526_v17  ;;  %v6788_v8 = vmul.f32 %v6552_v45, %v6360_v22  ;;  %v6792_v18 = vmul.f32 %v6556_v4, %v6365_v23  ;;  %v8529_v55 = vld [vmem:[#allocation50_spill] sm:$0xff] }
 0x42f   : > { %8524 = vst [vmem:[#allocation20_spill] sm:$0xff] %v6776_v12  ;;  %v6796_v38 = vmul.f32 %v6545_v30, %v8529_v55  ;;  %v8530_v12 = vld [vmem:[#allocation51_spill] sm:$0xff]  ;;  %v6804_v17 = vmul.f32 %v6552_v45, %v6374_v39  ;;  %v6808_v22 = vmul.f32 %v6556_v4, %v6381_v42  ;;  %v6824_v39 = vmul.f32 %v6556_v4, %v8477_v56 }
 0x430   : > { %8527 = vst [vmem:[#allocation56_spill] sm:$0xff] %v6788_v8  ;;  %8528 = vst [vmem:[#allocation57_spill] sm:$0xff] %v6792_v18  ;;  %v6800_v20 = vmul.f32 %v6548_v43, %v8530_v12  ;;  %v8532_v8 = vld [vmem:[#allocation52_spill] sm:$0xff]  ;;  %v8533_v18 = vld [vmem:[#allocation53_spill] sm:$0xff]  ;;  %v6820_v12 = vmul.f32 %v6552_v45, %v6388_v63  ;;  %v6830_v42 = vrot.slane %v2326_v1, %v8482_v58 }
 0x431   : > { %8531 = vst [vmem:[#allocation21_spill] sm:$0xff] %v6804_v17  ;;  %v6812_v23 = vmul.f32 %v6545_v30, %v8532_v8  ;;  %v6816_v55 = vmul.f32 %v6548_v43, %v8533_v18  ;;  %v6827_v17 = vrot.slane %v2326_v1, %v8481_v0  ;;  %v8534_v30 = vsub.s32 2, %v8480_v31 }
 0x432   : > { %v8535_v43 = vsub.s32 3, %v8480_v31  ;;  %v6858_v31 = vadd.f32 %v6830_v42, %v6570_v37  ;;  %v6870_v4 = vadd.f32 %v6830_v42, %v6586_v24  ;;  %v6894_v24 = vadd.f32 %v6830_v42, %v6620_v60 }
 0x433   : > { %v6834_v8 = vrot.slane %v2326_v1, %v8534_v30  ;;  %v6842_v63 = vadd.f32 %v6827_v17, %v6566_v21  ;;  %v6846_v56 = vadd.f32 %v6827_v17, %v6582_v36  ;;  %v6850_v0 = vadd.f32 %v6827_v17, %v6598_v19  ;;  %v8538_v30 = vld [vmem:[#allocation43_spill] sm:$0xff] }
 0x434   : > { %v6838_v18 = vrot.slane %v2326_v1, %v8535_v43  ;;  %v6854_v58 = vadd.f32 %v6827_v17, %v6616_v53  ;;  %v6906_v19 = vadd.f32 %v6827_v17, %v6632_v13  ;;  %v6922_v53 = vadd.f32 %v6827_v17, %v6651_v51  ;;  %v8541_v43 = vld [vmem:[#allocation45_spill] sm:$0xff] }
 0x435   : > { %v6862_v1 = vadd.f32 %v6834_v8, %v6574_v7  ;;  %v6874_v21 = vadd.f32 %v6834_v8, %v6590_v5  ;;  %v6882_v7 = vadd.f32 %v6830_v42, %v6602_v28  ;;  %v6898_v5 = vadd.f32 %v6834_v8, %v6624_v59 }
 0x436   : > { %v6866_v45 = vadd.f32 %v6838_v18, %v6578_v47  ;;  %v6878_v37 = vadd.f32 %v6838_v18, %v6594_v40  ;;  %v6886_v47 = vadd.f32 %v6834_v8, %v6608_v26  ;;  %v6890_v36 = vadd.f32 %v6838_v18, %v6612_v52 }
 0x437   : > { %v6902_v40 = vadd.f32 %v6838_v18, %v6628_v54  ;;  %v6910_v28 = vadd.f32 %v6830_v42, %v6636_v14  ;;  %v6914_v26 = vadd.f32 %v6834_v8, %v6640_v27  ;;  %v6918_v52 = vadd.f32 %v6838_v18, %v6647_v29  ;;  %v8536_v29 = vld [vmem:[#allocation49_spill] sm:$0xff] }
 0x438   : > { %v6926_v60 = vadd.f32 %v6830_v42, %v6655_v16  ;;  %v6930_v59 = vadd.f32 %v6834_v8, %v6659_v2  ;;  %v6934_v54 = vadd.f32 %v6838_v18, %v6664_v48  ;;  %v6938_v13 = vadd.f32 %v6827_v17, %v6668_v62 }
 0x439   : > { %v6942_v14 = vadd.f32 %v6830_v42, %v6672_v41  ;;  %v6946_v27 = vadd.f32 %v6834_v8, %v6676_v50  ;;  %v6950_v51 = vadd.f32 %v6838_v18, %v8536_v29  ;;  %v6954_v16 = vadd.f32 %v6827_v17, %v6684_v44  ;;  %v8537_v44 = vld [vmem:[#allocation44_spill] sm:$0xff]  ;;  %v8542_v29 = vld [vmem:[#allocation46_spill] sm:$0xff] }
 0x43a   : > { %v6958_v2 = vadd.f32 %v6830_v42, %v6688_v57  ;;  %v6962_v48 = vadd.f32 %v6834_v8, %v6692_v25  ;;  %v6966_v62 = vadd.f32 %v6838_v18, %v6696_v9  ;;  %v6970_v41 = vadd.f32 %v6827_v17, %v6700_v61 }
 0x43b   : > { %v6974_v50 = vadd.f32 %v6830_v42, %v6704_v34  ;;  %v6978_v57 = vadd.f32 %v6834_v8, %v8537_v44  ;;  %v6982_v25 = vadd.f32 %v6838_v18, %v8538_v30  ;;  %v6986_v9 = vadd.f32 %v6827_v17, %v6716_v11 }
 0x43c   : > { %v6990_v61 = vadd.f32 %v6830_v42, %v6720_v6  ;;  %v6994_v34 = vadd.f32 %v6834_v8, %v8541_v43  ;;  %v6998_v44 = vadd.f32 %v6838_v18, %v8542_v29  ;;  %v7002_v30 = vadd.f32 %v6827_v17, %v6732_v49 }
 0x43d   : > { %8539 = vst [vmem:[#allocation22_spill] sm:$0xff] %v6986_v9  ;;  %v7006_v11 = vadd.f32 %v6830_v42, %v6736_v35  ;;  %v8545_v9 = vld [vmem:[#allocation17_spill] sm:$0xff]  ;;  %v7018_v29 = vadd.f32 %v6827_v17, %v6748_v10  ;;  %v7022_v49 = vadd.f32 %v6830_v42, %v6752_v46  ;;  %v7038_v10 = vadd.f32 %v6830_v42, %v6768_v15 }
 0x43e   : > { %8540 = vst [vmem:[#allocation24_spill] sm:$0xff] %v6990_v61  ;;  %8543 = vst [vmem:[#allocation23_spill] sm:$0xff] %v7002_v30  ;;  %v7010_v6 = vadd.f32 %v6834_v8, %v8545_v9  ;;  %v8546_v61 = vld [vmem:[#allocation18_spill] sm:$0xff]  ;;  %vm2476_vm1 = vcmp.gt.f32.partialorder %v6842_v63, 0.0  ;;  %vm2477_vm2 = vcmp.gt.f32.partialorder %v6858_v31, 0.0  ;;  %vm2478_vm3 = vcmp.gt.f32.partialorder %v6862_v1, 0.0 }
 0x43f   : > { %8544 = vst [vmem:[#allocation25_spill] sm:$0xff] %v7006_v11  ;;  %v7014_v43 = vadd.f32 %v6838_v18, %v8546_v61  ;;  %8547 = vst [vmem:[#allocation26_spill] sm:$0xff] %v7018_v29  ;;  %v8549_v30 = vld [vmem:[#allocation54_spill] sm:$0xff]  ;;  %v8550_v11 = vld [vmem:[#allocation55_spill] sm:$0xff]  ;;  %v7034_v61 = vadd.f32 %v6827_v17, %v6764_v3  ;;  %v7054_v3 = vadd.f32 %v6830_v42, %v6784_v33  ;;  %vm2479_vm4 = vcmp.gt.f32.partialorder %v6866_v45, 0.0 }
 0x440   : > { %8548 = vst [vmem:[#allocation27_spill] sm:$0xff] %v7022_v49  ;;  %v7026_v35 = vadd.f32 %v6834_v8, %v8549_v30  ;;  %v7030_v9 = vadd.f32 %v6838_v18, %v8550_v11  ;;  %8552 = vst [vmem:[#allocation29_spill] sm:$0xff] %v7038_v10  ;;  %v8553_v29 = vld [vmem:[#allocation19_spill] sm:$0xff]  ;;  %v8554_v49 = vld [vmem:[#allocation20_spill] sm:$0xff]  ;;  %v7050_v11 = vadd.f32 %v6827_v17, %v6780_v32  ;;  %vm2480_vm5 = vcmp.gt.f32.partialorder %v6846_v56, 0.0 }
 0x441   : > { %8551 = vst [vmem:[#allocation28_spill] sm:$0xff] %v7034_v61  ;;  %v7042_v46 = vadd.f32 %v6834_v8, %v8553_v29  ;;  %v7046_v30 = vadd.f32 %v6838_v18, %v8554_v49  ;;  %8557 = vst [vmem:[#allocation32_spill] sm:$0xff] %v7054_v3  ;;  %v8558_v61 = vld [vmem:[#allocation56_spill] sm:$0xff]  ;;  %v8560_v10 = vld [vmem:[#allocation57_spill] sm:$0xff]  ;;  %v7066_v49 = vadd.f32 %v6827_v17, %v6796_v38  ;;  %vm2481_vm6 = vcmp.gt.f32.partialorder %v6870_v4, 0.0 }
 0x442   : > { %8556 = vst [vmem:[#allocation31_spill] sm:$0xff] %v7050_v11  ;;  %v7058_v15 = vadd.f32 %v6834_v8, %v8558_v61  ;;  %v7062_v29 = vadd.f32 %v6838_v18, %v8560_v10  ;;  %v7070_v32 = vadd.f32 %v6830_v42, %v6800_v20  ;;  %v8564_v11 = vld [vmem:[#allocation21_spill] sm:$0xff]  ;;  %v7078_v61 = vadd.f32 %v6838_v18, %v6808_v22 }
 0x443   : > { %8555 = vst [vmem:[#allocation30_spill] sm:$0xff] %v7046_v30  ;;  %8562 = vst [vmem:[#allocation35_spill] sm:$0xff] %v7066_v49  ;;  %v7074_v33 = vadd.f32 %v6834_v8, %v8564_v11  ;;  %v7082_v10 = vadd.f32 %v6827_v17, %v6812_v23  ;;  %v7086_v38 = vadd.f32 %v6830_v42, %v6816_v55  ;;  %vm2482_vm7 = vcmp.gt.f32.partialorder %v6874_v21, 0.0 }
 0x444   : > { %8559 = vst [vmem:[#allocation33_spill] sm:$0xff] %v7058_v15  ;;  %8561 = vst [vmem:[#allocation34_spill] sm:$0xff] %v7062_v29  ;;  %v7090_v20 = vadd.f32 %v6834_v8, %v6820_v12  ;;  %v7094_v11 = vadd.f32 %v6838_v18, %v6824_v39  ;;  %vm2483_vm8 = vcmp.gt.f32.partialorder %v6878_v37, 0.0  ;;  %vm2484_vm9 = vcmp.gt.f32.partialorder %v6850_v0, 0.0 }
 0x445   : > { %8563 = vst [vmem:[#allocation36_spill] sm:$0xff] %v7070_v32  ;;  %8565 = vst [vmem:[#allocation37_spill] sm:$0xff] %v7074_v33  ;;  %vm2485_vm10 = vcmp.gt.f32.partialorder %v6882_v7, 0.0  ;;  %v2540_v17 = vmul.f32 0.2, %v6842_v63  ;;  %vm2486_vm11 = vcmp.gt.f32.partialorder %v6886_v47, 0.0 }
 0x446   : > { %8566 = vst [vmem:[#allocation38_spill] sm:$0xff] %v7078_v61  ;;  %8567 = vst [vmem:[#allocation39_spill] sm:$0xff] %v7082_v10  ;;  %v2541_v22 = vmul.f32 0.2, %v6858_v31  ;;  %v2542_v23 = vmul.f32 0.2, %v6862_v1 }
 0x447   : > { %8568 = vst [vmem:[#allocation40_spill] sm:$0xff] %v7086_v38  ;;  %8569 = vst [vmem:[#allocation41_spill] sm:$0xff] %v7090_v20  ;;  %v2543_v55 = vmul.f32 0.2, %v6866_v45  ;;  %v2544_v12 = vmul.f32 0.2, %v6846_v56 }
 0x448   : > { %8570 = vst [vmem:[#allocation42_spill] sm:$0xff] %v7094_v11  ;;  %v2545_v39 = vmul.f32 0.2, %v6870_v4  ;;  %vm2487_vm12 = vcmp.gt.f32.partialorder %v6890_v36, 0.0  ;;  %v2546_v42 = vmul.f32 0.2, %v6874_v21  ;;  %v7120_v11 = vsel %vm2476_vm1, %v6842_v63, %v2540_v17 }
 0x449   : > { %v2547_v8 = vmul.f32 0.2, %v6878_v37  ;;  %v2548_v18 = vmul.f32 0.2, %v6850_v0  ;;  %8571 = vst [vmem:[#allocation47_spill] sm:$0xff] %v7120_v11  ;;  %vm2488_vm13 = vcmp.gt.f32.partialorder %v6854_v58, 0.0  ;;  %v7131_v61 = vsel %vm2477_vm2, %v6858_v31, %v2541_v22 }
 0x44a   : > { %v2549_v20 = vmul.f32 0.2, %v6882_v7  ;;  %v2550_v38 = vmul.f32 0.2, %v6886_v47  ;;  %v7126_v10 = vmul.f32 0.2, %v6890_v36  ;;  %v7146_v11 = vsel %vm2478_vm3, %v6862_v1, %v2542_v23 }
 0x44b   : > { %8572 = vst [vmem:[#allocation48_spill] sm:$0xff] %v7131_v61  ;;  %vm2489_vm14 = vcmp.gt.f32.partialorder %v6894_v24, 0.0  ;;  %v7135_v33 = vmul.f32 0.2, %v6854_v58  ;;  %v7138_v63 = vmul.f32 0.2, %v6894_v24  ;;  %v7161_v32 = vsel %vm2479_vm4, %v6866_v45, %v2543_v55 }
 0x44c   : > { %v7141_v17 = vmul.f32 0.2, %v6898_v5  ;;  %8573 = vst [vmem:[#allocation50_spill] sm:$0xff] %v7146_v11  ;;  %vm2490_vm15 = vcmp.gt.f32.partialorder %v6898_v5, 0.0  ;;  %v7150_v31 = vmul.f32 0.2, %v6902_v40 }
 0x44d   : > { %v7153_v22 = vmul.f32 0.2, %v6906_v19  ;;  %v7156_v61 = vmul.f32 0.2, %v6910_v28  ;;  %8575 = vst [vmem:[#allocation52_spill] sm:$0xff] %v7161_v32  ;;  %vm2491_vm0 = vcmp.gt.f32.partialorder %v6902_v40, 0.0 }
 0x44e   : > { %v7165_v1 = vmul.f32 0.2, %v6914_v26  ;;  %v7168_v23 = vmul.f32 0.2, %v6918_v52  ;;  %v7171_v11 = vmul.f32 0.2, %v6922_v53 }
 0x44f   : > { %8574 = vst [vmem:[#allocation51_spill] sm:$0xff] %v7156_v61  ;;  %v7176_v61 = vsel %vm2480_vm5, %v6846_v56, %v2544_v12  ;;  %vm2492_vm1 = vcmp.gt.f32.partialorder %v6906_v19, 0.0  ;;  %v7180_v45 = vmul.f32 0.2, %v6926_v60  ;;  %v7183_v55 = vmul.f32 0.2, %v6930_v59 }
 0x450   : > { %8576 = vst [vmem:[#allocation53_spill] sm:$0xff] %v7171_v11  ;;  %8577 = vst [vmem:[#allocation49_spill] sm:$0xff] %v7176_v61  ;;  %v7186_v32 = vmul.f32 0.2, %v6934_v54  ;;  %v7191_v11 = vsel %vm2481_vm6, %v6870_v4, %v2545_v39  ;;  %vm2493_vm2 = vcmp.gt.f32.partialorder %v6910_v28, 0.0  ;;  %vm2494_vm3 = vcmp.gt.f32.partialorder %v6914_v26, 0.0 }
 0x451   : > { %8579 = vst [vmem:[#allocation43_spill] sm:$0xff] %v7191_v11  ;;  %v7195_v56 = vmul.f32 0.2, %v6938_v13  ;;  %v7198_v12 = vmul.f32 0.2, %v6942_v14  ;;  %vm2495_vm4 = vcmp.gt.f32.partialorder %v6918_v52, 0.0 }
 0x452   : > { %8578 = vst [vmem:[#allocation44_spill] sm:$0xff] %v7186_v32  ;;  %v7201_v61 = vmul.f32 0.2, %v6946_v27  ;;  %v7206_v32 = vsel %vm2482_vm7, %v6874_v21, %v2546_v42  ;;  %v7210_v4 = vmul.f32 0.2, %v6950_v51  ;;  %vm2498_vm7 = vcmp.gt.f32.partialorder %v6930_v59, 0.0 }
 0x453   : > { %8581 = vst [vmem:[#allocation46_spill] sm:$0xff] %v7206_v32  ;;  %v7213_v39 = vmul.f32 0.2, %v6954_v16  ;;  %v7216_v11 = vmul.f32 0.2, %v6958_v2 }
 0x454   : > { %8580 = vst [vmem:[#allocation45_spill] sm:$0xff] %v7201_v61  ;;  %v7221_v61 = vsel %vm2483_vm8, %v6878_v37, %v2547_v8  ;;  %v7227_v21 = vmul.f32 0.2, %v6962_v48  ;;  %v7230_v42 = vmul.f32 0.2, %v6966_v62  ;;  %v7238_v37 = vsel %vm2484_vm9, %v6850_v0, %v2548_v18  ;;  %v8589_v18 = vld [vmem:[#allocation22_spill] sm:$0xff] }
 0x455   : > { %8582 = vst [vmem:[#allocation17_spill] sm:$0xff] %v7221_v61  ;;  %v7233_v32 = vmul.f32 0.2, %v6970_v41  ;;  %8584 = vst [vmem:[#allocation54_spill] sm:$0xff] %v7238_v37  ;;  %v7245_v8 = vmul.f32 0.2, %v6974_v50  ;;  %v7256_v0 = vsel %vm2485_vm10, %v6882_v7, %v2549_v20  ;;  %v7274_v7 = vsel %vm2486_vm11, %v6886_v47, %v2550_v38 }
 0x456   : > { %v7248_v61 = vmul.f32 0.2, %v6978_v57  ;;  %8588 = vst [vmem:[#allocation56_spill] sm:$0xff] %v7256_v0  ;;  %vm2502_vm9 = vcmp.gt.f32.partialorder %v6946_v27, 0.0  ;;  %v7263_v37 = vmul.f32 0.2, %v8589_v18  ;;  %v7293_v47 = vsel %vm2487_vm12, %v6890_v36, %v7126_v10 }
 0x457   : > { %8583 = vst [vmem:[#allocation18_spill] sm:$0xff] %v7233_v32  ;;  %8585 = vst [vmem:[#allocation55_spill] sm:$0xff] %v7245_v8  ;;  %v7251_v32 = vmul.f32 0.2, %v6982_v25  ;;  %vm2506_vm10 = vcmp.gt.f32.partialorder %v6962_v48, 0.0  ;;  %v8595_v0 = vld [vmem:[#allocation23_spill] sm:$0xff]  ;;  %v7312_v36 = vsel %vm2488_vm13, %v6854_v58, %v7135_v33  ;;  %v7331_v58 = vsel %vm2489_vm14, %v6894_v24, %v7138_v63 }
 0x458   : > { %8586 = vst [vmem:[#allocation19_spill] sm:$0xff] %v7248_v61  ;;  %8590 = vst [vmem:[#allocation57_spill] sm:$0xff] %v7263_v37  ;;  %v8591_v61 = vld [vmem:[#allocation24_spill] sm:$0xff]  ;;  %v7281_v20 = vmul.f32 0.2, %v6998_v44  ;;  %vm2510_vm11 = vcmp.gt.f32.partialorder %v6978_v57, 0.0  ;;  %v7350_v24 = vsel %vm2490_vm15, %v6898_v5, %v7141_v17  ;;  %v7369_v5 = vsel %vm2491_vm0, %v6902_v40, %v7150_v31 }
 0x459   : > { %8587 = vst [vmem:[#allocation20_spill] sm:$0xff] %v7251_v32  ;;  %v7266_v8 = vmul.f32 0.2, %v8591_v61  ;;  %v7269_v32 = vmul.f32 0.2, %v6994_v34  ;;  %8594 = vst [vmem:[#allocation24_spill] sm:$0xff] %v7274_v7  ;;  %v7382_v40 = vsel %vm2492_vm1, %v6906_v19, %v7153_v22 }
 0x45a   : > { %8599 = vst [vmem:[#allocation58_spill] sm:$0xff] %v7293_v47  ;;  %v7300_v38 = vmul.f32 0.2, %v7010_v6  ;;  %v7303_v7 = vmul.f32 0.2, %v7014_v43  ;;  %8603 = vst [vmem:[#allocation60_spill] sm:$0xff] %v7312_v36 }
 0x45b   : > { %8592 = vst [vmem:[#allocation21_spill] sm:$0xff] %v7266_v8  ;;  %8593 = vst [vmem:[#allocation22_spill] sm:$0xff] %v7269_v32  ;;  %v7284_v8 = vmul.f32 0.2, %v8595_v0  ;;  %v8597_v32 = vld [vmem:[#allocation25_spill] sm:$0xff]  ;;  %vm2514_vm12 = vcmp.gt.f32.partialorder %v6994_v34, 0.0 }
 0x45c   : > { %v7287_v37 = vmul.f32 0.2, %v8597_v32  ;;  %8600 = vst [vmem:[#allocation59_spill] sm:$0xff] %v7303_v7  ;;  %v8604_v10 = vld [vmem:[#allocation27_spill] sm:$0xff]  ;;  %v7322_v7 = vmul.f32 0.2, %v7026_v35 }
 0x45d   : > { %8596 = vst [vmem:[#allocation23_spill] sm:$0xff] %v7284_v8  ;;  %v7319_v47 = vmul.f32 0.2, %v8604_v10  ;;  %8608 = vst [vmem:[#allocation63_spill] sm:$0xff] %v7331_v58  ;;  %vm2518_vm13 = vcmp.gt.f32.partialorder %v7010_v6, 0.0  ;;  %v8609_v33 = vld [vmem:[#allocation28_spill] sm:$0xff] }
 0x45e   : > { %8598 = vst [vmem:[#allocation25_spill] sm:$0xff] %v7287_v37  ;;  %v8601_v37 = vld [vmem:[#allocation26_spill] sm:$0xff]  ;;  %8606 = vst [vmem:[#allocation61_spill] sm:$0xff] %v7322_v7  ;;  %v7338_v36 = vmul.f32 0.2, %v8609_v33  ;;  %v8610_v7 = vld [vmem:[#allocation29_spill] sm:$0xff] }
 0x45f   : > { %v7306_v8 = vmul.f32 0.2, %v8601_v37  ;;  %8605 = vst [vmem:[#allocation27_spill] sm:$0xff] %v7319_v47  ;;  %v7341_v47 = vmul.f32 0.2, %v8610_v7  ;;  %8613 = vst [vmem:[#allocation64_spill] sm:$0xff] %v7350_v24 }
 0x460   : > { %vm2522_vm14 = vcmp.gt.f32.partialorder %v7026_v35, 0.0  ;;  %v7357_v63 = vmul.f32 0.2, %v7046_v30  ;;  %v8615_v58 = vld [vmem:[#allocation31_spill] sm:$0xff]  ;;  %8618 = vst [vmem:[#allocation68_spill] sm:$0xff] %v7369_v5  ;;  %vm2526_vm15 = vcmp.gt.f32.partialorder %v7042_v46, 0.0 }
 0x461   : > { %8602 = vst [vmem:[#allocation26_spill] sm:$0xff] %v7306_v8  ;;  %v7325_v8 = vmul.f32 0.2, %v7030_v9  ;;  %8611 = vst [vmem:[#allocation28_spill] sm:$0xff] %v7341_v47  ;;  %v7360_v47 = vmul.f32 0.2, %v8615_v58 }
 0x462   : > { %8614 = vst [vmem:[#allocation65_spill] sm:$0xff] %v7357_v63  ;;  %v2594_v17 = vmul.f32 0.2, %v7058_v15  ;;  %v2595_v24 = vmul.f32 0.2, %v7062_v29  ;;  %8619 = vst [vmem:[#allocation69_spill] sm:$0xff] %v7382_v40 }
 0x463   : > { %8607 = vst [vmem:[#allocation62_spill] sm:$0xff] %v7325_v8  ;;  %v7344_v8 = vmul.f32 0.2, %v7042_v46  ;;  %8616 = vst [vmem:[#allocation66_spill] sm:$0xff] %v7360_v47  ;;  %vm2530_vm0 = vcmp.gt.f32.partialorder %v7058_v15, 0.0  ;;  %v8620_v31 = vld [vmem:[#allocation36_spill] sm:$0xff] }
 0x464   : > { %v2597_v5 = vmul.f32 0.2, %v8620_v31  ;;  %v8622_v47 = vld [vmem:[#allocation38_spill] sm:$0xff]  ;;  %v8623_v63 = vld [vmem:[#allocation51_spill] sm:$0xff]  ;;  %v8626_v40 = vld [vmem:[#allocation40_spill] sm:$0xff]  ;;  %vm8630_vm8 = vcmp.gt.f32.partialorder %v6922_v53, 0.0 }
 0x465   : > { %8612 = vst [vmem:[#allocation29_spill] sm:$0xff] %v7344_v8  ;;  %v7363_v8 = vmul.f32 0.2, %v7054_v3  ;;  %v8621_v3 = vld [vmem:[#allocation37_spill] sm:$0xff]  ;;  %v2599_v30 = vmul.f32 0.2, %v8622_v47  ;;  %v7395_v19 = vsel %vm2493_vm2, %v6910_v28, %v8623_v63  ;;  %v7408_v28 = vsel %vm2494_vm3, %v6914_v26, %v7165_v1 }
 0x466   : > { %v2598_v58 = vmul.f32 0.2, %v8621_v3  ;;  %8624 = vst [vmem:[#allocation37_spill] sm:$0xff] %v7395_v19  ;;  %vm2534_vm1 = vcmp.gt.f32.partialorder %v8621_v3, 0.0  ;;  %v8625_v22 = vld [vmem:[#allocation39_spill] sm:$0xff]  ;;  %v8627_v29 = vld [vmem:[#allocation41_spill] sm:$0xff]  ;;  %v7435_v1 = vsel %vm2498_vm7, %v6930_v59, %v7183_v55 }
 0x467   : > { %8617 = vst [vmem:[#allocation67_spill] sm:$0xff] %v7363_v8  ;;  %v2596_v8 = vmul.f32 0.2, %v7066_v49  ;;  %vm2536_vm5 = vcmp.gt.f32.partialorder %v8625_v22, 0.0  ;;  %v2600_v31 = vmul.f32 0.2, %v8625_v22  ;;  %v7417_v22 = vsel %vm2495_vm4, %v6918_v52, %v7168_v23 }
 0x468   : > { %v2601_v49 = vmul.f32 0.2, %v8626_v40  ;;  %v2602_v15 = vmul.f32 0.2, %v8627_v29  ;;  %vm2538_vm2 = vcmp.gt.f32.partialorder %v8627_v29, 0.0  ;;  %v8628_v63 = vld [vmem:[#allocation42_spill] sm:$0xff] }
 0x469   : > { %vm2539_vm6 = vcmp.gt.f32.partialorder %v8628_v63, 0.0  ;;  %v2603_v19 = vmul.f32 0.2, %v8628_v63  ;;  %v8629_v40 = vld [vmem:[#allocation53_spill] sm:$0xff]  ;;  %vm8631_vm3 = vcmp.gt.f32.partialorder %v6926_v60, 0.0  ;;  %v8632_v52 = vld [vmem:[#allocation44_spill] sm:$0xff] }
 0x46a   : > { %v7423_v47 = vsel %vm8630_vm8, %v6922_v53, %v8629_v40  ;;  %v7429_v26 = vsel %vm8631_vm3, %v6926_v60, %v7180_v45  ;;  %vm8633_vm4 = vcmp.gt.f32.partialorder %v6934_v54, 0.0  ;;  %vm8634_vm8 = vcmp.gt.f32.partialorder %v6938_v13, 0.0  ;;  %v8636_v59 = vld [vmem:[#allocation45_spill] sm:$0xff] }
 0x46b   : > { %v7441_v23 = vsel %vm8633_vm4, %v6934_v54, %v8632_v52  ;;  %v7447_v53 = vsel %vm8634_vm8, %v6938_v13, %v7195_v56  ;;  %vm8635_vm3 = vcmp.gt.f32.partialorder %v6942_v14, 0.0  ;;  %v7459_v45 = vsel %vm2502_vm9, %v6946_v27, %v8636_v59 }
 0x46c   : > { %v7453_v60 = vsel %vm8635_vm3, %v6942_v14, %v7198_v12  ;;  %vm8637_vm7 = vcmp.gt.f32.partialorder %v6950_v51, 0.0  ;;  %vm8638_vm4 = vcmp.gt.f32.partialorder %v6954_v16, 0.0  ;;  %vm8639_vm8 = vcmp.gt.f32.partialorder %v6958_v2, 0.0 }
 0x46d   : > { %v7465_v54 = vsel %vm8637_vm7, %v6950_v51, %v7210_v4  ;;  %v7471_v13 = vsel %vm8638_vm4, %v6954_v16, %v7213_v39  ;;  %v7477_v14 = vsel %vm8639_vm8, %v6958_v2, %v7216_v11  ;;  %v7483_v27 = vsel %vm2506_vm10, %v6962_v48, %v7227_v21  ;;  %v8641_v16 = vld [vmem:[#allocation18_spill] sm:$0xff]  ;;  %v8643_v2 = vld [vmem:[#allocation55_spill] sm:$0xff] }
 0x46e   : > { %vm8640_vm9 = vcmp.gt.f32.partialorder %v6966_v62, 0.0  ;;  %vm8642_vm3 = vcmp.gt.f32.partialorder %v6970_v41, 0.0  ;;  %vm8644_vm7 = vcmp.gt.f32.partialorder %v6974_v50, 0.0  ;;  %v8645_v48 = vld [vmem:[#allocation19_spill] sm:$0xff]  ;;  %vm8647_vm10 = vcmp.gt.f32.partialorder %v6982_v25, 0.0 }
 0x46f   : > { %v7489_v51 = vsel %vm8640_vm9, %v6966_v62, %v7230_v42  ;;  %v7495_v55 = vsel %vm8642_vm3, %v6970_v41, %v8641_v16  ;;  %v7501_v11 = vsel %vm8644_vm7, %v6974_v50, %v8643_v2  ;;  %v7507_v56 = vsel %vm2510_vm11, %v6978_v57, %v8645_v48  ;;  %v8646_v62 = vld [vmem:[#allocation20_spill] sm:$0xff]  ;;  %v8648_v41 = vld [vmem:[#allocation57_spill] sm:$0xff]  ;;  %v8652_v57 = vld [vmem:[#allocation22_spill] sm:$0xff] }
 0x470   : > { %v7513_v12 = vsel %vm8647_vm10, %v6982_v25, %v8646_v62  ;;  %vm8649_vm4 = vcmp.gt.f32.partialorder %v8589_v18, 0.0  ;;  %v8650_v50 = vld [vmem:[#allocation21_spill] sm:$0xff]  ;;  %vm8651_vm8 = vcmp.gt.f32.partialorder %v8591_v61, 0.0  ;;  %v7531_v21 = vsel %vm2514_vm12, %v6994_v34, %v8652_v57  ;;  %v8654_v42 = vld [vmem:[#allocation23_spill] sm:$0xff]  ;;  %v8672_v62 = vld [vmem:[#allocation30_spill] sm:$0xff] }
 0x471   : > { %v7519_v4 = vsel %vm8649_vm4, %v8589_v18, %v8648_v41  ;;  %v7525_v39 = vsel %vm8651_vm8, %v8591_v61, %v8650_v50  ;;  %vm8653_vm11 = vcmp.gt.f32.partialorder %v6998_v44, 0.0  ;;  %vm8655_vm9 = vcmp.gt.f32.partialorder %v8595_v0, 0.0  ;;  %v8656_v61 = vld [vmem:[#allocation25_spill] sm:$0xff]  ;;  %v8678_v57 = vld [vmem:[#allocation32_spill] sm:$0xff] }
 0x472   : > { %v7537_v25 = vsel %vm8653_vm11, %v6998_v44, %v7281_v20  ;;  %v7543_v18 = vsel %vm8655_vm9, %v8595_v0, %v8654_v42  ;;  %vm8657_vm3 = vcmp.gt.f32.partialorder %v8597_v32, 0.0  ;;  %v7555_v34 = vsel %vm2518_vm13, %v7010_v6, %v7300_v38  ;;  %v8658_v44 = vld [vmem:[#allocation59_spill] sm:$0xff]  ;;  %v8660_v0 = vld [vmem:[#allocation26_spill] sm:$0xff]  ;;  %v8664_v6 = vld [vmem:[#allocation61_spill] sm:$0xff] }
 0x473   : > { %v7549_v40 = vsel %vm8657_vm3, %v8597_v32, %v8656_v61  ;;  %vm8659_vm12 = vcmp.gt.f32.partialorder %v7014_v43, 0.0  ;;  %vm8661_vm7 = vcmp.gt.f32.partialorder %v8601_v37, 0.0  ;;  %v8662_v32 = vld [vmem:[#allocation27_spill] sm:$0xff]  ;;  %vm8663_vm10 = vcmp.gt.f32.partialorder %v8604_v10, 0.0 }
 0x474   : > { %v7561_v20 = vsel %vm8659_vm12, %v7014_v43, %v8658_v44  ;;  %v7567_v52 = vsel %vm8661_vm7, %v8601_v37, %v8660_v0  ;;  %v7573_v59 = vsel %vm8663_vm10, %v8604_v10, %v8662_v32  ;;  %v7579_v38 = vsel %vm2522_vm14, %v7026_v35, %v8664_v6  ;;  %v8665_v43 = vld [vmem:[#allocation62_spill] sm:$0xff]  ;;  %v8668_v10 = vld [vmem:[#allocation28_spill] sm:$0xff]  ;;  %v8670_v35 = vld [vmem:[#allocation29_spill] sm:$0xff] }
 0x475   : > { %vm8666_vm13 = vcmp.gt.f32.partialorder %v7030_v9, 0.0  ;;  %vm8667_vm4 = vcmp.gt.f32.partialorder %v8609_v33, 0.0  ;;  %vm8669_vm8 = vcmp.gt.f32.partialorder %v8610_v7, 0.0  ;;  %v7603_v48 = vsel %vm2526_vm15, %v7042_v46, %v8670_v35  ;;  %v8680_v46 = vld [vmem:[#allocation33_spill] sm:$0xff]  ;;  %v8681_v44 = vld [vmem:[#allocation34_spill] sm:$0xff]  ;;  %v8683_v32 = vld [vmem:[#allocation35_spill] sm:$0xff] }
 0x476   : > { %v7585_v16 = vsel %vm8666_vm13, %v7030_v9, %v8665_v43  ;;  %v7591_v37 = vsel %vm8667_vm4, %v8609_v33, %v7338_v36  ;;  %v7597_v2 = vsel %vm8669_vm8, %v8610_v7, %v8668_v10  ;;  %v8671_v9 = vld [vmem:[#allocation65_spill] sm:$0xff]  ;;  %vm8673_vm14 = vcmp.gt.f32.partialorder %v8672_v62, 0.0  ;;  %v8674_v36 = vld [vmem:[#allocation66_spill] sm:$0xff]  ;;  %v8675_v33 = vld [vmem:[#allocation31_spill] sm:$0xff] }
 0x477   : > { %v7609_v41 = vsel %vm8673_vm14, %v8672_v62, %v8671_v9  ;;  %vm8676_vm11 = vcmp.gt.f32.partialorder %v8675_v33, 0.0  ;;  %v8677_v7 = vld [vmem:[#allocation67_spill] sm:$0xff]  ;;  %vm8679_vm9 = vcmp.gt.f32.partialorder %v8678_v57, 0.0  ;;  %v7626_v61 = vsel %vm2530_vm0, %v8680_v46, %v2594_v17  ;;  %v8685_v43 = vld [vmem:[#allocation36_spill] sm:$0xff]  ;;  %v8688_v35 = vld [vmem:[#allocation38_spill] sm:$0xff] }
 0x478   : > { %v7615_v50 = vsel %vm8676_vm11, %v8675_v33, %v8674_v36  ;;  %v7621_v42 = vsel %vm8679_vm9, %v8678_v57, %v8677_v7  ;;  %vm8682_vm15 = vcmp.gt.f32.partialorder %v8681_v44, 0.0  ;;  %vm8684_vm3 = vcmp.gt.f32.partialorder %v8683_v32, 0.0  ;;  %v8691_v9 = vld [vmem:[#allocation39_spill] sm:$0xff]  ;;  %v8692_v62 = vld [vmem:[#allocation40_spill] sm:$0xff]  ;;  %v8698_v36 = vld [vmem:[#allocation49_spill] sm:$0xff] }
 0x479   : > { %v7631_v0 = vsel %vm8682_vm15, %v8681_v44, %v2595_v24  ;;  %v7636_v6 = vsel %vm8684_vm3, %v8683_v32, %v2596_v8  ;;  %vm8686_vm12 = vcmp.gt.f32.partialorder %v8685_v43, 0.0  ;;  %v7646_v17 = vsel %vm2534_vm1, %v8621_v3, %v2598_v58  ;;  %v8697_v58 = vld [vmem:[#allocation47_spill] sm:$0xff]  ;;  %v8701_v46 = vld [vmem:[#allocation50_spill] sm:$0xff]  ;;  %v8703_v32 = vld [vmem:[#allocation52_spill] sm:$0xff] }
 0x47a   : > { %v7641_v10 = vsel %vm8686_vm12, %v8685_v43, %v2597_v5  ;;  %8687 = vst [vmem:[#allocation51_spill] sm:$0xff] %v7646_v17  ;;  %vm8689_vm0 = vcmp.gt.f32.partialorder %v8688_v35, 0.0  ;;  %v7656_v8 = vsel %vm2536_vm5, %v8691_v9, %v2600_v31  ;;  %vm8693_vm7 = vcmp.gt.f32.partialorder %v8692_v62, 0.0  ;;  %v8699_v31 = vld [vmem:[#allocation48_spill] sm:$0xff]  ;;  %v8700_v7 = vld [vmem:[#allocation43_spill] sm:$0xff]  ;;  %v8702_v44 = vld [vmem:[#allocation46_spill] sm:$0xff] }
 0x47b   : > { %v7651_v24 = vsel %vm8689_vm0, %v8688_v35, %v2599_v30  ;;  %v7661_v5 = vsel %vm8693_vm7, %v8692_v62, %v2601_v49  ;;  %v7666_v3 = vsel %vm2538_vm2, %v8627_v29, %v2602_v15  ;;  %v7671_v30 = vsel %vm2539_vm6, %v8628_v63, %v2603_v19  ;;  %v8704_v43 = vld [vmem:[#allocation17_spill] sm:$0xff]  ;;  %v8705_v9 = vld [vmem:[#allocation54_spill] sm:$0xff]  ;;  %v8706_v15 = vld [vmem:[#allocation60_spill] sm:$0xff] }
 0x47c   : > { %8690 = vst [vmem:[#allocation41_spill] sm:$0xff] %v7651_v24  ;;  %8694 = vst [vmem:[#allocation42_spill] sm:$0xff] %v7661_v5  ;;  %v2668_v33 = vpack.c.bf16 %v8698_v36, %v8697_v58  ;;  %v2669_v57 = vpack.c.bf16 %v8700_v7, %v8699_v31  ;;  %v2670_v49 = vpack.c.bf16 %v8702_v44, %v8701_v46  ;;  %v8707_v62 = vld [vmem:[#allocation56_spill] sm:$0xff]  ;;  %v8708_v24 = vld [vmem:[#allocation63_spill] sm:$0xff] }
 0x47d   : > { %8695 = vst [vmem:[#allocation53_spill] sm:$0xff] %v7666_v3  ;;  %8696 = vst [vmem:[#allocation44_spill] sm:$0xff] %v7671_v30  ;;  %v2671_v35 = vpack.c.bf16 %v8704_v43, %v8703_v32  ;;  %v2672_v29 = vpack.c.bf16 %v8706_v15, %v8705_v9  ;;  %v2673_v3 = vpack.c.bf16 %v8708_v24, %v8707_v62  ;;  %v8709_v19 = vld [vmem:[#allocation24_spill] sm:$0xff]  ;;  %v8711_v17 = vld [vmem:[#allocation58_spill] sm:$0xff] }
 0x47e   : > { %v8710_v63 = vld [vmem:[#allocation64_spill] sm:$0xff]  ;;  %v8713_v5 = vld [vmem:[#allocation69_spill] sm:$0xff]  ;;  %2700 = vst [vmem:[#allocation2] sm:$0xff] %v2668_v33  ;;  %2701 = vst [vmem:[#allocation2 + $0x8] sm:$0xff] %v2669_v57  ;;  %v2678_v44 = vpack.c.bf16 %v7435_v1, %v7408_v28  ;;  %v2679_v24 = vpack.c.bf16 %v7441_v23, %v7417_v22  ;;  %v2680_v32 = vpack.c.bf16 %v7471_v13, %v7447_v53 }
 0x47f   : > { %v2674_v30 = vpack.c.bf16 %v8710_v63, %v8709_v19  ;;  %v8712_v58 = vld [vmem:[#allocation68_spill] sm:$0xff]  ;;  %v2676_v31 = vpack.c.bf16 %v7423_v47, %v8713_v5  ;;  %v8714_v7 = vld [vmem:[#allocation37_spill] sm:$0xff]  ;;  %2702 = vst [vmem:[#allocation2 + $0x10] sm:$0xff] %v2670_v49  ;;  %2703 = vst [vmem:[#allocation2 + $0x18] sm:$0xff] %v2671_v35  ;;  %v2682_v47 = vpack.c.bf16 %v7483_v27, %v7459_v45 }
 0x480   : > { %v2675_v36 = vpack.c.bf16 %v8712_v58, %v8711_v17  ;;  %v2677_v46 = vpack.c.bf16 %v7429_v26, %v8714_v7  ;;  %v2681_v17 = vpack.c.bf16 %v7477_v14, %v7453_v60  ;;  %2704 = vst [vmem:[#allocation2 + $0x20] sm:$0xff] %v2672_v29  ;;  %2705 = vst [vmem:[#allocation2 + $0x28] sm:$0xff] %v2673_v3 }
 0x481   : > { %v2683_v26 = vpack.c.bf16 %v7489_v51, %v7465_v54  ;;  %v2684_v28 = vpack.c.bf16 %v7519_v4, %v7495_v55  ;;  %v2685_v22 = vpack.c.bf16 %v7525_v39, %v7501_v11  ;;  %2706 = vst [vmem:[#allocation2 + $0x30] sm:$0xff] %v2674_v30  ;;  %2708 = vst [vmem:[#allocation2 + $0x40] sm:$0xff] %v2676_v31 }
 0x482   : > { %2707 = vst [vmem:[#allocation2 + $0x38] sm:$0xff] %v2675_v36  ;;  %2709 = vst [vmem:[#allocation2 + $0x48] sm:$0xff] %v2677_v46  ;;  %v2686_v1 = vpack.c.bf16 %v7531_v21, %v7507_v56  ;;  %v2687_v23 = vpack.c.bf16 %v7537_v25, %v7513_v12  ;;  %v2688_v53 = vpack.c.bf16 %v7567_v52, %v7543_v18  ;;  %v8716_v12 = vld [vmem:[#allocation51_spill] sm:$0xff] }
 0x483   : > { %v2689_v60 = vpack.c.bf16 %v7573_v59, %v7549_v40  ;;  %2710 = vst [vmem:[#allocation2 + $0x50] sm:$0xff] %v2678_v44  ;;  %2711 = vst [vmem:[#allocation2 + $0x58] sm:$0xff] %v2679_v24  ;;  %v2690_v45 = vpack.c.bf16 %v7579_v38, %v7555_v34  ;;  %v2691_v54 = vpack.c.bf16 %v7585_v16, %v7561_v20  ;;  %v8715_v11 = vld [vmem:[#allocation42_spill] sm:$0xff]  ;;  %v8718_v21 = vld [vmem:[#allocation41_spill] sm:$0xff] }
 0x484   : > { %2712 = vst [vmem:[#allocation2 + $0x60] sm:$0xff] %v2680_v32  ;;  %2713 = vst [vmem:[#allocation2 + $0x68] sm:$0xff] %v2681_v17  ;;  %v2692_v13 = vpack.c.bf16 %v7615_v50, %v7591_v37  ;;  %v2693_v14 = vpack.c.bf16 %v7621_v42, %v7597_v2  ;;  %v2694_v27 = vpack.c.bf16 %v7626_v61, %v7603_v48  ;;  %v8717_v4 = vld [vmem:[#allocation53_spill] sm:$0xff]  ;;  %v8719_v25 = vld [vmem:[#allocation44_spill] sm:$0xff] }
 0x485   : > { %2714 = vst [vmem:[#allocation2 + $0x70] sm:$0xff] %v2682_v47  ;;  %2715 = vst [vmem:[#allocation2 + $0x78] sm:$0xff] %v2683_v26  ;;  %v2695_v51 = vpack.c.bf16 %v7631_v0, %v7609_v41  ;;  %v2696_v55 = vpack.c.bf16 %v7656_v8, %v7636_v6  ;;  %v2697_v56 = vpack.c.bf16 %v8715_v11, %v7641_v10 }
 0x486   : > { %2716 = vst [vmem:[#allocation2 + $0x80] sm:$0xff] %v2684_v28  ;;  %2717 = vst [vmem:[#allocation2 + $0x88] sm:$0xff] %v2685_v22  ;;  %v2698_v39 = vpack.c.bf16 %v8717_v4, %v8716_v12  ;;  %v2699_v18 = vpack.c.bf16 %v8719_v25, %v8718_v21 }
 0x487   : > { %2718 = vst [vmem:[#allocation2 + $0x90] sm:$0xff] %v2686_v1  ;;  %2719 = vst [vmem:[#allocation2 + $0x98] sm:$0xff] %v2687_v23 }
 0x488   : > { %2720 = vst [vmem:[#allocation2 + $0xa0] sm:$0xff] %v2688_v53  ;;  %2721 = vst [vmem:[#allocation2 + $0xa8] sm:$0xff] %v2689_v60 }
 0x489   : > { %2722 = vst [vmem:[#allocation2 + $0xb0] sm:$0xff] %v2690_v45  ;;  %2723 = vst [vmem:[#allocation2 + $0xb8] sm:$0xff] %v2691_v54 }
 0x48a   : > { %2724 = vst [vmem:[#allocation2 + $0xc0] sm:$0xff] %v2692_v13  ;;  %2725 = vst [vmem:[#allocation2 + $0xc8] sm:$0xff] %v2693_v14 }
 0x48b   : > { %2726 = vst [vmem:[#allocation2 + $0xd0] sm:$0xff] %v2694_v27  ;;  %2727 = vst [vmem:[#allocation2 + $0xd8] sm:$0xff] %v2695_v51 }
 0x48c   : > { %2728 = vst [vmem:[#allocation2 + $0xe0] sm:$0xff] %v2696_v55  ;;  %2729 = vst [vmem:[#allocation2 + $0xe8] sm:$0xff] %v2697_v56 }
 0x48d   : > { %2730 = vst [vmem:[#allocation2 + $0xf0] sm:$0xff] %v2698_v39  ;;  %2731 = vst [vmem:[#allocation2 + $0xf8] sm:$0xff] %v2699_v18 }
 0x48e PF: > { %v4942_v40 = vld [vmem:[%s5576_s27 + $0x4] ss:$8 sps:$4 sm:$0xff]   ;;  %v4944_v34 = vld [vmem:[%s5576_s27] ss:$8 sps:$4 sm:$0xff]   ;;  %v4945_v20 = vld [vmem:[%s5576_s27 + $0x14] ss:$8 sps:$4 sm:$0xff]  }
 0x48f   : > { %3180 = vmatprep.subr.bf16.mxu0 %v4942_v40  ;;  %v4947_v52 = vld [vmem:[%s5576_s27 + $0x10] ss:$8 sps:$4 sm:$0xff]   ;;  %v4948_v59 = vld [vmem:[%s5576_s27 + $0x24] ss:$8 sps:$4 sm:$0xff]   ;;  %v4950_v38 = vld [vmem:[%s5576_s27 + $0x20] ss:$8 sps:$4 sm:$0xff]  }
 0x490   : > { %3181 = vmatpush1.bf16.msra.mxu0 %v4944_v34  ;;  %v4951_v16 = vld [vmem:[%s5576_s27 + $0x34] ss:$8 sps:$4 sm:$0xff]   ;;  %v4953_v37 = vld [vmem:[%s5576_s27 + $0x30] ss:$8 sps:$4 sm:$0xff]   ;;  %v4954_v2 = vld [vmem:[%s5576_s27 + $0x44] ss:$8 sps:$4 sm:$0xff]  }
 0x491   : > { %3182 = vmatprep.subr.bf16.mxu0 %v4945_v20  ;;  %v4956_v48 = vld [vmem:[%s5576_s27 + $0x40] ss:$8 sps:$4 sm:$0xff]   ;;  %v4957_v41 = vld [vmem:[%s5576_s27 + $0x54] ss:$8 sps:$4 sm:$0xff]   ;;  %v4959_v50 = vld [vmem:[%s5576_s27 + $0x50] ss:$8 sps:$4 sm:$0xff]  }
 0x492   : > { %v4960_v42 = vld [vmem:[%s5576_s27 + $0x64] ss:$8 sps:$4 sm:$0xff]   ;;  %v4962_v0 = vld [vmem:[%s5576_s27 + $0x60] ss:$8 sps:$4 sm:$0xff]   ;;  %v4963_v6 = vld [vmem:[%s5576_s27 + $0x74] ss:$8 sps:$4 sm:$0xff]  }
 0x493   : > { %v2765_v61 = vld [vmem:[#allocation2 + $0x8] sm:$0xff]  ;;  %v4965_v10 = vld [vmem:[%s5576_s27 + $0x70] ss:$8 sps:$4 sm:$0xff]   ;;  %v4969_v3 = vld [vmem:[%s5576_s27 + $0x94] ss:$8 sps:$4 sm:$0xff]   ;;  %p4633_p13 = scmp.ne.s32.totalorder %s5482_s21, 3 }
 0x494   : > { %3183 = vmatpush1.bf16.msra.mxu0 %v4947_v52  ;;  %3212 = vmatprep.mubr.bf16.mxu0 %v2765_v61  ;;  %v4966_v8 = vld [vmem:[%s5576_s27 + $0x84] ss:$8 sps:$4 sm:$0xff]   ;;  %v4968_v5 = vld [vmem:[%s5576_s27 + $0x80] ss:$8 sps:$4 sm:$0xff]   ;;  %v4971_v30 = vld [vmem:[%s5576_s27 + $0x90] ss:$8 sps:$4 sm:$0xff]  }
 0x495   : > { %3184 = vmatprep.subr.bf16.mxu0 %v4948_v59  ;;  %v4972_v33 = vld [vmem:[%s5576_s27 + $0xa4] ss:$8 sps:$4 sm:$0xff]   ;;  %v4974_v57 = vld [vmem:[%s5576_s27 + $0xa0] ss:$8 sps:$4 sm:$0xff]   ;;  %v4975_v49 = vld [vmem:[%s5576_s27 + $0xb4] ss:$8 sps:$4 sm:$0xff]  }
 0x496   : > { %v4977_v43 = vld [vmem:[%s5576_s27 + $0xb0] ss:$8 sps:$4 sm:$0xff]   ;;  %v4978_v35 = vld [vmem:[%s5576_s27 + $0xc4] ss:$8 sps:$4 sm:$0xff]   ;;  %v4980_v9 = vld [vmem:[%s5576_s27 + $0xc0] ss:$8 sps:$4 sm:$0xff]  }
 0x497   : > { %v4981_v15 = vld [vmem:[%s5576_s27 + $0xd4] ss:$8 sps:$4 sm:$0xff]   ;;  %v4983_v29 = vld [vmem:[%s5576_s27 + $0xd0] ss:$8 sps:$4 sm:$0xff]   ;;  %v4984_v62 = vld [vmem:[%s5576_s27 + $0xe4] ss:$8 sps:$4 sm:$0xff]  }
 0x498   : > { %3185 = vmatpush1.bf16.msra.mxu0 %v4950_v38  ;;  %v4986_v19 = vld [vmem:[%s5576_s27 + $0xe0] ss:$8 sps:$4 sm:$0xff]   ;;  %v4987_v63 = vld [vmem:[%s5576_s27 + $0xf4] ss:$8 sps:$4 sm:$0xff]   ;;  %v4989_v58 = vld [vmem:[%s5576_s27 + $0xf0] ss:$8 sps:$4 sm:$0xff]  }
 0x499   : > { %3186 = vmatprep.subr.bf16.mxu0 %v4951_v16  ;;  %v4992_v36 = vld [vmem:[%s5576_s27 + $0x104] ss:$8 sps:$4 sm:$0xff]   ;;  %v4990_v7 = vld [vmem:[%s5576_s27 + $0x100] ss:$8 sps:$4 sm:$0xff]   ;;  %v4995_v46 = vld [vmem:[%s5576_s27 + $0x114] ss:$8 sps:$4 sm:$0xff]  }
 0x49a   : > { %v2764_v31 = vld [vmem:[#allocation2] sm:$0xff]  ;;  %v2769_v44 = vld [vmem:[#allocation2 + $0x28] sm:$0xff]  ;;  %v4993_v24 = vld [vmem:[%s5576_s27 + $0x110] ss:$8 sps:$4 sm:$0xff]   ;;  %s8720_s24 = sld [smem:[#allocation73_spill]] (!%p4633_p13) }
 0x49b   : > { %v4998_v32 = vld [vmem:[%s5576_s27 + $0x124] ss:$8 sps:$4 sm:$0xff]   ;;  %v4996_v47 = vld [vmem:[%s5576_s27 + $0x120] ss:$8 sps:$4 sm:$0xff]   ;;  %v5001_v26 = vld [vmem:[%s5576_s27 + $0x134] ss:$8 sps:$4 sm:$0xff]  }
 0x49c   : > { %3187 = vmatpush1.bf16.msra.mxu0 %v4953_v37  ;;  %v2768_v17 = vld [vmem:[#allocation2 + $0x20] sm:$0xff]  ;;  %v2773_v28 = vld [vmem:[#allocation2 + $0x48] sm:$0xff]  ;;  %v4999_v22 = vld [vmem:[%s5576_s27 + $0x130] ss:$8 sps:$4 sm:$0xff]  }
 0x49d   : > { %3188 = vmatprep.subr.bf16.mxu0 %v4954_v2  ;;  %v5004_v1 = vld [vmem:[%s5576_s27 + $0x144] ss:$8 sps:$4 sm:$0xff]   ;;  %v5002_v53 = vld [vmem:[%s5576_s27 + $0x140] ss:$8 sps:$4 sm:$0xff]   ;;  %v5007_v60 = vld [vmem:[%s5576_s27 + $0x154] ss:$8 sps:$4 sm:$0xff]  }
 0x49e   : > { %v2772_v23 = vld [vmem:[#allocation2 + $0x40] sm:$0xff]  ;;  %v2777_v45 = vld [vmem:[#allocation2 + $0x68] sm:$0xff]  ;;  %v5005_v54 = vld [vmem:[%s5576_s27 + $0x150] ss:$8 sps:$4 sm:$0xff]  }
 0x49f   : > { %v5010_v13 = vld [vmem:[%s5576_s27 + $0x164] ss:$8 sps:$4 sm:$0xff]   ;;  %v5008_v27 = vld [vmem:[%s5576_s27 + $0x160] ss:$8 sps:$4 sm:$0xff]   ;;  %v5013_v51 = vld [vmem:[%s5576_s27 + $0x174] ss:$8 sps:$4 sm:$0xff]  }
 0x4a0   : > { %3189 = vmatpush1.bf16.msra.mxu0 %v4956_v48  ;;  %v2776_v14 = vld [vmem:[#allocation2 + $0x60] sm:$0xff]  ;;  %v2781_v55 = vld [vmem:[#allocation2 + $0x88] sm:$0xff]  ;;  %v5011_v11 = vld [vmem:[%s5576_s27 + $0x170] ss:$8 sps:$4 sm:$0xff]  }
 0x4a1   : > { %3190 = vmatprep.subr.bf16.mxu0 %v4957_v41  ;;  %v5016_v56 = vld [vmem:[%s5576_s27 + $0x184] ss:$8 sps:$4 sm:$0xff]   ;;  %v5014_v4 = vld [vmem:[%s5576_s27 + $0x180] ss:$8 sps:$4 sm:$0xff]   ;;  %v5019_v39 = vld [vmem:[%s5576_s27 + $0x194] ss:$8 sps:$4 sm:$0xff]  }
 0x4a2   : > { %v2780_v12 = vld [vmem:[#allocation2 + $0x80] sm:$0xff]  ;;  %v2785_v21 = vld [vmem:[#allocation2 + $0xa8] sm:$0xff]  ;;  %v5017_v25 = vld [vmem:[%s5576_s27 + $0x190] ss:$8 sps:$4 sm:$0xff]  }
 0x4a3   : > { %v5022_v18 = vld [vmem:[%s5576_s27 + $0x1a4] ss:$8 sps:$4 sm:$0xff]   ;;  %v5020_v34 = vld [vmem:[%s5576_s27 + $0x1a0] ss:$8 sps:$4 sm:$0xff]   ;;  %v5025_v20 = vld [vmem:[%s5576_s27 + $0x1b4] ss:$8 sps:$4 sm:$0xff]  }
 0x4a4   : > { %3191 = vmatpush1.bf16.msra.mxu0 %v4959_v50  ;;  %v2784_v40 = vld [vmem:[#allocation2 + $0xa0] sm:$0xff]  ;;  %v2789_v52 = vld [vmem:[#allocation2 + $0xc8] sm:$0xff]  ;;  %v5023_v59 = vld [vmem:[%s5576_s27 + $0x1b0] ss:$8 sps:$4 sm:$0xff]  }
 0x4a5   : > { %3192 = vmatprep.subr.bf16.mxu0 %v4960_v42  ;;  %v5028_v38 = vld [vmem:[%s5576_s27 + $0x1c4] ss:$8 sps:$4 sm:$0xff]   ;;  %v5026_v37 = vld [vmem:[%s5576_s27 + $0x1c0] ss:$8 sps:$4 sm:$0xff]   ;;  %v5031_v2 = vld [vmem:[%s5576_s27 + $0x1d4] ss:$8 sps:$4 sm:$0xff]  }
 0x4a6   : > { %v2788_v16 = vld [vmem:[#allocation2 + $0xc0] sm:$0xff]  ;;  %v2793_v48 = vld [vmem:[#allocation2 + $0xe8] sm:$0xff]  ;;  %v5029_v41 = vld [vmem:[%s5576_s27 + $0x1d0] ss:$8 sps:$4 sm:$0xff]  }
 0x4a7   : > { %v5034_v50 = vld [vmem:[%s5576_s27 + $0x1e4] ss:$8 sps:$4 sm:$0xff]   ;;  %v5032_v61 = vld [vmem:[%s5576_s27 + $0x1e0] ss:$8 sps:$4 sm:$0xff]  }
 0x4a8   : > { %3193 = vmatpush1.bf16.msra.mxu0 %v4962_v0  ;;  %v2792_v42 = vld [vmem:[#allocation2 + $0xe0] sm:$0xff]  ;;  %v5037_v0 = vld [vmem:[%s5576_s27 + $0x1f4] ss:$8 sps:$4 sm:$0xff]  }
 0x4a9   : > { %3194 = vmatprep.subr.bf16.mxu0 %v4963_v6  ;;  %v2767_v6 = vld [vmem:[#allocation2 + $0x18] sm:$0xff] }
 0x4ac   : > { %3195 = vmatpush1.bf16.msra.mxu0 %v4965_v10  ;;  %v5035_v10 = vld [vmem:[%s5576_s27 + $0x1f0] ss:$8 sps:$4 sm:$0xff]  }
 0x4ad   : > { %3196 = vmatprep.subr.bf16.mxu0 %v4966_v8  ;;  %v2766_v8 = vld [vmem:[#allocation2 + $0x10] sm:$0xff] }
 0x4b0   : > { %3197 = vmatpush1.bf16.msra.mxu0 %v4968_v5  ;;  %v2771_v5 = vld [vmem:[#allocation2 + $0x38] sm:$0xff] }
 0x4b1   : > { %3198 = vmatprep.subr.bf16.mxu0 %v4969_v3  ;;  %v2770_v3 = vld [vmem:[#allocation2 + $0x30] sm:$0xff] }
 0x4b4   : > { %3199 = vmatpush1.bf16.msra.mxu0 %v4971_v30  ;;  %v2775_v30 = vld [vmem:[#allocation2 + $0x58] sm:$0xff] }
 0x4b5   : > { %3200 = vmatprep.subr.bf16.mxu0 %v4972_v33  ;;  %v2774_v33 = vld [vmem:[#allocation2 + $0x50] sm:$0xff] }
 0x4b8   : > { %3201 = vmatpush1.bf16.msra.mxu0 %v4974_v57  ;;  %v2779_v57 = vld [vmem:[#allocation2 + $0x78] sm:$0xff] }
 0x4b9   : > { %3202 = vmatprep.subr.bf16.mxu0 %v4975_v49  ;;  %v2778_v49 = vld [vmem:[#allocation2 + $0x70] sm:$0xff] }
 0x4bc   : > { %3203 = vmatpush1.bf16.msra.mxu0 %v4977_v43  ;;  %v2783_v43 = vld [vmem:[#allocation2 + $0x98] sm:$0xff] }
 0x4bd   : > { %3204 = vmatprep.subr.bf16.mxu0 %v4978_v35  ;;  %v2782_v35 = vld [vmem:[#allocation2 + $0x90] sm:$0xff] }
 0x4c0   : > { %3205 = vmatpush1.bf16.msra.mxu0 %v4980_v9  ;;  %v2787_v9 = vld [vmem:[#allocation2 + $0xb8] sm:$0xff] }
 0x4c1   : > { %3206 = vmatprep.subr.bf16.mxu0 %v4981_v15  ;;  %v2786_v15 = vld [vmem:[#allocation2 + $0xb0] sm:$0xff] }
 0x4c4   : > { %3207 = vmatpush1.bf16.msra.mxu0 %v4983_v29  ;;  %v2791_v29 = vld [vmem:[#allocation2 + $0xd8] sm:$0xff] }
 0x4c5   : > { %3208 = vmatprep.subr.bf16.mxu0 %v4984_v62  ;;  %v2790_v62 = vld [vmem:[#allocation2 + $0xd0] sm:$0xff] }
 0x4c8   : > { %3209 = vmatpush1.bf16.msra.mxu0 %v4986_v19  ;;  %v2795_v19 = vld [vmem:[#allocation2 + $0xf8] sm:$0xff] }
 0x4c9   : > { %3210 = vmatprep.subr.bf16.mxu0 %v4987_v63  ;;  %v2794_v63 = vld [vmem:[#allocation2 + $0xf0] sm:$0xff] }
 0x4cc   : > { %3211 = vmatpush1.bf16.msra.mxu0 %v4989_v58  ;;  %v5038_v58 = vld [vmem:[%s5593_s20 + $0x4] ss:$8 sps:$4 sm:$0xff]  }
 0x4cd   : > { %3293 = vmatprep.subr.bf16.mxu0 %v4992_v36  ;;  %v5040_v36 = vld [vmem:[%s5593_s20] ss:$8 sps:$4 sm:$0xff]   ;;  %3998 = vmatprep.subr.bf16.mxu1 %v5038_v58 }
 0x4ce   : > { %3999 = vmatpush1.bf16.msra.mxu1 %v5040_v36 }
 0x4cf   : > { %3213 = vmatmul.mubr.bf16.vlgmr.msra.gmra.mrb[0].mxu0 %v2764_v31  ;;  %v5041_v31 = vld [vmem:[%s5593_s20 + $0x14] ss:$8 sps:$4 sm:$0xff]  }
 0x4d0   : > { %3294 = vmatpush1.bf16.msra.mxu0 %v4990_v7  ;;  %3222 = vmatprep.mubr.bf16.mxu0 %v2769_v44  ;;  %v5043_v7 = vld [vmem:[%s5593_s20 + $0x10] ss:$8 sps:$4 sm:$0xff]   ;;  %v5046_v44 = vld [vmem:[%s5593_s20 + $0x20] ss:$8 sps:$4 sm:$0xff]  }
 0x4d1   : > { %3295 = vmatprep.subr.bf16.mxu0 %v4995_v46  ;;  %4000 = vmatprep.subr.bf16.mxu1 %v5041_v31  ;;  %v5044_v46 = vld [vmem:[%s5593_s20 + $0x24] ss:$8 sps:$4 sm:$0xff]  }
 0x4d2   : > { %4001 = vmatpush1.bf16.msra.mxu1 %v5043_v7 }
 0x4d3   : > { %4002 = vmatprep.subr.bf16.mxu1 %v5044_v46 }
 0x4d4   : > { %3296 = vmatpush1.bf16.msra.mxu0 %v4993_v24  ;;  %v5047_v24 = vld [vmem:[%s5593_s20 + $0x34] ss:$8 sps:$4 sm:$0xff]  }
 0x4d5   : > { %3297 = vmatprep.subr.bf16.mxu0 %v4998_v32  ;;  %v5049_v32 = vld [vmem:[%s5593_s20 + $0x30] ss:$8 sps:$4 sm:$0xff]  }
 0x4d6   : > { %4003 = vmatpush1.bf16.msra.mxu1 %v5046_v44 }
 0x4d7   : > { %3223 = vmatmul.mubr.bf16.gmra.mrb[4].mxu0 %v2768_v17  ;;  %4004 = vmatprep.subr.bf16.mxu1 %v5047_v24  ;;  %v5050_v17 = vld [vmem:[%s5593_s20 + $0x44] ss:$8 sps:$4 sm:$0xff]  }
 0x4d8   : > { %3298 = vmatpush1.bf16.msra.mxu0 %v4996_v47  ;;  %3232 = vmatprep.mubr.bf16.mxu0 %v2773_v28  ;;  %v5052_v47 = vld [vmem:[%s5593_s20 + $0x40] ss:$8 sps:$4 sm:$0xff]   ;;  %v5055_v28 = vld [vmem:[%s5593_s20 + $0x50] ss:$8 sps:$4 sm:$0xff]  }
 0x4d9   : > { %3299 = vmatprep.subr.bf16.mxu0 %v5001_v26  ;;  %v5053_v26 = vld [vmem:[%s5593_s20 + $0x54] ss:$8 sps:$4 sm:$0xff]  }
 0x4da   : > { %4005 = vmatpush1.bf16.msra.mxu1 %v5049_v32 }
 0x4db   : > { %4006 = vmatprep.subr.bf16.mxu1 %v5050_v17 }
 0x4dc   : > { %3300 = vmatpush1.bf16.msra.mxu0 %v4999_v22  ;;  %v5056_v22 = vld [vmem:[%s5593_s20 + $0x64] ss:$8 sps:$4 sm:$0xff]  }
 0x4dd   : > { %3301 = vmatprep.subr.bf16.mxu0 %v5004_v1  ;;  %v5058_v1 = vld [vmem:[%s5593_s20 + $0x60] ss:$8 sps:$4 sm:$0xff]  }
 0x4de   : > { %4007 = vmatpush1.bf16.msra.mxu1 %v5052_v47 }
 0x4df   : > { %3233 = vmatmul.mubr.bf16.gmra.mrb[8].mxu0 %v2772_v23  ;;  %4008 = vmatprep.subr.bf16.mxu1 %v5053_v26  ;;  %v5059_v23 = vld [vmem:[%s5593_s20 + $0x74] ss:$8 sps:$4 sm:$0xff]  }
 0x4e0   : > { %3302 = vmatpush1.bf16.msra.mxu0 %v5002_v53  ;;  %3242 = vmatprep.mubr.bf16.mxu0 %v2777_v45  ;;  %v5061_v53 = vld [vmem:[%s5593_s20 + $0x70] ss:$8 sps:$4 sm:$0xff]   ;;  %v5064_v45 = vld [vmem:[%s5593_s20 + $0x80] ss:$8 sps:$4 sm:$0xff]  }
 0x4e1   : > { %3303 = vmatprep.subr.bf16.mxu0 %v5007_v60  ;;  %v5062_v60 = vld [vmem:[%s5593_s20 + $0x84] ss:$8 sps:$4 sm:$0xff]  }
 0x4e2   : > { %4009 = vmatpush1.bf16.msra.mxu1 %v5055_v28 }
 0x4e3   : > { %4010 = vmatprep.subr.bf16.mxu1 %v5056_v22 }
 0x4e4   : > { %3304 = vmatpush1.bf16.msra.mxu0 %v5005_v54  ;;  %v5065_v54 = vld [vmem:[%s5593_s20 + $0x94] ss:$8 sps:$4 sm:$0xff]  }
 0x4e5   : > { %3305 = vmatprep.subr.bf16.mxu0 %v5010_v13  ;;  %v5067_v13 = vld [vmem:[%s5593_s20 + $0x90] ss:$8 sps:$4 sm:$0xff]  }
 0x4e6   : > { %4011 = vmatpush1.bf16.msra.mxu1 %v5058_v1 }
 0x4e7   : > { %3243 = vmatmul.mubr.bf16.gmra.mrb[12].mxu0 %v2776_v14  ;;  %4012 = vmatprep.subr.bf16.mxu1 %v5059_v23  ;;  %v5068_v14 = vld [vmem:[%s5593_s20 + $0xa4] ss:$8 sps:$4 sm:$0xff]  }
 0x4e8   : > { %3306 = vmatpush1.bf16.msra.mxu0 %v5008_v27  ;;  %3252 = vmatprep.mubr.bf16.mxu0 %v2781_v55  ;;  %v5070_v27 = vld [vmem:[%s5593_s20 + $0xa0] ss:$8 sps:$4 sm:$0xff]   ;;  %v5073_v55 = vld [vmem:[%s5593_s20 + $0xb0] ss:$8 sps:$4 sm:$0xff]  }
 0x4e9   : > { %3307 = vmatprep.subr.bf16.mxu0 %v5013_v51  ;;  %v5071_v51 = vld [vmem:[%s5593_s20 + $0xb4] ss:$8 sps:$4 sm:$0xff]  }
 0x4ea   : > { %4013 = vmatpush1.bf16.msra.mxu1 %v5061_v53 }
 0x4eb   : > { %4014 = vmatprep.subr.bf16.mxu1 %v5062_v60 }
 0x4ec   : > { %3308 = vmatpush1.bf16.msra.mxu0 %v5011_v11  ;;  %v5074_v11 = vld [vmem:[%s5593_s20 + $0xc4] ss:$8 sps:$4 sm:$0xff]  }
 0x4ed   : > { %3309 = vmatprep.subr.bf16.mxu0 %v5016_v56  ;;  %v5076_v56 = vld [vmem:[%s5593_s20 + $0xc0] ss:$8 sps:$4 sm:$0xff]  }
 0x4ee   : > { %4015 = vmatpush1.bf16.msra.mxu1 %v5064_v45 }
 0x4ef   : > { %3253 = vmatmul.mubr.bf16.gmra.mrb[16].mxu0 %v2780_v12  ;;  %4016 = vmatprep.subr.bf16.mxu1 %v5065_v54  ;;  %v5077_v12 = vld [vmem:[%s5593_s20 + $0xd4] ss:$8 sps:$4 sm:$0xff]  }
 0x4f0   : > { %3310 = vmatpush1.bf16.msra.mxu0 %v5014_v4  ;;  %3262 = vmatprep.mubr.bf16.mxu0 %v2785_v21  ;;  %v5079_v4 = vld [vmem:[%s5593_s20 + $0xd0] ss:$8 sps:$4 sm:$0xff]   ;;  %v5082_v21 = vld [vmem:[%s5593_s20 + $0xe0] ss:$8 sps:$4 sm:$0xff]  }
 0x4f1   : > { %3311 = vmatprep.subr.bf16.mxu0 %v5019_v39  ;;  %v5080_v39 = vld [vmem:[%s5593_s20 + $0xe4] ss:$8 sps:$4 sm:$0xff]  }
 0x4f2   : > { %4017 = vmatpush1.bf16.msra.mxu1 %v5067_v13 }
 0x4f3   : > { %4018 = vmatprep.subr.bf16.mxu1 %v5068_v14 }
 0x4f4   : > { %3312 = vmatpush1.bf16.msra.mxu0 %v5017_v25  ;;  %v5083_v25 = vld [vmem:[%s5593_s20 + $0xf4] ss:$8 sps:$4 sm:$0xff]  }
 0x4f5   : > { %3313 = vmatprep.subr.bf16.mxu0 %v5022_v18  ;;  %v5085_v18 = vld [vmem:[%s5593_s20 + $0xf0] ss:$8 sps:$4 sm:$0xff]  }
 0x4f6   : > { %4019 = vmatpush1.bf16.msra.mxu1 %v5070_v27 }
 0x4f7   : > { %3263 = vmatmul.mubr.bf16.gmra.mrb[20].mxu0 %v2784_v40  ;;  %4020 = vmatprep.subr.bf16.mxu1 %v5071_v51 }
 0x4f8   : > { %3314 = vmatpush1.bf16.msra.mxu0 %v5020_v34  ;;  %3272 = vmatprep.mubr.bf16.mxu0 %v2789_v52 }
 0x4f9   : > { %3315 = vmatprep.subr.bf16.mxu0 %v5025_v20 }
 0x4fa   : > { %4021 = vmatpush1.bf16.msra.mxu1 %v5073_v55 }
 0x4fb   : > { %4022 = vmatprep.subr.bf16.mxu1 %v5074_v11 }
 0x4fc   : > { %3316 = vmatpush1.bf16.msra.mxu0 %v5023_v59 }
 0x4fd   : > { %3317 = vmatprep.subr.bf16.mxu0 %v5028_v38 }
 0x4fe   : > { %4023 = vmatpush1.bf16.msra.mxu1 %v5076_v56 }
 0x4ff   : > { %3273 = vmatmul.mubr.bf16.gmra.mrb[24].mxu0 %v2788_v16  ;;  %4024 = vmatprep.subr.bf16.mxu1 %v5077_v12 }
 0x500   : > { %3318 = vmatpush1.bf16.msra.mxu0 %v5026_v37  ;;  %3282 = vmatprep.mubr.bf16.mxu0 %v2793_v48 }
 0x501   : > { %3319 = vmatprep.subr.bf16.mxu0 %v5031_v2 }
 0x502   : > { %4025 = vmatpush1.bf16.msra.mxu1 %v5079_v4 }
 0x503   : > { %4026 = vmatprep.subr.bf16.mxu1 %v5080_v39 }
 0x504   : > { %3320 = vmatpush1.bf16.msra.mxu0 %v5029_v41 }
 0x505   : > { %3321 = vmatprep.subr.bf16.mxu0 %v5034_v50 }
 0x506   : > { %4027 = vmatpush1.bf16.msra.mxu1 %v5082_v21 }
 0x507   : > { %3283 = vmatmul.mubr.bf16.gmra.mrb[28].mxu0 %v2792_v42  ;;  %4028 = vmatprep.subr.bf16.mxu1 %v5083_v25 }
 0x508   : > { %3322 = vmatpush1.bf16.msra.mxu0 %v5032_v61  ;;  %3325 = vmatprep.mubr.bf16.mxu0 %v2767_v6 }
 0x509   : > { %3323 = vmatprep.subr.bf16.mxu0 %v5037_v0 }
 0x50a   : > { %4029 = vmatpush1.bf16.msra.mxu1 %v5085_v18 }
 0x50c   : > { %3324 = vmatpush1.bf16.msra.mxu0 %v5035_v10 }
 0x50f   : > { %3326 = vmatmul.mubr.bf16.vlgmr.msra.gmra.mrb[0].mxu0 %v2766_v8 }
 0x510   : > { %3335 = vmatprep.mubr.bf16.mxu0 %v2771_v5 }
 0x517   : > { %3336 = vmatmul.mubr.bf16.gmra.mrb[4].mxu0 %v2770_v3 }
 0x518   : > { %3345 = vmatprep.mubr.bf16.mxu0 %v2775_v30 }
 0x51f   : > { %3346 = vmatmul.mubr.bf16.gmra.mrb[8].mxu0 %v2774_v33 }
 0x520   : > { %3355 = vmatprep.mubr.bf16.mxu0 %v2779_v57 }
 0x527   : > { %3356 = vmatmul.mubr.bf16.gmra.mrb[12].mxu0 %v2778_v49 }
 0x528   : > { %3365 = vmatprep.mubr.bf16.mxu0 %v2783_v43 }
 0x52f   : > { %3366 = vmatmul.mubr.bf16.gmra.mrb[16].mxu0 %v2782_v35 }
 0x530   : > { %3375 = vmatprep.mubr.bf16.mxu0 %v2787_v9 }
 0x537   : > { %3376 = vmatmul.mubr.bf16.gmra.mrb[20].mxu0 %v2786_v15 }
 0x538   : > { %3385 = vmatprep.mubr.bf16.mxu0 %v2791_v29 }
 0x53f   : > { %3386 = vmatmul.mubr.bf16.gmra.mrb[24].mxu0 %v2790_v62 }
 0x540   : > { %3395 = vmatprep.mubr.bf16.mxu0 %v2795_v19 }
 0x547   : > { %3396 = vmatmul.mubr.bf16.gmra.mrb[28].mxu0 %v2794_v63 }
 0x5e2   : > { %v7833_v40 = vpop.f32.mrb[0].mxu0 }
 0x5e3   : > { %v7835_v34 = vpop.f32.mrb[1].mxu0  ;;  %v3452_v52 = vmul.f32 %v7833_v40, %v7833_v40 }
 0x5e4   : > { %v7837_v20 = vpop.f32.mrb[2].mxu0  ;;  %v3453_v37 = vmul.f32 %v7835_v34, %v7835_v34 }
 0x5e5   : > { %v3408_v59 = vadd.f32 %v7837_v20, %v7833_v40  ;;  %v3454_v38 = vmul.f32 %v7837_v20, %v7837_v20  ;;  %v7845_v16 = vpop.f32.mrb[3].mxu0 }
 0x5e6   : > { %v3429_v2 = vadd.f32 %v7845_v16, %v7835_v34  ;;  %v3455_v48 = vmul.f32 %v7845_v16, %v7845_v16 }
 0x5e7   : > { %v3484_v41 = vadd.f32 %v3454_v38, %v3452_v52 }
 0x5e8   : > { %v3505_v50 = vadd.f32 %v3455_v48, %v3453_v37 }
 0x5ea   : > { %v7853_v42 = vpop.f32.mrb[4].mxu0 }
 0x5eb   : > { %v3409_v61 = vadd.f32 %v3408_v59, %v7853_v42  ;;  %v3456_v0 = vmul.f32 %v7853_v42, %v7853_v42  ;;  %v7858_v6 = vpop.f32.mrb[5].mxu0 }
 0x5ec   : > { %v3430_v10 = vadd.f32 %v3429_v2, %v7858_v6  ;;  %v3457_v8 = vmul.f32 %v7858_v6, %v7858_v6  ;;  %v7863_v5 = vpop.f32.mrb[6].mxu0 }
 0x5ed   : > { %v3485_v3 = vadd.f32 %v3484_v41, %v3456_v0  ;;  %v3410_v30 = vadd.f32 %v3409_v61, %v7863_v5  ;;  %v3458_v33 = vmul.f32 %v7863_v5, %v7863_v5  ;;  %v7868_v57 = vpop.f32.mrb[7].mxu0 }
 0x5ee   : > { %v3506_v49 = vadd.f32 %v3505_v50, %v3457_v8  ;;  %v3431_v43 = vadd.f32 %v3430_v10, %v7868_v57  ;;  %v3459_v35 = vmul.f32 %v7868_v57, %v7868_v57 }
 0x5ef   : > { %v3486_v9 = vadd.f32 %v3485_v3, %v3458_v33 }
 0x5f0   : > { %v3507_v15 = vadd.f32 %v3506_v49, %v3459_v35 }
 0x5f2   : > { %v7873_v29 = vpop.f32.mrb[8].mxu0 }
 0x5f3   : > { %v3411_v62 = vadd.f32 %v3410_v30, %v7873_v29  ;;  %v3460_v19 = vmul.f32 %v7873_v29, %v7873_v29  ;;  %v7878_v63 = vpop.f32.mrb[9].mxu0 }
 0x5f4   : > { %v3432_v58 = vadd.f32 %v3431_v43, %v7878_v63  ;;  %v3461_v36 = vmul.f32 %v7878_v63, %v7878_v63  ;;  %v7883_v31 = vpop.f32.mrb[10].mxu0 }
 0x5f5   : > { %v3487_v7 = vadd.f32 %v3486_v9, %v3460_v19  ;;  %v3412_v46 = vadd.f32 %v3411_v62, %v7883_v31  ;;  %v3462_v44 = vmul.f32 %v7883_v31, %v7883_v31  ;;  %v7888_v24 = vpop.f32.mrb[11].mxu0 }
 0x5f6   : > { %v3508_v32 = vadd.f32 %v3507_v15, %v3461_v36  ;;  %v3433_v17 = vadd.f32 %v3432_v58, %v7888_v24  ;;  %v3463_v47 = vmul.f32 %v7888_v24, %v7888_v24 }
 0x5f7   : > { %v3488_v26 = vadd.f32 %v3487_v7, %v3462_v44 }
 0x5f8   : > { %v3509_v28 = vadd.f32 %v3508_v32, %v3463_v47 }
 0x5fa   : > { %v7893_v22 = vpop.f32.mrb[12].mxu0 }
 0x5fb   : > { %v3413_v1 = vadd.f32 %v3412_v46, %v7893_v22  ;;  %v3464_v23 = vmul.f32 %v7893_v22, %v7893_v22  ;;  %v7898_v53 = vpop.f32.mrb[13].mxu0 }
 0x5fc   : > { %v3434_v60 = vadd.f32 %v3433_v17, %v7898_v53  ;;  %v3465_v45 = vmul.f32 %v7898_v53, %v7898_v53  ;;  %v7903_v54 = vpop.f32.mrb[14].mxu0 }
 0x5fd   : > { %v3489_v13 = vadd.f32 %v3488_v26, %v3464_v23  ;;  %v3414_v14 = vadd.f32 %v3413_v1, %v7903_v54  ;;  %v3466_v27 = vmul.f32 %v7903_v54, %v7903_v54  ;;  %v7908_v51 = vpop.f32.mrb[15].mxu0 }
 0x5fe   : > { %v3510_v55 = vadd.f32 %v3509_v28, %v3465_v45  ;;  %v3435_v11 = vadd.f32 %v3434_v60, %v7908_v51  ;;  %v3467_v56 = vmul.f32 %v7908_v51, %v7908_v51 }
 0x5ff   : > { %v3490_v12 = vadd.f32 %v3489_v13, %v3466_v27 }
 0x600   : > { %v3511_v4 = vadd.f32 %v3510_v55, %v3467_v56 }
 0x602   : > { %v7913_v39 = vpop.f32.mrb[16].mxu0 }
 0x603   : > { %v3415_v21 = vadd.f32 %v3414_v14, %v7913_v39  ;;  %v3468_v25 = vmul.f32 %v7913_v39, %v7913_v39  ;;  %v7918_v18 = vpop.f32.mrb[17].mxu0 }
 0x604   : > { %v3436_v52 = vadd.f32 %v3435_v11, %v7918_v18  ;;  %v3469_v59 = vmul.f32 %v7918_v18, %v7918_v18  ;;  %v7923_v38 = vpop.f32.mrb[18].mxu0 }
 0x605   : > { %v3491_v37 = vadd.f32 %v3490_v12, %v3468_v25  ;;  %v3416_v2 = vadd.f32 %v3415_v21, %v7923_v38  ;;  %v3470_v48 = vmul.f32 %v7923_v38, %v7923_v38  ;;  %v7928_v41 = vpop.f32.mrb[19].mxu0 }
 0x606   : > { %v3512_v50 = vadd.f32 %v3511_v4, %v3469_v59  ;;  %v3437_v61 = vadd.f32 %v3436_v52, %v7928_v41  ;;  %v3471_v0 = vmul.f32 %v7928_v41, %v7928_v41 }
 0x607   : > { %v3492_v10 = vadd.f32 %v3491_v37, %v3470_v48 }
 0x608   : > { %v3513_v8 = vadd.f32 %v3512_v50, %v3471_v0 }
 0x60a   : > { %v7933_v3 = vpop.f32.mrb[20].mxu0 }
 0x60b   : > { %v3417_v30 = vadd.f32 %v3416_v2, %v7933_v3  ;;  %v3472_v33 = vmul.f32 %v7933_v3, %v7933_v3  ;;  %v7938_v49 = vpop.f32.mrb[21].mxu0 }
 0x60c   : > { %v3438_v43 = vadd.f32 %v3437_v61, %v7938_v49  ;;  %v3473_v35 = vmul.f32 %v7938_v49, %v7938_v49  ;;  %v7943_v9 = vpop.f32.mrb[22].mxu0 }
 0x60d   : > { %v3493_v15 = vadd.f32 %v3492_v10, %v3472_v33  ;;  %v3418_v62 = vadd.f32 %v3417_v30, %v7943_v9  ;;  %v3474_v19 = vmul.f32 %v7943_v9, %v7943_v9  ;;  %v7948_v58 = vpop.f32.mrb[23].mxu0 }
 0x60e   : > { %v3514_v36 = vadd.f32 %v3513_v8, %v3473_v35  ;;  %v3439_v7 = vadd.f32 %v3438_v43, %v7948_v58  ;;  %v3475_v46 = vmul.f32 %v7948_v58, %v7948_v58 }
 0x60f   : > { %v3494_v44 = vadd.f32 %v3493_v15, %v3474_v19 }
 0x610   : > { %v3515_v32 = vadd.f32 %v3514_v36, %v3475_v46 }
 0x612   : > { %v7953_v17 = vpop.f32.mrb[24].mxu0 }
 0x613   : > { %v3419_v47 = vadd.f32 %v3418_v62, %v7953_v17  ;;  %v3476_v26 = vmul.f32 %v7953_v17, %v7953_v17  ;;  %v7958_v28 = vpop.f32.mrb[25].mxu0 }
 0x614   : > { %v3440_v1 = vadd.f32 %v3439_v7, %v7958_v28  ;;  %v3477_v23 = vmul.f32 %v7958_v28, %v7958_v28  ;;  %v7963_v60 = vpop.f32.mrb[26].mxu0 }
 0x615   : > { %v3495_v45 = vadd.f32 %v3494_v44, %v3476_v26  ;;  %v3420_v13 = vadd.f32 %v3419_v47, %v7963_v60  ;;  %v3478_v14 = vmul.f32 %v7963_v60, %v7963_v60  ;;  %v7968_v27 = vpop.f32.mrb[27].mxu0 }
 0x616   : > { %v3516_v55 = vadd.f32 %v3515_v32, %v3477_v23  ;;  %v3441_v11 = vadd.f32 %v3440_v1, %v7968_v27  ;;  %v3479_v56 = vmul.f32 %v7968_v27, %v7968_v27 }
 0x617   : > { %v3496_v12 = vadd.f32 %v3495_v45, %v3478_v14 }
 0x618   : > { %v3517_v4 = vadd.f32 %v3516_v55, %v3479_v56 }
 0x61a   : > { %v7973_v21 = vpop.f32.mrb[28].mxu0 }
 0x61b   : > { %v3421_v25 = vadd.f32 %v3420_v13, %v7973_v21  ;;  %v3480_v52 = vmul.f32 %v7973_v21, %v7973_v21  ;;  %v7978_v59 = vpop.f32.mrb[29].mxu0 }
 0x61c   : > { %v3442_v37 = vadd.f32 %v3441_v11, %v7978_v59  ;;  %v3481_v2 = vmul.f32 %v7978_v59, %v7978_v59  ;;  %v7983_v48 = vpop.f32.mrb[30].mxu0 }
 0x61d   : > { %v3497_v50 = vadd.f32 %v3496_v12, %v3480_v52  ;;  %v3422_v61 = vadd.f32 %v3421_v25, %v7983_v48  ;;  %v3482_v0 = vmul.f32 %v7983_v48, %v7983_v48  ;;  %v3403_v10 = vpop.f32.mrb[31].mxu0 }
 0x61e   : > { %v3518_v8 = vadd.f32 %v3517_v4, %v3481_v2  ;;  %v3443_v30 = vadd.f32 %v3442_v37, %v3403_v10  ;;  %v3483_v33 = vmul.f32 %v3403_v10, %v3403_v10 }
 0x61f   : > { %v3423_v43 = vrot.slane %v3422_v61, 4  ;;  %v3498_v35 = vadd.f32 %v3497_v50, %v3482_v0 }
 0x620   : > { %v3444_v15 = vrot.slane %v3443_v30, 4  ;;  %v3519_v62 = vadd.f32 %v3518_v8, %v3483_v33 }
 0x621   : > { %v3424_v19 = vadd.f32 %v3423_v43, %v3422_v61  ;;  %v3499_v36 = vrot.slane %v3498_v35, 4 }
 0x622   : > { %v3445_v7 = vadd.f32 %v3444_v15, %v3443_v30  ;;  %v3520_v46 = vrot.slane %v3519_v62, 4 }
 0x623   : > { %v3425_v44 = vrot.slane %v3424_v19, 2  ;;  %v3500_v32 = vadd.f32 %v3499_v36, %v3498_v35 }
 0x624   : > { %v3446_v47 = vrot.slane %v3445_v7, 2  ;;  %v3521_v26 = vadd.f32 %v3520_v46, %v3519_v62 }
 0x625   : > { %v3426_v1 = vadd.f32 %v3425_v44, %v3424_v19  ;;  %v3501_v23 = vrot.slane %v3500_v32, 2  ;;  %v5323_v19 = vmov 1966171168  }
 0x626   : > { %v3447_v45 = vadd.f32 %v3446_v47, %v3445_v7  ;;  %v3522_v13 = vrot.slane %v3521_v26, 2  ;;  %v3540_v36 = vunpack.c.l.s4 %v5323_v19  ;;  %v3542_v7 = vlaneseq }
 0x627   : > { %v3427_v14 = vrot.slane %v3426_v1, 1  ;;  %v3502_v55 = vadd.f32 %v3501_v23, %v3500_v32 }
 0x628   : > { %v3448_v11 = vrot.slane %v3447_v45, 1  ;;  %v3523_v56 = vadd.f32 %v3522_v13, %v3521_v26  ;;  %v3541_v46 = vunpack.c.0.s8 %v3540_v36  ;;  %v3543_v44 = vshrl.u32 %v3542_v7, 7 }
 0x629   : > { %v3428_v12 = vadd.f32 %v3427_v14, %v3426_v1  ;;  %v3503_v4 = vrot.slane %v3502_v55, 1 }
 0x62a   : > { %v3449_v25 = vadd.f32 %v3448_v11, %v3447_v45  ;;  %v3524_v52 = vrot.slane %v3523_v56, 1  ;;  %v3544_v47 = vsub.s32 %v3541_v46, %v3543_v44  ;;  %v3406_v45 = vld [vmem:[%s559_s29] sm:$0x3]  ;;  %v7993_v14 = vsub.s32 0, %v3543_v44 }
 0x62b   : > { %v3450_v37 = vmul.f32 0.0078125, %v3428_v12  ;;  %v3504_v2 = vadd.f32 %v3503_v4, %v3502_v55  ;;  %v7995_v55 = vsub.s32 1, %v3543_v44 }
 0x62c   : > { %v3451_v50 = vmul.f32 0.0078125, %v3449_v25  ;;  %v3525_v61 = vadd.f32 %v3524_v52, %v3523_v56 }
 0x62d   : > { %v3526_v0 = vmul.f32 0.0078125, %v3504_v2  ;;  %v3528_v8 = vmul.f32 %v3450_v37, %v3450_v37 }
 0x62e   : > { %v3527_v30 = vmul.f32 0.0078125, %v3525_v61  ;;  %v3529_v33 = vmul.f32 %v3451_v50, %v3451_v50 }
 0x62f   : > { %v3530_v43 = vsub.f32 %v3526_v0, %v3528_v8 }
 0x630   : > { %v3531_v35 = vsub.f32 %v3527_v30, %v3529_v33 }
 0x631   : > { %v3532_v15 = vadd.f32 0.8, %v3530_v43 }
 0x632   : > { %v3533_v62 = vadd.f32 0.8, %v3531_v35 }
 0x633   : > { %5086 = vrsqrt.f32 %v3532_v15 }
 0x634   : > { %5088 = vrsqrt.f32 %v3533_v62 }
 0x63d   : > { %v5087_v32 = vpop.eup %5086 }
 0x63e   : > { %v5089_v26 = vpop.eup %5088 }
 0x63f   : > { %v3538_v1 = vcombine.low %v5087_v32, %v5089_v26 }
 0x641   : > { %v3545_v23 = vrot.slane %v3538_v1, %v3544_v47 }
 0x643   : > { %v3552_v13 = vrot.slane %v3545_v23, %v3544_v47 }
 0x645   : > { %v3554_v11 = vmul.f32 %v3552_v13, %v3406_v45 }
 0x647   : > { %v3559_v56 = vrot.slane %v3554_v11, %v7993_v14  ;;  %v3563_v12 = vrot.slane %v3554_v11, %v7995_v55 }
 0x649   : > { %v3566_v4 = vmul.f32 %v3559_v56, %v3450_v37  ;;  %v3567_v25 = vmul.f32 %v3563_v12, %v3451_v50  ;;  %v3618_v52 = vmul.f32 %v3563_v12, %v3403_v10  ;;  %v3588_v2 = vmul.f32 %v3563_v12, %v7835_v34 }
 0x64a   : > { %v3590_v61 = vmul.f32 %v3563_v12, %v7845_v16  ;;  %v3587_v0 = vmul.f32 %v3559_v56, %v7833_v40  ;;  %v3589_v8 = vmul.f32 %v3559_v56, %v7837_v20  ;;  %v3592_v30 = vmul.f32 %v3563_v12, %v7858_v6 }
 0x64b   : > { %v3570_v33 = vcombine.low %v3566_v4, %v3567_v25  ;;  %v3594_v43 = vmul.f32 %v3563_v12, %v7868_v57  ;;  %v3591_v35 = vmul.f32 %v3559_v56, %v7853_v42  ;;  %v3593_v37 = vmul.f32 %v3559_v56, %v7863_v5  ;;  %v3407_v57 = vld [vmem:[%s564_s19] sm:$0x3] }
 0x64c   : > { %v8008_v10 = vmul.f32 %v3563_v12, %v7878_v63  ;;  %v8011_v34 = vmul.f32 %v3563_v12, %v7888_v24  ;;  %v8014_v16 = vmul.f32 %v3559_v56, %v7873_v29  ;;  %v8017_v40 = vmul.f32 %v3559_v56, %v7883_v31 }
 0x64d   : > { %v3577_v20 = vrot.slane %v3570_v33, %v3544_v47  ;;  %v8020_v6 = vmul.f32 %v3563_v12, %v7898_v53  ;;  %v8023_v42 = vmul.f32 %v3563_v12, %v7908_v51  ;;  %v8026_v5 = vmul.f32 %v3559_v56, %v7893_v22 }
 0x64e   : > { %v8034_v29 = vmul.f32 %v3559_v56, %v7903_v54  ;;  %v8037_v63 = vmul.f32 %v3563_v12, %v7918_v18  ;;  %v8040_v31 = vmul.f32 %v3563_v12, %v7928_v41  ;;  %v8043_v24 = vmul.f32 %v3559_v56, %v7913_v39 }
 0x64f   : > { %v3584_v53 = vrot.slane %v3577_v20, %v3544_v47  ;;  %v8046_v22 = vmul.f32 %v3559_v56, %v7923_v38  ;;  %v8049_v51 = vmul.f32 %v3563_v12, %v7938_v49  ;;  %v8052_v50 = vmul.f32 %v3563_v12, %v7948_v58 }
 0x650   : > { %v8055_v54 = vmul.f32 %v3559_v56, %v7933_v3  ;;  %v8058_v18 = vmul.f32 %v3559_v56, %v7943_v9  ;;  %v8061_v41 = vmul.f32 %v3563_v12, %v7958_v28  ;;  %v8064_v39 = vmul.f32 %v3563_v12, %v7968_v27 }
 0x651   : > { %v3586_v38 = vsub.f32 %v3407_v57, %v3584_v53  ;;  %v8067_v15 = vmul.f32 %v3559_v56, %v7953_v17  ;;  %v8070_v49 = vmul.f32 %v3559_v56, %v7963_v60  ;;  %v8073_v58 = vmul.f32 %v3563_v12, %v7978_v59 }
 0x652   : > { %v8076_v3 = vmul.f32 %v3559_v56, %v7973_v21  ;;  %v8079_v9 = vmul.f32 %v3559_v56, %v7983_v48 }
 0x653   : > { %v8082_v28 = vrot.slane %v3586_v38, %v7993_v14  ;;  %v8085_v27 = vrot.slane %v3586_v38, %v7995_v55 }
 0x655   : > { %v8088_v17 = vadd.f32 %v8085_v27, %v3618_v52  ;;  %v3631_v60 = vadd.f32 %v8085_v27, %v3588_v2  ;;  %v3633_v59 = vadd.f32 %v8085_v27, %v3590_v61  ;;  %v3630_v62 = vadd.f32 %v8082_v28, %v3587_v0 }
 0x656   : > { %v3632_v21 = vadd.f32 %v8082_v28, %v3589_v8  ;;  %v3635_v48 = vadd.f32 %v8085_v27, %v3592_v30  ;;  %v3637_v19 = vadd.f32 %v8085_v27, %v3594_v43  ;;  %v3634_v36 = vadd.f32 %v8082_v28, %v3591_v35 }
 0x657   : > { %v8098_v7 = vmul.f32 0.2, %v8088_v17  ;;  %vm3663_vm5 = vcmp.gt.f32.partialorder %v3631_v60, 0.0  ;;  %vm3665_vm6 = vcmp.gt.f32.partialorder %v3633_v59, 0.0  ;;  %v3695_v46 = vmul.f32 0.2, %v3631_v60 }
 0x658   : > { %v3697_v44 = vmul.f32 0.2, %v3633_v59  ;;  %vm3662_vm1 = vcmp.gt.f32.partialorder %v3630_v62, 0.0  ;;  %vm3664_vm2 = vcmp.gt.f32.partialorder %v3632_v21, 0.0  ;;  %v3694_v32 = vmul.f32 0.2, %v3630_v62 }
 0x659   : > { %v3727_v47 = vsel %vm3663_vm5, %v3631_v60, %v3695_v46  ;;  %v3696_v26 = vmul.f32 0.2, %v3632_v21  ;;  %vm3667_vm10 = vcmp.gt.f32.partialorder %v3635_v48, 0.0  ;;  %vm3669_vm13 = vcmp.gt.f32.partialorder %v3637_v19, 0.0 }
 0x65a   : > { %v3729_v1 = vsel %vm3665_vm6, %v3633_v59, %v3697_v44  ;;  %v3726_v23 = vsel %vm3662_vm1, %v3630_v62, %v3694_v32  ;;  %v3699_v45 = vmul.f32 0.2, %v3635_v48  ;;  %v3701_v13 = vmul.f32 0.2, %v3637_v19 }
 0x65b   : > { %v3791_v11 = vpack.c.bf16 %v3729_v1, %v3727_v47  ;;  %v3728_v56 = vsel %vm3664_vm2, %v3632_v21, %v3696_v26  ;;  %v3636_v12 = vadd.f32 %v8082_v28, %v3593_v37  ;;  %vm3666_vm4 = vcmp.gt.f32.partialorder %v3634_v36, 0.0 }
 0x65c   : > { %v3790_v4 = vpack.c.bf16 %v3728_v56, %v3726_v23  ;;  %v3731_v25 = vsel %vm3667_vm10, %v3635_v48, %v3699_v45  ;;  %v3733_v52 = vsel %vm3669_vm13, %v3637_v19, %v3701_v13  ;;  %v3698_v2 = vmul.f32 0.2, %v3634_v36 }
 0x65d   : > { %4030 = vmatprep.mubr.bf16.mxu1 %v3791_v11  ;;  %v3793_v61 = vpack.c.bf16 %v3733_v52, %v3731_v25  ;;  %vm3668_vm8 = vcmp.gt.f32.partialorder %v3636_v12, 0.0  ;;  %v3700_v0 = vmul.f32 0.2, %v3636_v12  ;;  %v3639_v8 = vadd.f32 %v8085_v27, %v8008_v10 }
 0x65e   : > { %4031 = vmatmul.mubr.bf16.vlgmr.msra.gmra.mrb[0].mxu1 %v3790_v4  ;;  %v3730_v30 = vsel %vm3666_vm4, %v3634_v36, %v3698_v2  ;;  %v3641_v33 = vadd.f32 %v8085_v27, %v8011_v34  ;;  %v3638_v43 = vadd.f32 %v8082_v28, %v8014_v16  ;;  %v3640_v35 = vadd.f32 %v8082_v28, %v8017_v40 }
 0x65f   : > { %4040 = vmatprep.mubr.bf16.mxu1 %v3793_v61  ;;  %v3732_v37 = vsel %vm3668_vm8, %v3636_v12, %v3700_v0  ;;  %vm3671_vm14 = vcmp.gt.f32.partialorder %v3639_v8, 0.0  ;;  %v3703_v20 = vmul.f32 0.2, %v3639_v8  ;;  %v3643_v57 = vadd.f32 %v8085_v27, %v8020_v6 }
 0x660   : > { %v3792_v53 = vpack.c.bf16 %v3732_v37, %v3730_v30  ;;  %vm3673_vm11 = vcmp.gt.f32.partialorder %v3641_v33, 0.0  ;;  %v3705_v10 = vmul.f32 0.2, %v3641_v33  ;;  %vm3670_vm9 = vcmp.gt.f32.partialorder %v3638_v43, 0.0 }
 0x661   : > { %v3735_v38 = vsel %vm3671_vm14, %v3639_v8, %v3703_v20  ;;  %vm3672_vm15 = vcmp.gt.f32.partialorder %v3640_v35, 0.0  ;;  %v3702_v34 = vmul.f32 0.2, %v3638_v43  ;;  %v3704_v60 = vmul.f32 0.2, %v3640_v35 }
 0x662   : > { %v3737_v59 = vsel %vm3673_vm11, %v3641_v33, %v3705_v10  ;;  %v3645_v16 = vadd.f32 %v8085_v27, %v8023_v42  ;;  %vm3675_vm3 = vcmp.gt.f32.partialorder %v3643_v57, 0.0  ;;  %v3707_v40 = vmul.f32 0.2, %v3643_v57 }
 0x663   : > { %v3795_v62 = vpack.c.bf16 %v3737_v59, %v3735_v38  ;;  %v3734_v21 = vsel %vm3670_vm9, %v3638_v43, %v3702_v34  ;;  %v3736_v48 = vsel %vm3672_vm15, %v3640_v35, %v3704_v60  ;;  %v3642_v6 = vadd.f32 %v8082_v28, %v8026_v5 }
 0x664   : > { %v3794_v19 = vpack.c.bf16 %v3736_v48, %v3734_v21  ;;  %vm3677_vm12 = vcmp.gt.f32.partialorder %v3645_v16, 0.0  ;;  %v3709_v36 = vmul.f32 0.2, %v3645_v16  ;;  %v3739_v46 = vsel %vm3675_vm3, %v3643_v57, %v3707_v40 }
 0x665   : > { %v3644_v44 = vadd.f32 %v8082_v28, %v8034_v29  ;;  %vm3674_vm0 = vcmp.gt.f32.partialorder %v3642_v6, 0.0  ;;  %v3706_v32 = vmul.f32 0.2, %v3642_v6  ;;  %v3647_v42 = vadd.f32 %v8085_v27, %v8037_v63 }
 0x666   : > { %4041 = vmatmul.mubr.bf16.gmra.mrb[4].mxu1 %v3792_v53  ;;  %v3741_v47 = vsel %vm3677_vm12, %v3645_v16, %v3709_v36  ;;  %v3649_v26 = vadd.f32 %v8085_v27, %v8040_v31  ;;  %v3646_v5 = vadd.f32 %v8082_v28, %v8043_v24  ;;  %v3648_v1 = vadd.f32 %v8082_v28, %v8046_v22 }
 0x667   : > { %4050 = vmatprep.mubr.bf16.mxu1 %v3795_v62  ;;  %v3797_v23 = vpack.c.bf16 %v3741_v47, %v3739_v46  ;;  %vm3676_vm7 = vcmp.gt.f32.partialorder %v3644_v44, 0.0  ;;  %v3708_v29 = vmul.f32 0.2, %v3644_v44  ;;  %v3738_v45 = vsel %vm3674_vm0, %v3642_v6, %v3706_v32  ;;  %v3760_v47 = vld [vmem:[#allocation3 + $0x10] sm:$0xff] }
 0x668   : > { %vm3679_vm5 = vcmp.gt.f32.partialorder %v3647_v42, 0.0  ;;  %vm3681_vm6 = vcmp.gt.f32.partialorder %v3649_v26, 0.0  ;;  %v3711_v13 = vmul.f32 0.2, %v3647_v42  ;;  %v3713_v63 = vmul.f32 0.2, %v3649_v26 }
 0x669   : > { %v3740_v11 = vsel %vm3676_vm7, %v3644_v44, %v3708_v29  ;;  %vm3678_vm1 = vcmp.gt.f32.partialorder %v3646_v5, 0.0  ;;  %vm3680_vm2 = vcmp.gt.f32.partialorder %v3648_v1, 0.0  ;;  %v3710_v56 = vmul.f32 0.2, %v3646_v5 }
 0x66a   : > { %v3796_v31 = vpack.c.bf16 %v3740_v11, %v3738_v45  ;;  %v3743_v12 = vsel %vm3679_vm5, %v3647_v42, %v3711_v13  ;;  %v3745_v4 = vsel %vm3681_vm6, %v3649_v26, %v3713_v63  ;;  %v3712_v24 = vmul.f32 0.2, %v3648_v1  ;;  %v3762_v11 = vld [vmem:[#allocation3 + $0x20] sm:$0xff] }
 0x66b   : > { %v3799_v25 = vpack.c.bf16 %v3745_v4, %v3743_v12  ;;  %v3742_v52 = vsel %vm3678_vm1, %v3646_v5, %v3710_v56  ;;  %v3651_v22 = vadd.f32 %v8085_v27, %v8049_v51  ;;  %v3653_v2 = vadd.f32 %v8085_v27, %v8052_v50  ;;  %v3763_v56 = vld [vmem:[#allocation3 + $0x28] sm:$0xff]  ;;  %v3764_v12 = vld [vmem:[#allocation3 + $0x30] sm:$0xff] }
 0x66c   : > { %v3744_v61 = vsel %vm3680_vm2, %v3648_v1, %v3712_v24  ;;  %v3650_v0 = vadd.f32 %v8082_v28, %v8055_v54  ;;  %v3652_v8 = vadd.f32 %v8082_v28, %v8058_v18  ;;  %v3655_v30 = vadd.f32 %v8085_v27, %v8061_v41  ;;  %v3761_v1 = vld [vmem:[#allocation3 + $0x18] sm:$0xff] }
 0x66d   : > { %v3798_v33 = vpack.c.bf16 %v3744_v61, %v3742_v52  ;;  %vm3683_vm10 = vcmp.gt.f32.partialorder %v3651_v22, 0.0  ;;  %vm3685_vm13 = vcmp.gt.f32.partialorder %v3653_v2, 0.0  ;;  %v3715_v43 = vmul.f32 0.2, %v3651_v22 }
 0x66e   : > { %4051 = vmatmul.mubr.bf16.gmra.mrb[8].mxu1 %v3794_v19  ;;  %v3717_v35 = vmul.f32 0.2, %v3653_v2  ;;  %vm3682_vm4 = vcmp.gt.f32.partialorder %v3650_v0, 0.0  ;;  %vm3684_vm8 = vcmp.gt.f32.partialorder %v3652_v8, 0.0  ;;  %v3714_v51 = vmul.f32 0.2, %v3650_v0 }
 0x66f   : > { %4060 = vmatprep.mubr.bf16.mxu1 %v3797_v23  ;;  %v3747_v50 = vsel %vm3683_vm10, %v3651_v22, %v3715_v43  ;;  %v3716_v37 = vmul.f32 0.2, %v3652_v8  ;;  %v3657_v54 = vadd.f32 %v8085_v27, %v8064_v39  ;;  %vm3687_vm14 = vcmp.gt.f32.partialorder %v3655_v30, 0.0  ;;  %v3768_v43 = vld [vmem:[#allocation3 + $0x50] sm:$0xff] }
 0x670   : > { %v3749_v18 = vsel %vm3685_vm13, %v3653_v2, %v3717_v35  ;;  %v3746_v20 = vsel %vm3682_vm4, %v3650_v0, %v3714_v51  ;;  %v3719_v57 = vmul.f32 0.2, %v3655_v30  ;;  %v3654_v41 = vadd.f32 %v8082_v28, %v8067_v15 }
 0x671   : > { %v3801_v53 = vpack.c.bf16 %v3749_v18, %v3747_v50  ;;  %v3748_v10 = vsel %vm3684_vm8, %v3652_v8, %v3716_v37  ;;  %vm3689_vm11 = vcmp.gt.f32.partialorder %v3657_v54, 0.0  ;;  %v3721_v38 = vmul.f32 0.2, %v3657_v54  ;;  %v3766_v8 = vld [vmem:[#allocation3 + $0x40] sm:$0xff]  ;;  %v3769_v50 = vld [vmem:[#allocation3 + $0x58] sm:$0xff] }
 0x672   : > { %v3800_v34 = vpack.c.bf16 %v3748_v10, %v3746_v20  ;;  %v3751_v60 = vsel %vm3687_vm14, %v3655_v30, %v3719_v57  ;;  %v3656_v59 = vadd.f32 %v8082_v28, %v8070_v49  ;;  %vm3686_vm9 = vcmp.gt.f32.partialorder %v3654_v41, 0.0  ;;  %v3767_v30 = vld [vmem:[#allocation3 + $0x48] sm:$0xff] }
 0x673   : > { %v3753_v16 = vsel %vm3689_vm11, %v3657_v54, %v3721_v38  ;;  %v3718_v40 = vmul.f32 0.2, %v3654_v41  ;;  %v3659_v39 = vadd.f32 %v8085_v27, %v8073_v58  ;;  %vm3693_vm15 = vcmp.gt.f32.partialorder %v8088_v17, 0.0  ;;  %v3772_v38 = vld [vmem:[#allocation3 + $0x70] sm:$0xff] }
 0x674   : > { %v3803_v62 = vpack.c.bf16 %v3753_v16, %v3751_v60  ;;  %vm3688_vm3 = vcmp.gt.f32.partialorder %v3656_v59, 0.0  ;;  %v3720_v15 = vmul.f32 0.2, %v3656_v59  ;;  %v3757_v21 = vsel %vm3693_vm15, %v8088_v17, %v8098_v7 }
 0x675   : > { %v3750_v48 = vsel %vm3686_vm9, %v3654_v41, %v3718_v40  ;;  %vm3691_vm12 = vcmp.gt.f32.partialorder %v3659_v39, 0.0  ;;  %v3723_v6 = vmul.f32 0.2, %v3659_v39  ;;  %v3658_v49 = vadd.f32 %v8082_v28, %v8076_v3  ;;  %v3758_v3 = vld [vmem:[#allocation3] sm:$0xff] }
 0x676   : > { %4061 = vmatmul.mubr.bf16.gmra.mrb[12].mxu1 %v3796_v31  ;;  %v3752_v19 = vsel %vm3688_vm3, %v3656_v59, %v3720_v15  ;;  %v3660_v36 = vadd.f32 %v8082_v28, %v8079_v9  ;;  %v3759_v9 = vld [vmem:[#allocation3 + $0x8] sm:$0xff]  ;;  %v3770_v41 = vld [vmem:[#allocation3 + $0x60] sm:$0xff]  ;;  %v3773_v59 = vld [vmem:[#allocation3 + $0x78] sm:$0xff] }
 0x677   : > { %4070 = vmatprep.mubr.bf16.mxu1 %v3799_v25  ;;  %v3802_v58 = vpack.c.bf16 %v3752_v19, %v3750_v48  ;;  %v3755_v27 = vsel %vm3691_vm12, %v3659_v39, %v3723_v6  ;;  %vm3690_vm0 = vcmp.gt.f32.partialorder %v3658_v49, 0.0  ;;  %v3722_v46 = vmul.f32 0.2, %v3658_v49  ;;  %v3765_v25 = vld [vmem:[#allocation3 + $0x38] sm:$0xff]  ;;  %v3775_v48 = vld [vmem:[#allocation3 + $0x88] sm:$0xff] }
 0x678   : > { %v3805_v44 = vpack.c.bf16 %v3757_v21, %v3755_v27  ;;  %vm3692_vm7 = vcmp.gt.f32.partialorder %v3660_v36, 0.0  ;;  %v3724_v32 = vmul.f32 0.2, %v3660_v36  ;;  %v3774_v21 = vld [vmem:[#allocation3 + $0x80] sm:$0xff] }
 0x679   : > { %v3754_v17 = vsel %vm3690_vm0, %v3658_v49, %v3722_v46  ;;  %v3776_v49 = vld [vmem:[#allocation3 + $0x90] sm:$0xff] }
 0x67a   : > { %v3756_v7 = vsel %vm3692_vm7, %v3660_v36, %v3724_v32 }
 0x67b   : > { %v3804_v42 = vpack.c.bf16 %v3756_v7, %v3754_v17  ;;  %v3778_v7 = vld [vmem:[#allocation3 + $0xa0] sm:$0xff] }
 0x67e   : > { %4071 = vmatmul.mubr.bf16.gmra.mrb[16].mxu1 %v3798_v33 }
 0x67f   : > { %4080 = vmatprep.mubr.bf16.mxu1 %v3801_v53  ;;  %v3771_v53 = vld [vmem:[#allocation3 + $0x68] sm:$0xff] }
 0x686   : > { %4081 = vmatmul.mubr.bf16.gmra.mrb[20].mxu1 %v3800_v34 }
 0x687   : > { %4090 = vmatprep.mubr.bf16.mxu1 %v3803_v62 }
 0x68e   : > { %4091 = vmatmul.mubr.bf16.gmra.mrb[24].mxu1 %v3802_v58  ;;  %v3777_v58 = vld [vmem:[#allocation3 + $0x98] sm:$0xff] }
 0x68f   : > { %4100 = vmatprep.mubr.bf16.mxu1 %v3805_v44 }
 0x696   : > { %4101 = vmatmul.mubr.bf16.gmra.mrb[28].mxu1 %v3804_v42  ;;  %v3779_v42 = vld [vmem:[#allocation3 + $0xa8] sm:$0xff] }
 0x731   : > { %v4032_v28 = vpop.f32.mrb[0].mxu1 }
 0x732   : > { %v4111_v26 = vadd.f32 %v4032_v28, %v3758_v3  ;;  %v4034_v5 = vpop.f32.mrb[1].mxu1 }
 0x733   : > { %v4112_v23 = vadd.f32 %v4034_v5, %v3759_v9  ;;  %v4036_v29 = vpop.f32.mrb[2].mxu1  ;;  %v3780_v9 = vld [vmem:[#allocation3 + $0xb0] sm:$0xff] }
 0x734   : > { %4143 = vst [vmem:[#allocation3] sm:$0xff] %v4111_v26  ;;  %v4113_v45 = vadd.f32 %v4036_v29, %v3760_v47  ;;  %v4038_v13 = vpop.f32.mrb[3].mxu1  ;;  %v3781_v26 = vld [vmem:[#allocation3 + $0xb8] sm:$0xff] }
 0x735   : > { %4144 = vst [vmem:[#allocation3 + $0x8] sm:$0xff] %v4112_v23  ;;  %v4114_v63 = vadd.f32 %v4038_v13, %v3761_v1  ;;  %v3782_v13 = vld [vmem:[#allocation3 + $0xc0] sm:$0xff] }
 0x736   : > { %4145 = vst [vmem:[#allocation3 + $0x10] sm:$0xff] %v4113_v45 }
 0x737   : > { %4146 = vst [vmem:[#allocation3 + $0x18] sm:$0xff] %v4114_v63  ;;  %v3783_v63 = vld [vmem:[#allocation3 + $0xc8] sm:$0xff] }
 0x739   : > { %v4042_v31 = vpop.f32.mrb[4].mxu1 }
 0x73a   : > { %v4115_v4 = vadd.f32 %v4042_v31, %v3762_v11  ;;  %v4044_v24 = vpop.f32.mrb[5].mxu1 }
 0x73b   : > { %v4116_v52 = vadd.f32 %v4044_v24, %v3763_v56  ;;  %v4046_v22 = vpop.f32.mrb[6].mxu1  ;;  %v3784_v56 = vld [vmem:[#allocation3 + $0xd0] sm:$0xff] }
 0x73c   : > { %4147 = vst [vmem:[#allocation3 + $0x20] sm:$0xff] %v4115_v4  ;;  %v4117_v2 = vadd.f32 %v4046_v22, %v3764_v12  ;;  %v4048_v61 = vpop.f32.mrb[7].mxu1  ;;  %v3785_v4 = vld [vmem:[#allocation3 + $0xd8] sm:$0xff] }
 0x73d   : > { %4148 = vst [vmem:[#allocation3 + $0x28] sm:$0xff] %v4116_v52  ;;  %v4118_v0 = vadd.f32 %v4048_v61, %v3765_v25  ;;  %v3786_v61 = vld [vmem:[#allocation3 + $0xe0] sm:$0xff] }
 0x73e   : > { %4149 = vst [vmem:[#allocation3 + $0x30] sm:$0xff] %v4117_v2 }
 0x73f   : > { %4150 = vst [vmem:[#allocation3 + $0x38] sm:$0xff] %v4118_v0  ;;  %v3787_v0 = vld [vmem:[#allocation3 + $0xe8] sm:$0xff] }
 0x741   : > { %v4052_v33 = vpop.f32.mrb[8].mxu1 }
 0x742   : > { %v4119_v35 = vadd.f32 %v4052_v33, %v3766_v8  ;;  %v4054_v51 = vpop.f32.mrb[9].mxu1 }
 0x743   : > { %v4120_v37 = vadd.f32 %v4054_v51, %v3767_v30  ;;  %v4056_v54 = vpop.f32.mrb[10].mxu1  ;;  %v3788_v30 = vld [vmem:[#allocation3 + $0xf0] sm:$0xff] }
 0x744   : > { %4151 = vst [vmem:[#allocation3 + $0x40] sm:$0xff] %v4119_v35  ;;  %v4121_v18 = vadd.f32 %v4056_v54, %v3768_v43  ;;  %v4058_v20 = vpop.f32.mrb[11].mxu1  ;;  %v3789_v35 = vld [vmem:[#allocation3 + $0xf8] sm:$0xff] }
 0x745   : > { %4152 = vst [vmem:[#allocation3 + $0x48] sm:$0xff] %v4120_v37  ;;  %v4122_v57 = vadd.f32 %v4058_v20, %v3769_v50  ;;  %v4179_v20 = vld [vmem:[#allocation3] sm:$0xff] (!%p4633_p13) }
 0x746   : > { %4153 = vst [vmem:[#allocation3 + $0x50] sm:$0xff] %v4121_v18 }
 0x747   : > { %4154 = vst [vmem:[#allocation3 + $0x58] sm:$0xff] %v4122_v57  ;;  %v4211_v57 = vld [vmem:[%s8720_s24] sm:$0x3] (!%p4633_p13) }
 0x749   : > { %v4062_v10 = vpop.f32.mrb[12].mxu1 }
 0x74a   : > { %v4123_v34 = vadd.f32 %v4062_v10, %v3770_v41  ;;  %v4064_v60 = vpop.f32.mrb[13].mxu1  ;;  %v4180_v41 = vld [vmem:[#allocation3 + $0x8] sm:$0xff] (!%p4633_p13)  ;;  %v8158_v10 = vrot.slane (!%p4633_p13), %v4211_v57, %v7995_v55 }
 0x74b   : > { %v4124_v16 = vadd.f32 %v4064_v60, %v3771_v53  ;;  %v4066_v40 = vpop.f32.mrb[14].mxu1  ;;  %v8155_v53 = vrot.slane (!%p4633_p13), %v4211_v57, %v7993_v14  ;;  %v4183_v60 = vld [vmem:[#allocation3 + $0x20] sm:$0xff] (!%p4633_p13) }
 0x74c   : > { %4155 = vst [vmem:[#allocation3 + $0x60] sm:$0xff] %v4123_v34  ;;  %v4125_v39 = vadd.f32 %v4066_v40, %v3772_v38  ;;  %v4068_v62 = vpop.f32.mrb[15].mxu1  ;;  %v4181_v38 = vld [vmem:[#allocation3 + $0x10] sm:$0xff] (!%p4633_p13)  ;;  %v4182_v34 = vld [vmem:[#allocation3 + $0x18] sm:$0xff] (!%p4633_p13) }
 0x74d   : > { %4156 = vst [vmem:[#allocation3 + $0x68] sm:$0xff] %v4124_v16  ;;  %v4126_v15 = vadd.f32 %v4068_v62, %v3773_v59  ;;  %v4223_v59 = vadd.f32 (!%p4633_p13), %v8155_v53, %v4179_v20  ;;  %v4224_v16 = vadd.f32 (!%p4633_p13), %v8158_v10, %v4180_v41  ;;  %v4225_v40 = vadd.f32 (!%p4633_p13), %v8155_v53, %v4181_v38 }
 0x74e   : > { %4157 = vst [vmem:[#allocation3 + $0x70] sm:$0xff] %v4125_v39  ;;  %v4184_v39 = vld [vmem:[#allocation3 + $0x28] sm:$0xff] (!%p4633_p13)  ;;  %v4226_v62 = vadd.f32 (!%p4633_p13), %v8158_v10, %v4182_v34  ;;  %v4227_v14 = vadd.f32 (!%p4633_p13), %v8155_v53, %v4183_v60 }
 0x74f   : > { %4158 = vst [vmem:[#allocation3 + $0x78] sm:$0xff] %v4126_v15  ;;  %v4185_v15 = vld [vmem:[#allocation3 + $0x30] sm:$0xff] (!%p4633_p13)  ;;  %5090 = vtanh.f32 (!%p4633_p13), %v4223_v59  ;;  %v4228_v55 = vadd.f32 (!%p4633_p13), %v8158_v10, %v4184_v39 }
 0x750   : > { %5092 = vtanh.f32 (!%p4633_p13), %v4224_v16 }
 0x751   : > { %v4072_v6 = vpop.f32.mrb[16].mxu1  ;;  %5094 = vtanh.f32 (!%p4633_p13), %v4225_v40 }
 0x752   : > { %v4127_v19 = vadd.f32 %v4072_v6, %v3774_v21  ;;  %v4074_v36 = vpop.f32.mrb[17].mxu1  ;;  %v4186_v21 = vld [vmem:[#allocation3 + $0x38] sm:$0xff] (!%p4633_p13)  ;;  %v4229_v6 = vadd.f32 (!%p4633_p13), %v8155_v53, %v4185_v15  ;;  %5096 = vtanh.f32 (!%p4633_p13), %v4226_v62 }
 0x753   : > { %v4128_v27 = vadd.f32 %v4074_v36, %v3775_v48  ;;  %v4076_v46 = vpop.f32.mrb[18].mxu1  ;;  %v4187_v48 = vld [vmem:[#allocation3 + $0x40] sm:$0xff] (!%p4633_p13)  ;;  %v4189_v36 = vld [vmem:[#allocation3 + $0x50] sm:$0xff] (!%p4633_p13)  ;;  %5098 = vtanh.f32 (!%p4633_p13), %v4227_v14 }
 0x754   : > { %4159 = vst [vmem:[#allocation3 + $0x80] sm:$0xff] %v4127_v19  ;;  %v4129_v44 = vadd.f32 %v4076_v46, %v3776_v49  ;;  %v4078_v32 = vpop.f32.mrb[19].mxu1  ;;  %v4188_v49 = vld [vmem:[#allocation3 + $0x48] sm:$0xff] (!%p4633_p13)  ;;  %v4230_v19 = vadd.f32 (!%p4633_p13), %v8158_v10, %v4186_v21  ;;  %5100 = vtanh.f32 (!%p4633_p13), %v4228_v55 }
 0x755   : > { %4160 = vst [vmem:[#allocation3 + $0x88] sm:$0xff] %v4128_v27  ;;  %v4130_v17 = vadd.f32 %v4078_v32, %v3777_v58  ;;  %v4231_v58 = vadd.f32 (!%p4633_p13), %v8155_v53, %v4187_v48  ;;  %v4190_v27 = vld [vmem:[#allocation3 + $0x58] sm:$0xff] (!%p4633_p13)  ;;  %v4232_v46 = vadd.f32 (!%p4633_p13), %v8158_v10, %v4188_v49  ;;  %5102 = vtanh.f32 (!%p4633_p13), %v4229_v6 }
 0x756   : > { %4161 = vst [vmem:[#allocation3 + $0x90] sm:$0xff] %v4129_v44  ;;  %v4191_v44 = vld [vmem:[#allocation3 + $0x60] sm:$0xff] (!%p4633_p13)  ;;  %v4233_v32 = vadd.f32 (!%p4633_p13), %v8155_v53, %v4189_v36  ;;  %5104 = vtanh.f32 (!%p4633_p13), %v4230_v19 }
 0x757   : > { %4162 = vst [vmem:[#allocation3 + $0x98] sm:$0xff] %v4130_v17  ;;  %v4192_v17 = vld [vmem:[#allocation3 + $0x68] sm:$0xff] (!%p4633_p13)  ;;  %5106 = vtanh.f32 (!%p4633_p13), %v4231_v58 }
 0x758   : > { %5108 = vtanh.f32 (!%p4633_p13), %v4232_v46 }
 0x759   : > { %v4082_v3 = vpop.f32.mrb[20].mxu1  ;;  %5110 = vtanh.f32 (!%p4633_p13), %v4233_v32 }
 0x75a   : > { %v4131_v28 = vadd.f32 %v4082_v3, %v3778_v7  ;;  %v4084_v47 = vpop.f32.mrb[21].mxu1  ;;  %v4234_v7 = vadd.f32 (!%p4633_p13), %v8158_v10, %v4190_v27  ;;  %v4235_v3 = vadd.f32 (!%p4633_p13), %v8155_v53, %v4191_v44 }
 0x75b   : > { %v4132_v5 = vadd.f32 %v4084_v47, %v3779_v42  ;;  %v4086_v1 = vpop.f32.mrb[22].mxu1  ;;  %v4193_v42 = vld [vmem:[#allocation3 + $0x70] sm:$0xff] (!%p4633_p13)  ;;  %v4195_v47 = vld [vmem:[#allocation3 + $0x80] sm:$0xff] (!%p4633_p13) }
 0x75c   : > { %4163 = vst [vmem:[#allocation3 + $0xa0] sm:$0xff] %v4131_v28  ;;  %v4133_v23 = vadd.f32 %v4086_v1, %v3780_v9  ;;  %v4088_v29 = vpop.f32.mrb[23].mxu1  ;;  %v4194_v9 = vld [vmem:[#allocation3 + $0x78] sm:$0xff] (!%p4633_p13)  ;;  %v4236_v28 = vadd.f32 (!%p4633_p13), %v8158_v10, %v4192_v17  ;;  %v4196_v1 = vld [vmem:[#allocation3 + $0x88] sm:$0xff] (!%p4633_p13)  ;;  %5112 = vtanh.f32 (!%p4633_p13), %v4234_v7 }
 0x75d   : > { %4164 = vst [vmem:[#allocation3 + $0xa8] sm:$0xff] %v4132_v5  ;;  %v4134_v45 = vadd.f32 %v4088_v29, %v3781_v26  ;;  %v5091_v26 = vpop.eup (!%p4633_p13), %5090  ;;  %v4237_v5 = vadd.f32 (!%p4633_p13), %v8155_v53, %v4193_v42  ;;  %v4238_v29 = vadd.f32 (!%p4633_p13), %v8158_v10, %v4194_v9  ;;  %5114 = vtanh.f32 (!%p4633_p13), %v4235_v3 }
 0x75e   : > { %4165 = vst [vmem:[#allocation3 + $0xb0] sm:$0xff] %v4133_v23  ;;  %v5093_v23 = vpop.eup (!%p4633_p13), %5092  ;;  %4287 = vst [vmem:[#allocation10] sm:$0xff] (!%p4633_p13), %v5091_v26  ;;  %5116 = vtanh.f32 (!%p4633_p13), %v4236_v28 }
 0x75f   : > { %4166 = vst [vmem:[#allocation3 + $0xb8] sm:$0xff] %v4134_v45  ;;  %v4197_v45 = vld [vmem:[#allocation3 + $0x90] sm:$0xff] (!%p4633_p13)  ;;  %4288 = vst [vmem:[#allocation10 + $0x8] sm:$0xff] (!%p4633_p13), %v5093_v23  ;;  %5118 = vtanh.f32 (!%p4633_p13), %v4237_v5 }
 0x760   : > { %5120 = vtanh.f32 (!%p4633_p13), %v4238_v29 }
 0x761   : > { %v4092_v11 = vpop.f32.mrb[24].mxu1 }
 0x762   : > { %v4135_v31 = vadd.f32 %v4092_v11, %v3782_v13  ;;  %v4094_v12 = vpop.f32.mrb[25].mxu1  ;;  %v5095_v13 = vpop.eup (!%p4633_p13), %5094  ;;  %v4198_v11 = vld [vmem:[#allocation3 + $0x98] sm:$0xff] (!%p4633_p13) }
 0x763   : > { %v4136_v24 = vadd.f32 %v4094_v12, %v3783_v63  ;;  %v4096_v25 = vpop.f32.mrb[26].mxu1  ;;  %v4239_v63 = vadd.f32 (!%p4633_p13), %v8155_v53, %v4195_v47  ;;  %4289 = vst [vmem:[#allocation10 + $0x10] sm:$0xff] (!%p4633_p13), %v5095_v13  ;;  %v4199_v12 = vld [vmem:[#allocation3 + $0xa0] sm:$0xff] (!%p4633_p13) }
 0x764   : > { %4167 = vst [vmem:[#allocation3 + $0xc0] sm:$0xff] %v4135_v31  ;;  %v4137_v52 = vadd.f32 %v4096_v25, %v3784_v56  ;;  %v4098_v22 = vpop.f32.mrb[27].mxu1  ;;  %v5097_v56 = vpop.eup (!%p4633_p13), %5096  ;;  %v4240_v31 = vadd.f32 (!%p4633_p13), %v8158_v10, %v4196_v1  ;;  %v4200_v25 = vld [vmem:[#allocation3 + $0xa8] sm:$0xff] (!%p4633_p13) }
 0x765   : > { %4168 = vst [vmem:[#allocation3 + $0xc8] sm:$0xff] %v4136_v24  ;;  %v4138_v2 = vadd.f32 %v4098_v22, %v3785_v4  ;;  %v5099_v4 = vpop.eup (!%p4633_p13), %5098  ;;  %4290 = vst [vmem:[#allocation10 + $0x18] sm:$0xff] (!%p4633_p13), %v5097_v56  ;;  %v4241_v24 = vadd.f32 (!%p4633_p13), %v8155_v53, %v4197_v45  ;;  %v4242_v22 = vadd.f32 (!%p4633_p13), %v8158_v10, %v4198_v11  ;;  %5122 = vtanh.f32 (!%p4633_p13), %v4239_v63 }
 0x766   : > { %4169 = vst [vmem:[#allocation3 + $0xd0] sm:$0xff] %v4137_v52  ;;  %v5101_v52 = vpop.eup (!%p4633_p13), %5100  ;;  %4291 = vst [vmem:[#allocation10 + $0x20] sm:$0xff] (!%p4633_p13), %v5099_v4  ;;  %5124 = vtanh.f32 (!%p4633_p13), %v4240_v31 }
 0x767   : > { %4170 = vst [vmem:[#allocation3 + $0xd8] sm:$0xff] %v4138_v2  ;;  %v4201_v2 = vld [vmem:[#allocation3 + $0xb0] sm:$0xff] (!%p4633_p13)  ;;  %4292 = vst [vmem:[#allocation10 + $0x28] sm:$0xff] (!%p4633_p13), %v5101_v52  ;;  %5126 = vtanh.f32 (!%p4633_p13), %v4241_v24 }
 0x768   : > { %5128 = vtanh.f32 (!%p4633_p13), %v4242_v22 }
 0x769   : > { %v4102_v8 = vpop.f32.mrb[28].mxu1  ;;  %4178 = sbr.rel (%p4633_p13) target bundleno = 1926 (0x786), region = 96 }
 0x76a   : > { %v4139_v33 = vadd.f32 %v4102_v8, %v3786_v61  ;;  %v4104_v43 = vpop.f32.mrb[29].mxu1  ;;  %v5103_v61 = vpop.eup (!%p4633_p13), %5102  ;;  %v4202_v8 = vld [vmem:[#allocation3 + $0xb8] sm:$0xff] (!%p4633_p13) }
 0x76b   : > { %v4140_v51 = vadd.f32 %v4104_v43, %v3787_v0  ;;  %v4106_v50 = vpop.f32.mrb[30].mxu1  ;;  %v4243_v0 = vadd.f32 (!%p4633_p13), %v8155_v53, %v4199_v12  ;;  %4293 = vst [vmem:[#allocation10 + $0x30] sm:$0xff] (!%p4633_p13), %v5103_v61  ;;  %v4203_v43 = vld [vmem:[#allocation3 + $0xc0] sm:$0xff] (!%p4633_p13) }
 0x76c   : > { %4171 = vst [vmem:[#allocation3 + $0xe0] sm:$0xff] %v4139_v33  ;;  %v4141_v37 = vadd.f32 %v4106_v50, %v3788_v30  ;;  %v4108_v54 = vpop.f32.mrb[31].mxu1  ;;  %v5105_v30 = vpop.eup (!%p4633_p13), %5104  ;;  %v4244_v33 = vadd.f32 (!%p4633_p13), %v8158_v10, %v4200_v25  ;;  %v4204_v50 = vld [vmem:[#allocation3 + $0xc8] sm:$0xff] (!%p4633_p13)  ;;  %v4247_v57 = vadd.f32 (!%p4633_p13), %v8155_v53, %v4203_v43 }
 0x76d   : > { %4172 = vst [vmem:[#allocation3 + $0xe8] sm:$0xff] %v4140_v51  ;;  %v4142_v18 = vadd.f32 %v4108_v54, %v3789_v35  ;;  %v5107_v35 = vpop.eup (!%p4633_p13), %5106  ;;  %4294 = vst [vmem:[#allocation10 + $0x38] sm:$0xff] (!%p4633_p13), %v5105_v30  ;;  %v4245_v51 = vadd.f32 (!%p4633_p13), %v8155_v53, %v4201_v2  ;;  %v4246_v54 = vadd.f32 (!%p4633_p13), %v8158_v10, %v4202_v8  ;;  %5130 = vtanh.f32 (!%p4633_p13), %v4243_v0 }
 0x76e   : > { %4173 = vst [vmem:[#allocation3 + $0xf0] sm:$0xff] %v4141_v37  ;;  %v5109_v37 = vpop.eup (!%p4633_p13), %5108  ;;  %4295 = vst [vmem:[#allocation10 + $0x40] sm:$0xff] (!%p4633_p13), %v5107_v35  ;;  %v4206_v41 = vld [vmem:[#allocation3 + $0xd8] sm:$0xff] (!%p4633_p13)  ;;  %5132 = vtanh.f32 (!%p4633_p13), %v4244_v33  ;;  %v4248_v34 = vadd.f32 (!%p4633_p13), %v8158_v10, %v4204_v50 }
 0x76f   : > { %4174 = vst [vmem:[#allocation3 + $0xf8] sm:$0xff] %v4142_v18  ;;  %v4205_v18 = vld [vmem:[#allocation3 + $0xd0] sm:$0xff] (!%p4633_p13)  ;;  %v5111_v20 = vpop.eup (!%p4633_p13), %5110  ;;  %4296 = vst [vmem:[#allocation10 + $0x48] sm:$0xff] (!%p4633_p13), %v5109_v37  ;;  %5134 = vtanh.f32 (!%p4633_p13), %v4245_v51  ;;  %v4250_v62 = vadd.f32 (!%p4633_p13), %v8158_v10, %v4206_v41 }
 0x770   : > { %v5113_v38 = vpop.eup %5112  ;;  %4297 = vst [vmem:[#allocation10 + $0x50] sm:$0xff] %v5111_v20  ;;  %v4249_v16 = vadd.f32 %v8155_v53, %v4205_v18  ;;  %5136 = vtanh.f32 %v4246_v54 }
 0x771   : > { %v5115_v59 = vpop.eup %5114  ;;  %4298 = vst [vmem:[#allocation10 + $0x58] sm:$0xff] %v5113_v38  ;;  %5138 = vtanh.f32 %v4247_v57 }
 0x772   : > { %v5117_v39 = vpop.eup %5116  ;;  %4299 = vst [vmem:[#allocation10 + $0x60] sm:$0xff] %v5115_v59  ;;  %5140 = vtanh.f32 %v4248_v34 }
 0x773   : > { %v4207_v60 = vld [vmem:[#allocation3 + $0xe0] sm:$0xff]  ;;  %v5119_v14 = vpop.eup %5118  ;;  %4300 = vst [vmem:[#allocation10 + $0x68] sm:$0xff] %v5117_v39  ;;  %5142 = vtanh.f32 %v4249_v16 }
 0x774   : > { %v4208_v40 = vld [vmem:[#allocation3 + $0xe8] sm:$0xff]  ;;  %v4251_v21 = vadd.f32 %v8155_v53, %v4207_v60  ;;  %v5121_v48 = vpop.eup %5120  ;;  %4301 = vst [vmem:[#allocation10 + $0x70] sm:$0xff] %v5119_v14  ;;  %5144 = vtanh.f32 %v4250_v62 }
 0x775   : > { %v4209_v15 = vld [vmem:[#allocation3 + $0xf0] sm:$0xff]  ;;  %v4252_v6 = vadd.f32 %v8158_v10, %v4208_v40  ;;  %v5123_v49 = vpop.eup %5122  ;;  %4302 = vst [vmem:[#allocation10 + $0x78] sm:$0xff] %v5121_v48 }
 0x776   : > { %v4210_v55 = vld [vmem:[#allocation3 + $0xf8] sm:$0xff]  ;;  %v4253_v19 = vadd.f32 %v8155_v53, %v4209_v15  ;;  %v5125_v36 = vpop.eup %5124  ;;  %4303 = vst [vmem:[#allocation10 + $0x80] sm:$0xff] %v5123_v49  ;;  %5146 = vtanh.f32 %v4251_v21 }
 0x777   : > { %v4254_v58 = vadd.f32 %v8158_v10, %v4210_v55  ;;  %v5127_v27 = vpop.eup %5126  ;;  %4304 = vst [vmem:[#allocation10 + $0x88] sm:$0xff] %v5125_v36  ;;  %5148 = vtanh.f32 %v4252_v6 }
 0x778   : > { %v5129_v46 = vpop.eup %5128  ;;  %4305 = vst [vmem:[#allocation10 + $0x90] sm:$0xff] %v5127_v27  ;;  %5150 = vtanh.f32 %v4253_v19 }
 0x779   : > { %v5131_v44 = vpop.eup %5130  ;;  %4306 = vst [vmem:[#allocation10 + $0x98] sm:$0xff] %v5129_v46  ;;  %5152 = vtanh.f32 %v4254_v58 }
 0x77a   : > { %v5133_v32 = vpop.eup %5132  ;;  %4307 = vst [vmem:[#allocation10 + $0xa0] sm:$0xff] %v5131_v44 }
 0x77b   : > { %v5135_v17 = vpop.eup %5134  ;;  %4308 = vst [vmem:[#allocation10 + $0xa8] sm:$0xff] %v5133_v32 }
 0x77c   : > { %v5137_v53 = vpop.eup %5136  ;;  %4309 = vst [vmem:[#allocation10 + $0xb0] sm:$0xff] %v5135_v17 }
 0x77d   : > { %v5139_v7 = vpop.eup %5138  ;;  %4310 = vst [vmem:[#allocation10 + $0xb8] sm:$0xff] %v5137_v53 }
 0x77e   : > { %v5141_v42 = vpop.eup %5140  ;;  %4311 = vst [vmem:[#allocation10 + $0xc0] sm:$0xff] %v5139_v7 }
 0x77f   : > { %v5143_v10 = vpop.eup %5142  ;;  %4312 = vst [vmem:[#allocation10 + $0xc8] sm:$0xff] %v5141_v42 }
 0x780   : > { %v5145_v3 = vpop.eup %5144  ;;  %4313 = vst [vmem:[#allocation10 + $0xd0] sm:$0xff] %v5143_v10 }
 0x781   : > { %v5147_v9 = vpop.eup %5146  ;;  %4314 = vst [vmem:[#allocation10 + $0xd8] sm:$0xff] %v5145_v3 }
 0x782   : > { %v5149_v28 = vpop.eup %5148  ;;  %4315 = vst [vmem:[#allocation10 + $0xe0] sm:$0xff] %v5147_v9 }
 0x783   : > { %v5151_v47 = vpop.eup %5150  ;;  %4316 = vst [vmem:[#allocation10 + $0xe8] sm:$0xff] %v5149_v28 }
 0x784   : > { %v5153_v26 = vpop.eup %5152  ;;  %4317 = vst [vmem:[#allocation10 + $0xf0] sm:$0xff] %v5151_v47 }
 0x785   : > { %4318 = vst [vmem:[#allocation10 + $0xf8] sm:$0xff] %v5153_v26 }
 0x786 PF: > { %p4761_p0 = scmp.eq.s32.totalorder %s5482_s21, 3  ;;  %s5324_s16 = smov [#allocation10]  }
 0x787   : > { %s4325_s26 = sshll.u32 %s5324_s16, 4  ;;  %s4326_s26 = int_to_ptr.vmem [resolvable:$true] %s4325_s26 }
 0x788   : > { %s5242_s23 = scalar_lea.vmem %s4326_s26, 4096  ;;  %p5249_p1 = scmp.lt.s32.totalorder %s4326_s26, %s4326_s26 }
 0x789   : > { %p5243_p4 = scmp.ne.s32.totalorder %s4326_s26, %s5242_s23  ;;  %p5250_p3 = scmp.lt.s32.totalorder %s5242_s23, %s5242_s23 }
 0x78b   : > { %p5244_p7 = pnand %p5243_p4, %p4761_p0  ;;  %p5251_p8 = por %p5250_p3, %p5249_p1 }
 0x78d   : > { %p5245_p5 = pneg %p5244_p7 }
 0x78f   : > { %p5252_p2 = pnand %p5251_p8, %p5245_p5 }
 0x791   : > { %5255 = shalt.err (!%p5252_p2)
}
 0x792   : > { %s8721_s7 = sld [smem:[#allocation74_spill]] }
 0x798   : > { %s5256_s15 = scalar_lea.hbm %s8721_s7, 4096 }
 0x799   : > { %p5257_p10 = scmp.ne.s32.totalorder %s8721_s7, %s5256_s15  ;;  %p5262_p12 = scmp.lt.u32.totalorder %s5256_s15, %s8721_s7 }
 0x79b   : > { %p5258_p11 = pnand %p5257_p10, %p4761_p0 }
 0x79d   : > { %p5259_p6 = pneg %p5258_p11 }
 0x79f   : > { %p5264_p9 = pnand %p5262_p12, %p5259_p6 }
 0x7a1   : > { %5267 = shalt.err (!%p5264_p9)
}
 0x7a2   : > { %s5325_s9 = smov 256   ;;  %s5326_s27 = smov 16  }
 0x7a3   : > { %4744 = dma.vmem_to_hbm [thread:$0]  (%p4761_p0), %s4326_s26, 4096, %s8721_s7, [#allocation6], %s5325_s9, %s5325_s9, %s5326_s27  }
 0x7a4   : > { %5293 = dma.done.wait (%p4761_p0), [#allocation6], 4096  }
 0x7a5   : > { %5295 = vsyncadd (%p4761_p0), [#allocation6], 4294963200 }
 0x7a6 PF: > { %s8722_s16 = sld [smem:[#allocation15_spill]]  ;;  %s8723_s22 = sld [smem:[#allocation14_spill]] }
 0x7a7   : > { %s8724_s15 = sld [smem:[#allocation16_spill]]  ;;  %s8725_s29 = smov %s5302_s30 }
 0x7ac   : > { %p26_p13 = scmp.ge.s32.totalorder %s8722_s16, 6   ;;  %s8726_s30 = smov %s8723_s22 }
 0x7ae   :  { %28 = sbr.rel (!%p26_p13) target bundleno = 11 (0xb), region = 143 }
 0x7b5   :  { %4341 = vsyncpa [#allocation5], 1 }
 0x7b6   :  { %4343 = vsyncpa [#allocation5 + $0x1], 1 }
 0x7b7   :  { %4344 = vsyncpa [#allocation8], 1 }
 0x7b8   :  { %4346 = vsyncpa [#allocation8 + $0x1], 1 }
 0x7b9   :  { %4347 = vsyncpa [#allocation6], 1 }
 0x7ba   :  { %4349 = vsyncpa [#allocation6 + $0x1], 1 }

</bundles_post_ra>
